<compile_context>
chip_gen: v6e
topology: v6e:2x2x1
jax: 0.10.0
libtpu: 0.0.40
codegen_flags: <defaults>
</compile_context>

<pallas_src>
import functools

import jax
import jax.numpy as jnp
from jax import lax
from jax.experimental import pallas as pl
from jax.experimental.pallas import tpu as pltpu

FEAT_DIM = 128       # output feature dim of encoder / BaseLearner
HIDDEN_DIM = 64      # hidden dim of encoder stand-in (zero-padded to HID_PAD)
HID_PAD = 128        # lane-dense padded hidden dim
IN_CHANNELS = 9      # pc_in_dim (PointNet2encoder input_channel=9)
M_TILE_MAX = 2048    # max rows (points) per grid step for the feature kernels
VMEM_LIMIT = 32 * 1024 * 1024   # safe on v5e/v6e/v7x


def _round_up(x, m):
    return ((x + m - 1) // m) * m


def _pick_m_tile(m):
    """Largest tile <= M_TILE_MAX that still yields >= 2 grid steps (megacore)."""
    half = _round_up(max((m + 1) // 2, 1), 8)
    return max(8, min(M_TILE_MAX, half))


# --------------------------------------------------------------------------
# Shared per-point body: encoder stand-in (9 -> 128 -> 128) + Conv1d(128,128,1)
# --------------------------------------------------------------------------
def _mlp_conv(x, w1, b1, w2, b2, wc, bc):
    # NOTE: first matmul kept at K=9 on purpose: its FLOPs are negligible and
    # padding input channels to 128 would inflate input HBM traffic ~14x.
    h = jnp.dot(x.astype(jnp.bfloat16), w1, preferred_element_type=jnp.float32) + b1
    h = jnp.maximum(h, 0.0)
    h = jnp.dot(h.astype(jnp.bfloat16), w2, preferred_element_type=jnp.float32) + b2
    h = jnp.maximum(h, 0.0)
    # BaseLearner conv1: Conv1d(128,128,1) == per-point matmul (bf16 MXU, f32 acc)
    y = jnp.dot(h.astype(jnp.bfloat16), wc, preferred_element_type=jnp.float32) + bc
    return y


# --------------------------------------------------------------------------
# Kernel 1a: getFeatures pass 1 — partial BatchNorm statistics only (no y write)
# --------------------------------------------------------------------------
def feature_stats_kernel(x_ref, w1_ref, b1_ref, w2_ref, b2_ref, wc_ref, bc_ref,
                         psum_ref, psq_ref, *, m_valid, m_tile):
    i = pl.program_id(0)
    last = pl.num_programs(0) - 1
    y = _mlp_conv(x_ref[...], w1_ref[...], b1_ref[...], w2_ref[...], b2_ref[...],
                  wc_ref[...], bc_ref[...])                       # (Mt, D) f32

    # Column sums on the MXU ((1,Mt)@(Mt,D)) so the cross-sublane reduction
    # stays off the XLU/VALU; only the last tile can contain padded rows.
    @pl.when(i < last)
    def _():
        ones = jnp.ones((1, m_tile), jnp.float32)
        psum_ref[0] = jnp.dot(ones, y, preferred_element_type=jnp.float32)
        psq_ref[0] = jnp.dot(ones, y * y, preferred_element_type=jnp.float32)

    @pl.when(i == last)
    def _():
        col = lax.broadcasted_iota(jnp.int32, (1, m_tile), 1)
        valid = (i * m_tile + col < m_valid).astype(jnp.float32)   # (1, Mt)
        psum_ref[0] = jnp.dot(valid, y, preferred_element_type=jnp.float32)
        psq_ref[0] = jnp.dot(valid, y * y, preferred_element_type=jnp.float32)


# --------------------------------------------------------------------------
# Kernel 1b: getFeatures pass 2 — recompute MLP+conv, fused BN apply + ReLU
# --------------------------------------------------------------------------
def feature_apply_kernel(x_ref, w1_ref, b1_ref, w2_ref, b2_ref, wc_ref, bc_ref,
                         scale_ref, shift_ref, out_ref):
    y = _mlp_conv(x_ref[...], w1_ref[...], b1_ref[...], w2_ref[...], b2_ref[...],
                  wc_ref[...], bc_ref[...])
    out_ref[...] = jnp.maximum(y * scale_ref[...] + shift_ref[...], 0.0)


def get_features(x_bnc, params):
    """x_bnc: (B, N, C_in) float32 -> (B, N, FEAT_DIM) float32."""
    B, N, C_in = x_bnc.shape
    M = B * N
    m_tile = _pick_m_tile(M)
    M_pad = _round_up(M, m_tile)
    num_tiles = M_pad // m_tile

    x = x_bnc.reshape(M, C_in)
    if M_pad != M:
        x = jnp.pad(x, ((0, M_pad - M), (0, 0)))

    # Weights in bf16 for the MXU; hidden dim zero-padded 64 -> 128 so h is
    # lane-dense and the second matmul has K=128.  Biases / BN affine stay f32.
    w1 = jnp.pad(params["w1"], ((0, 0), (0, HID_PAD - HIDDEN_DIM))).astype(jnp.bfloat16)
    b1 = jnp.pad(params["b1"], ((0, 0), (0, HID_PAD - HIDDEN_DIM)))
    w2 = jnp.pad(params["w2"], ((0, HID_PAD - HIDDEN_DIM), (0, 0))).astype(jnp.bfloat16)
    wc = params["wc"].astype(jnp.bfloat16)

    const2 = lambda i: (0, 0)       # params resident across grid steps
    weight_specs = [
        pl.BlockSpec((C_in, HID_PAD), const2),
        pl.BlockSpec((1, HID_PAD), const2),
        pl.BlockSpec((HID_PAD, FEAT_DIM), const2),
        pl.BlockSpec((1, FEAT_DIM), const2),
        pl.BlockSpec((FEAT_DIM, FEAT_DIM), const2),
        pl.BlockSpec((1, FEAT_DIM), const2),
    ]
    cparams = pltpu.CompilerParams(dimension_semantics=("parallel",),
                                   vmem_limit_bytes=VMEM_LIMIT)

    # ---- pass 1: BN partial statistics only (no pre-BN activation writeback)
    stats_kernel = functools.partial(feature_stats_kernel, m_valid=M, m_tile=m_tile)
    psum, psq = pl.pallas_call(
        stats_kernel,
        out_shape=(
            jax.ShapeDtypeStruct((num_tiles, 1, FEAT_DIM), jnp.float32),
            jax.ShapeDtypeStruct((num_tiles, 1, FEAT_DIM), jnp.float32),
        ),
        grid=(num_tiles,),
        in_specs=[pl.BlockSpec((m_tile, C_in), lambda i: (i, 0))] + weight_specs,
        out_specs=(
            pl.BlockSpec((1, 1, FEAT_DIM), lambda i: (i, 0, 0)),
            pl.BlockSpec((1, 1, FEAT_DIM), lambda i: (i, 0, 0)),
        ),
        compiler_params=cparams,
    )(x, w1, b1, w2, params["b2"], wc, params["bc"])

    # BatchNorm1d train-mode stats over the full B*N batch, folded into a single
    # scale/shift so the apply pass is one fused multiply-add + ReLU.
    s = jnp.sum(psum[:, 0, :], axis=0)                              # (D,)
    sq = jnp.sum(psq[:, 0, :], axis=0)                              # (D,)
    mean = s / M
    var = jnp.maximum(sq / M - mean * mean, 0.0)                    # biased var
    scale = params["gamma"] * lax.rsqrt(var[None, :] + 1e-5)        # (1, D)
    shift = params["beta"] - mean[None, :] * scale                  # (1, D)

    # ---- pass 2: recompute MLP+conv, apply BN + ReLU, write final features
    out = pl.pallas_call(
        feature_apply_kernel,
        out_shape=jax.ShapeDtypeStruct((M_pad, FEAT_DIM), jnp.float32),
        grid=(num_tiles,),
        in_specs=[pl.BlockSpec((m_tile, C_in), lambda i: (i, 0))] + weight_specs + [
            pl.BlockSpec((1, FEAT_DIM), const2),
            pl.BlockSpec((1, FEAT_DIM), const2),
        ],
        out_specs=pl.BlockSpec((m_tile, FEAT_DIM), lambda i: (i, 0)),
        compiler_params=cparams,
    )(x, w1, b1, w2, params["b2"], wc, params["bc"], scale, shift)

    return out[:M].reshape(B, N, FEAT_DIM)


# --------------------------------------------------------------------------
# Kernel 2: getMaskedFeatures — fused fg/bg masked average pooling.
# Support features are read ONCE; both masks contracted in one batched MXU op.
# --------------------------------------------------------------------------
def masked_pool_kernel(feat_ref, mask_ref, out_ref):
    feat = feat_ref[...]                                        # (G, N, D) f32
    masks = mask_ref[...]                                       # (G, 2, N) f32
    num = jnp.einsum("gmn,gnd->gmd", masks, feat,
                     preferred_element_type=jnp.float32)        # (G, 2, D)
    den = jnp.sum(masks, axis=-1, keepdims=True) + 1e-5         # (G, 2, 1)
    out_ref[...] = num / den


def get_masked_features_fused(feat_wknd, fg_mask_wkn):
    """feat: (W,K,N,D); fg_mask: (W,K,N) -> (fg (W,K,D), bg (W,K,D))."""
    W, K, N, D = feat_wknd.shape
    WK = W * K
    feat = feat_wknd.reshape(WK, N, D)
    fg = fg_mask_wkn.reshape(WK, 1, N).astype(jnp.float32)
    masks = jnp.concatenate([fg, 1.0 - fg], axis=1)             # (WK, 2, N)

    G = min(WK, 8)                                              # groups per step
    WK_pad = _round_up(WK, G)
    if WK_pad != WK:
        feat = jnp.pad(feat, ((0, WK_pad - WK), (0, 0), (0, 0)))
        masks = jnp.pad(masks, ((0, WK_pad - WK), (0, 0), (0, 0)))

    out = pl.pallas_call(
        masked_pool_kernel,
        out_shape=jax.ShapeDtypeStruct((WK_pad, 2, D), jnp.float32),
        grid=(WK_pad // G,),
        in_specs=[
            pl.BlockSpec((G, N, D), lambda i: (i, 0, 0)),
            pl.BlockSpec((G, 2, N), lambda i: (i, 0, 0)),
        ],
        out_specs=pl.BlockSpec((G, 2, D), lambda i: (i, 0, 0)),
        compiler_params=pltpu.CompilerParams(dimension_semantics=("parallel",)),
    )(feat, masks)

    out = out[:WK].reshape(W, K, 2, D)
    return out[:, :, 0, :], out[:, :, 1, :]


# --------------------------------------------------------------------------
# Kernel 3: calculateSimilarity (cosine * 10), few large query blocks
# --------------------------------------------------------------------------
def similarity_kernel(feat_ref, proto_ref, out_ref):
    feat = feat_ref[...]                                           # (Qb, N, D) f32
    qb = feat.shape[0]
    # 1 / max(||q||, 1e-8)  (per-norm clamp, matches F.cosine_similarity eps)
    qsq = jnp.sum(feat * feat, axis=-1)                            # (Qb, N)
    inv_qnorm = lax.rsqrt(jnp.maximum(qsq, 1e-16))                 # (Qb, N)
    # prototypes arrive pre-normalized with the x10 scaler folded in (f32).
    # transpose-free batched contraction: out[q,c,n] = sum_d proto[c,d]*feat[q,n,d]
    proto_b = jnp.broadcast_to(proto_ref[...], (qb,) + proto_ref.shape)
    dots = jnp.einsum("qcd,qnd->qcn", proto_b, feat,
                      preferred_element_type=jnp.float32)          # (Qb, C, N)
    out_ref[...] = dots * inv_qnorm[:, None, :]


def calculate_similarity(query_feat, prototypes):
    """query_feat: (Q, N, D); prototypes: (C, D) -> (Q, C, N)."""
    Q, N, D = query_feat.shape
    C = prototypes.shape[0]

    # Hoist query-invariant work out of the grid: prototype norms + x10 scaler.
    pnorm = jnp.maximum(
        jnp.sqrt(jnp.sum(prototypes * prototypes, axis=1, keepdims=True)), 1e-8)
    protos_scaled = prototypes / pnorm * 10.0                      # (C, D) f32

    # As many queries per step as fit a modest VMEM budget (all of them for small Q).
    bytes_per_q = N * D * 4 + C * N * 4 + N * 4
    QB = max(1, min(Q, (8 * 1024 * 1024) // max(bytes_per_q, 1)))
    Q_pad = _round_up(Q, QB)
    qf = query_feat
    if Q_pad != Q:
        qf = jnp.pad(qf, ((0, Q_pad - Q), (0, 0), (0, 0)))

    out = pl.pallas_call(
        similarity_kernel,
        out_shape=jax.ShapeDtypeStruct((Q_pad, C, N), jnp.float32),
        grid=(Q_pad // QB,),
        in_specs=[
            pl.BlockSpec((QB, N, D), lambda q: (q, 0, 0)),
            pl.BlockSpec((C, D), lambda q: (0, 0)),
        ],
        out_specs=pl.BlockSpec((QB, C, N), lambda q: (q, 0, 0)),
        compiler_params=pltpu.CompilerParams(dimension_semantics=("parallel",)),
    )(qf, protos_scaled)
    return out[:Q]


# --------------------------------------------------------------------------
# Plain-JAX glue: prototypes + focal/dice loss
# --------------------------------------------------------------------------
def focal_dice_loss(logits, labels, pred_choice, n_way):
    # TODO(synk): exact PointNetSegLoss not provided; standard focal+dice used.
    num_classes = n_way + 1
    alpha = jnp.ones((num_classes,), jnp.float32).at[-1].set(0.15)
    gamma = 1.0
    logp = jax.nn.log_softmax(logits, axis=1)                             # (Q, C, N)
    ce = -jnp.take_along_axis(logp, labels[:, None, :], axis=1)[:, 0, :]  # (Q, N)
    pt = jnp.exp(-ce)
    focal = jnp.mean(alpha[labels] * (1.0 - pt) ** gamma * ce)
    pred_oh = jax.nn.one_hot(pred_choice, num_classes)                    # (Q, N, C)
    tgt_oh = jax.nn.one_hot(labels, num_classes)
    inter = jnp.sum(pred_oh * tgt_oh)
    dice = 1.0 - (2.0 * inter + 1.0) / (jnp.sum(pred_oh) + jnp.sum(tgt_oh) + 1.0)
    return focal + dice


def protonet_forward(params, support_x, support_y, query_x, query_y,
                     n_way, k_shot):
    """
    support_x: (n_way, k_shot, C_in, N)   support_y: (n_way, k_shot, N) in {0,1}
    query_x:   (n_q, C_in, N)             query_y:   (n_q, N) in {0..n_way}
    returns (query_pred (n_q, n_way+1, N), loss scalar)
    """
    C_in = support_x.shape[2]
    N = support_x.shape[3]

    # ---- getFeatures (support) ----
    sx = support_x.reshape(n_way * k_shot, C_in, N).transpose(0, 2, 1)   # (B, N, C)
    support_feat = get_features(sx, params)                              # (B, N, D)
    support_feat = support_feat.reshape(n_way, k_shot, N, FEAT_DIM)

    # ---- getFeatures (query) ----
    qx = query_x.transpose(0, 2, 1)                                      # (Q, N, C)
    query_feat = get_features(qx, params)                                # (Q, N, D)

    # ---- masked average pooling (fg + bg fused, one read of support_feat) ----
    fg_mask = support_y.astype(jnp.float32)                              # (W, K, N)
    support_fg_feat, support_bg_feat = get_masked_features_fused(
        support_feat, fg_mask)                                           # (W, K, D) x2

    # ---- prototypes ----
    fg_prototypes = jnp.sum(support_fg_feat, axis=1) / k_shot            # (W, D)
    bg_prototype = jnp.sum(support_bg_feat, axis=(0, 1)) / (n_way * k_shot)  # (D,)
    prototypes = jnp.concatenate([bg_prototype[None, :], fg_prototypes], axis=0)

    # ---- cosine similarity (dist_method='cosine', scaler=10) ----
    query_pred = calculate_similarity(query_feat, prototypes)            # (Q, W+1, N)

    # ---- prediction + focal/dice loss ----
    # argmax(softmax(x)) == argmax(x); softmax dropped (same result).
    pred_choice = jnp.argmax(query_pred, axis=1)                         # (Q, N)
    loss = focal_dice_loss(query_pred, query_y, pred_choice, n_way)
    return query_pred, loss


# --------------------------------------------------------------------------
# Deterministic parameter init
# --------------------------------------------------------------------------
def init_params(key):
    ks = jax.random.split(key, 6)
    return {
        # encoder stand-in (9 -> 64 -> 128)
        "w1": 0.1 * jax.random.normal(ks[0], (IN_CHANNELS, HIDDEN_DIM), jnp.float32),
        "b1": 0.01 * jax.random.normal(ks[1], (1, HIDDEN_DIM), jnp.float32),
        "w2": 0.1 * jax.random.normal(ks[2], (HIDDEN_DIM, FEAT_DIM), jnp.float32),
        "b2": 0.01 * jax.random.normal(ks[3], (1, FEAT_DIM), jnp.float32),
        # BaseLearner: Conv1d(128,128,1) + BatchNorm1d(128)
        "wc": 0.1 * jax.random.normal(ks[4], (FEAT_DIM, FEAT_DIM), jnp.float32),
        "bc": 0.01 * jax.random.normal(ks[5], (1, FEAT_DIM), jnp.float32),
        "gamma": jnp.ones((1, FEAT_DIM), jnp.float32),   # BN affine (PyTorch default)
        "beta": jnp.zeros((1, FEAT_DIM), jnp.float32),
    }


if __name__ == "__main__":
    n_way, k_shot, n_queries, n_points = 2, 2, 2, 128

    key = jax.random.PRNGKey(0)
    k_param, k_sx, k_sy, k_qx, k_qy = jax.random.split(key, 5)

    params = init_params(k_param)

    support_x = jax.random.normal(
        k_sx, (n_way, k_shot, IN_CHANNELS, n_points), jnp.float32)
    support_y = jax.random.bernoulli(
        k_sy, 0.5, (n_way, k_shot, n_points)).astype(jnp.int32)
    query_x = jax.random.normal(
        k_qx, (n_queries, IN_CHANNELS, n_points), jnp.float32)
    query_y = jax.random.randint(
        k_qy, (n_queries, n_points), 0, n_way + 1, jnp.int32)

    fwd = jax.jit(protonet_forward, static_argnames=("n_way", "k_shot"))
    query_pred, loss = fwd(params, support_x, support_y, query_x, query_y,
                           n_way=n_way, k_shot=k_shot)
    jax.block_until_ready((query_pred, loss))

    assert query_pred.shape == (n_queries, n_way + 1, n_points)
    assert bool(jnp.all(jnp.isfinite(query_pred)))
    assert bool(jnp.isfinite(loss))
    print("KERNEL_OK")
</pallas_src>

<mosaic_0001>
module attributes {stable_mosaic.version = 11 : i64} {
  func.func @feature_apply_kernel(%arg0: i32, %arg1: memref<256x9xf32, #tpu.memory_space<vmem>>, %arg2: memref<9x128xbf16, #tpu.memory_space<vmem>>, %arg3: memref<1x128xf32, #tpu.memory_space<vmem>>, %arg4: memref<128x128xbf16, #tpu.memory_space<vmem>>, %arg5: memref<1x128xf32, #tpu.memory_space<vmem>>, %arg6: memref<128x128xbf16, #tpu.memory_space<vmem>>, %arg7: memref<1x128xf32, #tpu.memory_space<vmem>>, %arg8: memref<1x128xf32, #tpu.memory_space<vmem>>, %arg9: memref<1x128xf32, #tpu.memory_space<vmem>>, %arg10: memref<256x128xf32, #tpu.memory_space<vmem>>) attributes {dimension_semantics = [#tpu.dimension_semantics<parallel>], iteration_bounds = array<i64: 2>, scalar_prefetch = 0 : i64, scratch_operands = 0 : i64, tpu.core_type = #tpu.core_type<tc>, window_params = [{transform_indices = @transform_0, window_bounds = array<i64: 256, 9>}, {pipeline_mode = #tpu.pipeline_mode<synchronous>, transform_indices = @transform_1, window_bounds = array<i64: 9, 128>}, {pipeline_mode = #tpu.pipeline_mode<synchronous>, transform_indices = @transform_2, window_bounds = array<i64: 1, 128>}, {pipeline_mode = #tpu.pipeline_mode<synchronous>, transform_indices = @transform_3, window_bounds = array<i64: 128, 128>}, {pipeline_mode = #tpu.pipeline_mode<synchronous>, transform_indices = @transform_4, window_bounds = array<i64: 1, 128>}, {pipeline_mode = #tpu.pipeline_mode<synchronous>, transform_indices = @transform_5, window_bounds = array<i64: 128, 128>}, {pipeline_mode = #tpu.pipeline_mode<synchronous>, transform_indices = @transform_6, window_bounds = array<i64: 1, 128>}, {pipeline_mode = #tpu.pipeline_mode<synchronous>, transform_indices = @transform_7, window_bounds = array<i64: 1, 128>}, {pipeline_mode = #tpu.pipeline_mode<synchronous>, transform_indices = @transform_8, window_bounds = array<i64: 1, 128>}, {transform_indices = @transform_9, window_bounds = array<i64: 256, 128>}]} {
    %c0 = arith.constant 0 : index
    %c0_0 = arith.constant 0 : index
    %0 = vector.load %arg1[%c0, %c0_0] : memref<256x9xf32, #tpu.memory_space<vmem>>, vector<256x9xf32>
    %c0_1 = arith.constant 0 : index
    %c0_2 = arith.constant 0 : index
    %1 = vector.load %arg2[%c0_1, %c0_2] : memref<9x128xbf16, #tpu.memory_space<vmem>>, vector<9x128xbf16>
    %c0_3 = arith.constant 0 : index
    %c0_4 = arith.constant 0 : index
    %2 = vector.load %arg3[%c0_3, %c0_4] : memref<1x128xf32, #tpu.memory_space<vmem>>, vector<1x128xf32>
    %c0_5 = arith.constant 0 : index
    %c0_6 = arith.constant 0 : index
    %3 = vector.load %arg4[%c0_5, %c0_6] : memref<128x128xbf16, #tpu.memory_space<vmem>>, vector<128x128xbf16>
    %c0_7 = arith.constant 0 : index
    %c0_8 = arith.constant 0 : index
    %4 = vector.load %arg5[%c0_7, %c0_8] : memref<1x128xf32, #tpu.memory_space<vmem>>, vector<1x128xf32>
    %c0_9 = arith.constant 0 : index
    %c0_10 = arith.constant 0 : index
    %5 = vector.load %arg6[%c0_9, %c0_10] : memref<128x128xbf16, #tpu.memory_space<vmem>>, vector<128x128xbf16>
    %c0_11 = arith.constant 0 : index
    %c0_12 = arith.constant 0 : index
    %6 = vector.load %arg7[%c0_11, %c0_12] : memref<1x128xf32, #tpu.memory_space<vmem>>, vector<1x128xf32>
    %7 = arith.truncf %0 : vector<256x9xf32> to vector<256x9xbf16>
    %cst = arith.constant dense<0.000000e+00> : vector<256x128xf32>
    %8 = tpu.matmul %7, %1, %cst {dimension_numbers = #tpu.dot_dimension_numbers<[1], [0], [0], [1], [0, 0, 1, 1], [], []>} : vector<256x9xbf16>, vector<9x128xbf16>, vector<256x128xf32> -> vector<256x128xf32>
    %9 = vector.broadcast %2 : vector<1x128xf32> to vector<256x128xf32>
    %10 = arith.addf %8, %9 : vector<256x128xf32>
    %cst_13 = arith.constant 0.000000e+00 : f32
    %11 = vector.broadcast %cst_13 : f32 to vector<256x128xf32>
    %12 = arith.maximumf %10, %11 : vector<256x128xf32>
    %13 = arith.truncf %12 : vector<256x128xf32> to vector<256x128xbf16>
    %cst_14 = arith.constant dense<0.000000e+00> : vector<256x128xf32>
    %14 = tpu.matmul %13, %3, %cst_14 {dimension_numbers = #tpu.dot_dimension_numbers<[1], [0], [0], [1], [0, 0, 1, 1], [], []>} : vector<256x128xbf16>, vector<128x128xbf16>, vector<256x128xf32> -> vector<256x128xf32>
    %15 = vector.broadcast %4 : vector<1x128xf32> to vector<256x128xf32>
    %16 = arith.addf %14, %15 : vector<256x128xf32>
    %cst_15 = arith.constant 0.000000e+00 : f32
    %17 = vector.broadcast %cst_15 : f32 to vector<256x128xf32>
    %18 = arith.maximumf %16, %17 : vector<256x128xf32>
    %19 = arith.truncf %18 : vector<256x128xf32> to vector<256x128xbf16>
    %cst_16 = arith.constant dense<0.000000e+00> : vector<256x128xf32>
    %20 = tpu.matmul %19, %5, %cst_16 {dimension_numbers = #tpu.dot_dimension_numbers<[1], [0], [0], [1], [0, 0, 1, 1], [], []>} : vector<256x128xbf16>, vector<128x128xbf16>, vector<256x128xf32> -> vector<256x128xf32>
    %21 = vector.broadcast %6 : vector<1x128xf32> to vector<256x128xf32>
    %22 = arith.addf %20, %21 : vector<256x128xf32>
    %c0_17 = arith.constant 0 : index
    %c0_18 = arith.constant 0 : index
    %23 = vector.load %arg8[%c0_17, %c0_18] : memref<1x128xf32, #tpu.memory_space<vmem>>, vector<1x128xf32>
    %24 = vector.broadcast %23 : vector<1x128xf32> to vector<256x128xf32>
    %25 = arith.mulf %22, %24 : vector<256x128xf32>
    %c0_19 = arith.constant 0 : index
    %c0_20 = arith.constant 0 : index
    %26 = vector.load %arg9[%c0_19, %c0_20] : memref<1x128xf32, #tpu.memory_space<vmem>>, vector<1x128xf32>
    %27 = vector.broadcast %26 : vector<1x128xf32> to vector<256x128xf32>
    %28 = arith.addf %25, %27 : vector<256x128xf32>
    %cst_21 = arith.constant 0.000000e+00 : f32
    %29 = vector.broadcast %cst_21 : f32 to vector<256x128xf32>
    %30 = arith.maximumf %28, %29 : vector<256x128xf32>
    %c0_22 = arith.constant 0 : index
    %c0_23 = arith.constant 0 : index
    %31 = vector.load %arg10[%c0_22, %c0_23] : memref<256x128xf32, #tpu.memory_space<vmem>>, vector<256x128xf32>
    tpu.vector_store %arg10[%c0_22, %c0_23], %30 {strides = array<i32>} : memref<256x128xf32, #tpu.memory_space<vmem>>, vector<256x128xf32>,
    return
  }
  func.func @transform_0(%arg0: i32) -> (i32, i32) {
    %c0_i32 = arith.constant 0 : i32
    %c0_i32_0 = arith.constant 0 : i32
    return %arg0, %c0_i32 : i32, i32
  }
  func.func @transform_1(%arg0: i32) -> (i32, i32) {
    %c0_i32 = arith.constant 0 : i32
    %c0_i32_0 = arith.constant 0 : i32
    %c0_i32_1 = arith.constant 0 : i32
    return %c0_i32, %c0_i32_0 : i32, i32
  }
  func.func @transform_2(%arg0: i32) -> (i32, i32) {
    %c0_i32 = arith.constant 0 : i32
    %c0_i32_0 = arith.constant 0 : i32
    %c0_i32_1 = arith.constant 0 : i32
    return %c0_i32, %c0_i32_0 : i32, i32
  }
  func.func @transform_3(%arg0: i32) -> (i32, i32) {
    %c0_i32 = arith.constant 0 : i32
    %c0_i32_0 = arith.constant 0 : i32
    %c0_i32_1 = arith.constant 0 : i32
    return %c0_i32, %c0_i32_0 : i32, i32
  }
  func.func @transform_4(%arg0: i32) -> (i32, i32) {
    %c0_i32 = arith.constant 0 : i32
    %c0_i32_0 = arith.constant 0 : i32
    %c0_i32_1 = arith.constant 0 : i32
    return %c0_i32, %c0_i32_0 : i32, i32
  }
  func.func @transform_5(%arg0: i32) -> (i32, i32) {
    %c0_i32 = arith.constant 0 : i32
    %c0_i32_0 = arith.constant 0 : i32
    %c0_i32_1 = arith.constant 0 : i32
    return %c0_i32, %c0_i32_0 : i32, i32
  }
  func.func @transform_6(%arg0: i32) -> (i32, i32) {
    %c0_i32 = arith.constant 0 : i32
    %c0_i32_0 = arith.constant 0 : i32
    %c0_i32_1 = arith.constant 0 : i32
    return %c0_i32, %c0_i32_0 : i32, i32
  }
  func.func @transform_7(%arg0: i32) -> (i32, i32) {
    %c0_i32 = arith.constant 0 : i32
    %c0_i32_0 = arith.constant 0 : i32
    %c0_i32_1 = arith.constant 0 : i32
    return %c0_i32, %c0_i32_0 : i32, i32
  }
  func.func @transform_8(%arg0: i32) -> (i32, i32) {
    %c0_i32 = arith.constant 0 : i32
    %c0_i32_0 = arith.constant 0 : i32
    %c0_i32_1 = arith.constant 0 : i32
    return %c0_i32, %c0_i32_0 : i32, i32
  }
  func.func @transform_9(%arg0: i32) -> (i32, i32) {
    %c0_i32 = arith.constant 0 : i32
    %c0_i32_0 = arith.constant 0 : i32
    return %arg0, %c0_i32 : i32, i32
  }
}

module attributes {stable_mosaic.version = 11 : i64} {
  func.func @feature_stats_kernel(%arg0: i32, %arg1: memref<256x9xf32, #tpu.memory_space<vmem>>, %arg2: memref<9x128xbf16, #tpu.memory_space<vmem>>, %arg3: memref<1x128xf32, #tpu.memory_space<vmem>>, %arg4: memref<128x128xbf16, #tpu.memory_space<vmem>>, %arg5: memref<1x128xf32, #tpu.memory_space<vmem>>, %arg6: memref<128x128xbf16, #tpu.memory_space<vmem>>, %arg7: memref<1x128xf32, #tpu.memory_space<vmem>>, %arg8: memref<1x1x128xf32, #tpu.memory_space<vmem>>, %arg9: memref<1x1x128xf32, #tpu.memory_space<vmem>>) attributes {dimension_semantics = [#tpu.dimension_semantics<parallel>], iteration_bounds = array<i64: 2>, scalar_prefetch = 0 : i64, scratch_operands = 0 : i64, tpu.core_type = #tpu.core_type<tc>, window_params = [{transform_indices = @transform_0, window_bounds = array<i64: 256, 9>}, {pipeline_mode = #tpu.pipeline_mode<synchronous>, transform_indices = @transform_1, window_bounds = array<i64: 9, 128>}, {pipeline_mode = #tpu.pipeline_mode<synchronous>, transform_indices = @transform_2, window_bounds = array<i64: 1, 128>}, {pipeline_mode = #tpu.pipeline_mode<synchronous>, transform_indices = @transform_3, window_bounds = array<i64: 128, 128>}, {pipeline_mode = #tpu.pipeline_mode<synchronous>, transform_indices = @transform_4, window_bounds = array<i64: 1, 128>}, {pipeline_mode = #tpu.pipeline_mode<synchronous>, transform_indices = @transform_5, window_bounds = array<i64: 128, 128>}, {pipeline_mode = #tpu.pipeline_mode<synchronous>, transform_indices = @transform_6, window_bounds = array<i64: 1, 128>}, {transform_indices = @transform_7, window_bounds = array<i64: 1, 1, 128>}, {transform_indices = @transform_8, window_bounds = array<i64: 1, 1, 128>}]} {
    %c0 = arith.constant 0 : index
    %c0_0 = arith.constant 0 : index
    %0 = vector.load %arg1[%c0, %c0_0] : memref<256x9xf32, #tpu.memory_space<vmem>>, vector<256x9xf32>
    %c0_1 = arith.constant 0 : index
    %c0_2 = arith.constant 0 : index
    %1 = vector.load %arg2[%c0_1, %c0_2] : memref<9x128xbf16, #tpu.memory_space<vmem>>, vector<9x128xbf16>
    %c0_3 = arith.constant 0 : index
    %c0_4 = arith.constant 0 : index
    %2 = vector.load %arg3[%c0_3, %c0_4] : memref<1x128xf32, #tpu.memory_space<vmem>>, vector<1x128xf32>
    %c0_5 = arith.constant 0 : index
    %c0_6 = arith.constant 0 : index
    %3 = vector.load %arg4[%c0_5, %c0_6] : memref<128x128xbf16, #tpu.memory_space<vmem>>, vector<128x128xbf16>
    %c0_7 = arith.constant 0 : index
    %c0_8 = arith.constant 0 : index
    %4 = vector.load %arg5[%c0_7, %c0_8] : memref<1x128xf32, #tpu.memory_space<vmem>>, vector<1x128xf32>
    %c0_9 = arith.constant 0 : index
    %c0_10 = arith.constant 0 : index
    %5 = vector.load %arg6[%c0_9, %c0_10] : memref<128x128xbf16, #tpu.memory_space<vmem>>, vector<128x128xbf16>
    %c0_11 = arith.constant 0 : index
    %c0_12 = arith.constant 0 : index
    %6 = vector.load %arg7[%c0_11, %c0_12] : memref<1x128xf32, #tpu.memory_space<vmem>>, vector<1x128xf32>
    %7 = arith.truncf %0 : vector<256x9xf32> to vector<256x9xbf16>
    %cst = arith.constant dense<0.000000e+00> : vector<256x128xf32>
    %8 = tpu.matmul %7, %1, %cst {dimension_numbers = #tpu.dot_dimension_numbers<[1], [0], [0], [1], [0, 0, 1, 1], [], []>} : vector<256x9xbf16>, vector<9x128xbf16>, vector<256x128xf32> -> vector<256x128xf32>
    %9 = vector.broadcast %2 : vector<1x128xf32> to vector<256x128xf32>
    %10 = arith.addf %8, %9 : vector<256x128xf32>
    %cst_13 = arith.constant 0.000000e+00 : f32
    %11 = vector.broadcast %cst_13 : f32 to vector<256x128xf32>
    %12 = arith.maximumf %10, %11 : vector<256x128xf32>
    %13 = arith.truncf %12 : vector<256x128xf32> to vector<256x128xbf16>
    %cst_14 = arith.constant dense<0.000000e+00> : vector<256x128xf32>
    %14 = tpu.matmul %13, %3, %cst_14 {dimension_numbers = #tpu.dot_dimension_numbers<[1], [0], [0], [1], [0, 0, 1, 1], [], []>} : vector<256x128xbf16>, vector<128x128xbf16>, vector<256x128xf32> -> vector<256x128xf32>
    %15 = vector.broadcast %4 : vector<1x128xf32> to vector<256x128xf32>
    %16 = arith.addf %14, %15 : vector<256x128xf32>
    %cst_15 = arith.constant 0.000000e+00 : f32
    %17 = vector.broadcast %cst_15 : f32 to vector<256x128xf32>
    %18 = arith.maximumf %16, %17 : vector<256x128xf32>
    %19 = arith.truncf %18 : vector<256x128xf32> to vector<256x128xbf16>
    %cst_16 = arith.constant dense<0.000000e+00> : vector<256x128xf32>
    %20 = tpu.matmul %19, %5, %cst_16 {dimension_numbers = #tpu.dot_dimension_numbers<[1], [0], [0], [1], [0, 0, 1, 1], [], []>} : vector<256x128xbf16>, vector<128x128xbf16>, vector<256x128xf32> -> vector<256x128xf32>
    %21 = vector.broadcast %6 : vector<1x128xf32> to vector<256x128xf32>
    %22 = arith.addf %20, %21 : vector<256x128xf32>
    %c1_i32 = arith.constant 1 : i32
    %23 = arith.cmpi slt, %arg0, %c1_i32 : i32
    %24 = arith.extui %23 : i1 to i32
    %c0_i32 = arith.constant 0 : i32
    %25 = arith.cmpi ne, %24, %c0_i32 : i32
    scf.if %25 {
      %cst_19 = arith.constant 1.000000e+00 : f32
      %29 = vector.broadcast %cst_19 : f32 to vector<1x256xf32>
      %cst_20 = arith.constant dense<0.000000e+00> : vector<1x128xf32>
      %30 = tpu.matmul %29, %22, %cst_20 {dimension_numbers = #tpu.dot_dimension_numbers<[1], [0], [0], [1], [0, 0, 1, 1], [], []>} : vector<1x256xf32>, vector<256x128xf32>, vector<1x128xf32> -> vector<1x128xf32>
      %c0_21 = arith.constant 0 : index
      %c0_22 = arith.constant 0 : index
      %c0_23 = arith.constant 0 : index
      %31 = vector.load %arg8[%c0_21, %c0_22, %c0_23] : memref<1x1x128xf32, #tpu.memory_space<vmem>>, vector<1x1x128xf32>
      %32 = vector.shape_cast %31 : vector<1x1x128xf32> to vector<1x128xf32>
      %33 = vector.shape_cast %30 : vector<1x128xf32> to vector<1x1x128xf32>
      tpu.vector_store %arg8[%c0_21, %c0_22, %c0_23], %33 {strides = array<i32>} : memref<1x1x128xf32, #tpu.memory_space<vmem>>, vector<1x1x128xf32>,
      %34 = arith.mulf %22, %22 : vector<256x128xf32>
      %cst_24 = arith.constant dense<0.000000e+00> : vector<1x128xf32>
      %35 = tpu.matmul %29, %34, %cst_24 {dimension_numbers = #tpu.dot_dimension_numbers<[1], [0], [0], [1], [0, 0, 1, 1], [], []>} : vector<1x256xf32>, vector<256x128xf32>, vector<1x128xf32> -> vector<1x128xf32>
      %c0_25 = arith.constant 0 : index
      %c0_26 = arith.constant 0 : index
      %c0_27 = arith.constant 0 : index
      %36 = vector.load %arg9[%c0_25, %c0_26, %c0_27] : memref<1x1x128xf32, #tpu.memory_space<vmem>>, vector<1x1x128xf32>
      %37 = vector.shape_cast %36 : vector<1x1x128xf32> to vector<1x128xf32>
      %38 = vector.shape_cast %35 : vector<1x128xf32> to vector<1x1x128xf32>
      tpu.vector_store %arg9[%c0_25, %c0_26, %c0_27], %38 {strides = array<i32>} : memref<1x1x128xf32, #tpu.memory_space<vmem>>, vector<1x1x128xf32>,
    } else {
    }
    %c1_i32_17 = arith.constant 1 : i32
    %26 = arith.cmpi eq, %arg0, %c1_i32_17 : i32
    %27 = arith.extui %26 : i1 to i32
    %c0_i32_18 = arith.constant 0 : i32
    %28 = arith.cmpi ne, %27, %c0_i32_18 : i32
    scf.if %28 {
      %29 = tpu.iota {dimensions = array<i32: 1>} : vector<1x256xi32>
      %c256_i32 = arith.constant 256 : i32
      %30 = arith.muli %arg0, %c256_i32 : i32
      %31 = vector.broadcast %30 : i32 to vector<1x256xi32>
      %32 = arith.addi %31, %29 : vector<1x256xi32>
      %c512_i32 = arith.constant 512 : i32
      %33 = vector.broadcast %c512_i32 : i32 to vector<1x256xi32>
      %34 = arith.cmpi slt, %32, %33 : vector<1x256xi32>
      %35 = arith.extui %34 : vector<1x256xi1> to vector<1x256xi32>
      %36 = arith.sitofp %35 : vector<1x256xi32> to vector<1x256xf32>
      %cst_19 = arith.constant dense<0.000000e+00> : vector<1x128xf32>
      %37 = tpu.matmul %36, %22, %cst_19 {dimension_numbers = #tpu.dot_dimension_numbers<[1], [0], [0], [1], [0, 0, 1, 1], [], []>} : vector<1x256xf32>, vector<256x128xf32>, vector<1x128xf32> -> vector<1x128xf32>
      %c0_20 = arith.constant 0 : index
      %c0_21 = arith.constant 0 : index
      %c0_22 = arith.constant 0 : index
      %38 = vector.load %arg8[%c0_20, %c0_21, %c0_22] : memref<1x1x128xf32, #tpu.memory_space<vmem>>, vector<1x1x128xf32>
      %39 = vector.shape_cast %38 : vector<1x1x128xf32> to vector<1x128xf32>
      %40 = vector.shape_cast %37 : vector<1x128xf32> to vector<1x1x128xf32>
      tpu.vector_store %arg8[%c0_20, %c0_21, %c0_22], %40 {strides = array<i32>} : memref<1x1x128xf32, #tpu.memory_space<vmem>>, vector<1x1x128xf32>,
      %41 = arith.mulf %22, %22 : vector<256x128xf32>
      %cst_23 = arith.constant dense<0.000000e+00> : vector<1x128xf32>
      %42 = tpu.matmul %36, %41, %cst_23 {dimension_numbers = #tpu.dot_dimension_numbers<[1], [0], [0], [1], [0, 0, 1, 1], [], []>} : vector<1x256xf32>, vector<256x128xf32>, vector<1x128xf32> -> vector<1x128xf32>
      %c0_24 = arith.constant 0 : index
      %c0_25 = arith.constant 0 : index
      %c0_26 = arith.constant 0 : index
      %43 = vector.load %arg9[%c0_24, %c0_25, %c0_26] : memref<1x1x128xf32, #tpu.memory_space<vmem>>, vector<1x1x128xf32>
      %44 = vector.shape_cast %43 : vector<1x1x128xf32> to vector<1x128xf32>
      %45 = vector.shape_cast %42 : vector<1x128xf32> to vector<1x1x128xf32>
      tpu.vector_store %arg9[%c0_24, %c0_25, %c0_26], %45 {strides = array<i32>} : memref<1x1x128xf32, #tpu.memory_space<vmem>>, vector<1x1x128xf32>,
    } else {
    }
    return
  }
  func.func @transform_0(%arg0: i32) -> (i32, i32) {
    %c0_i32 = arith.constant 0 : i32
    %c0_i32_0 = arith.constant 0 : i32
    return %arg0, %c0_i32 : i32, i32
  }
  func.func @transform_1(%arg0: i32) -> (i32, i32) {
    %c0_i32 = arith.constant 0 : i32
    %c0_i32_0 = arith.constant 0 : i32
    %c0_i32_1 = arith.constant 0 : i32
    return %c0_i32, %c0_i32_0 : i32, i32
  }
  func.func @transform_2(%arg0: i32) -> (i32, i32) {
    %c0_i32 = arith.constant 0 : i32
    %c0_i32_0 = arith.constant 0 : i32
    %c0_i32_1 = arith.constant 0 : i32
    return %c0_i32, %c0_i32_0 : i32, i32
  }
  func.func @transform_3(%arg0: i32) -> (i32, i32) {
    %c0_i32 = arith.constant 0 : i32
    %c0_i32_0 = arith.constant 0 : i32
    %c0_i32_1 = arith.constant 0 : i32
    return %c0_i32, %c0_i32_0 : i32, i32
  }
  func.func @transform_4(%arg0: i32) -> (i32, i32) {
    %c0_i32 = arith.constant 0 : i32
    %c0_i32_0 = arith.constant 0 : i32
    %c0_i32_1 = arith.constant 0 : i32
    return %c0_i32, %c0_i32_0 : i32, i32
  }
  func.func @transform_5(%arg0: i32) -> (i32, i32) {
    %c0_i32 = arith.constant 0 : i32
    %c0_i32_0 = arith.constant 0 : i32
    %c0_i32_1 = arith.constant 0 : i32
    return %c0_i32, %c0_i32_0 : i32, i32
  }
  func.func @transform_6(%arg0: i32) -> (i32, i32) {
    %c0_i32 = arith.constant 0 : i32
    %c0_i32_0 = arith.constant 0 : i32
    %c0_i32_1 = arith.constant 0 : i32
    return %c0_i32, %c0_i32_0 : i32, i32
  }
  func.func @transform_7(%arg0: i32) -> (i32, i32, i32) {
    %c0_i32 = arith.constant 0 : i32
    %c0_i32_0 = arith.constant 0 : i32
    %c0_i32_1 = arith.constant 0 : i32
    return %arg0, %c0_i32, %c0_i32_0 : i32, i32, i32
  }
  func.func @transform_8(%arg0: i32) -> (i32, i32, i32) {
    %c0_i32 = arith.constant 0 : i32
    %c0_i32_0 = arith.constant 0 : i32
    %c0_i32_1 = arith.constant 0 : i32
    return %arg0, %c0_i32, %c0_i32_0 : i32, i32, i32
  }
}

module attributes {stable_mosaic.version = 11 : i64} {
  func.func @feature_apply_kernel(%arg0: i32, %arg1: memref<128x9xf32, #tpu.memory_space<vmem>>, %arg2: memref<9x128xbf16, #tpu.memory_space<vmem>>, %arg3: memref<1x128xf32, #tpu.memory_space<vmem>>, %arg4: memref<128x128xbf16, #tpu.memory_space<vmem>>, %arg5: memref<1x128xf32, #tpu.memory_space<vmem>>, %arg6: memref<128x128xbf16, #tpu.memory_space<vmem>>, %arg7: memref<1x128xf32, #tpu.memory_space<vmem>>, %arg8: memref<1x128xf32, #tpu.memory_space<vmem>>, %arg9: memref<1x128xf32, #tpu.memory_space<vmem>>, %arg10: memref<128x128xf32, #tpu.memory_space<vmem>>) attributes {dimension_semantics = [#tpu.dimension_semantics<parallel>], iteration_bounds = array<i64: 2>, scalar_prefetch = 0 : i64, scratch_operands = 0 : i64, tpu.core_type = #tpu.core_type<tc>, window_params = [{transform_indices = @transform_0, window_bounds = array<i64: 128, 9>}, {pipeline_mode = #tpu.pipeline_mode<synchronous>, transform_indices = @transform_1, window_bounds = array<i64: 9, 128>}, {pipeline_mode = #tpu.pipeline_mode<synchronous>, transform_indices = @transform_2, window_bounds = array<i64: 1, 128>}, {pipeline_mode = #tpu.pipeline_mode<synchronous>, transform_indices = @transform_3, window_bounds = array<i64: 128, 128>}, {pipeline_mode = #tpu.pipeline_mode<synchronous>, transform_indices = @transform_4, window_bounds = array<i64: 1, 128>}, {pipeline_mode = #tpu.pipeline_mode<synchronous>, transform_indices = @transform_5, window_bounds = array<i64: 128, 128>}, {pipeline_mode = #tpu.pipeline_mode<synchronous>, transform_indices = @transform_6, window_bounds = array<i64: 1, 128>}, {pipeline_mode = #tpu.pipeline_mode<synchronous>, transform_indices = @transform_7, window_bounds = array<i64: 1, 128>}, {pipeline_mode = #tpu.pipeline_mode<synchronous>, transform_indices = @transform_8, window_bounds = array<i64: 1, 128>}, {transform_indices = @transform_9, window_bounds = array<i64: 128, 128>}]} {
    %c0 = arith.constant 0 : index
    %c0_0 = arith.constant 0 : index
    %0 = vector.load %arg1[%c0, %c0_0] : memref<128x9xf32, #tpu.memory_space<vmem>>, vector<128x9xf32>
    %c0_1 = arith.constant 0 : index
    %c0_2 = arith.constant 0 : index
    %1 = vector.load %arg2[%c0_1, %c0_2] : memref<9x128xbf16, #tpu.memory_space<vmem>>, vector<9x128xbf16>
    %c0_3 = arith.constant 0 : index
    %c0_4 = arith.constant 0 : index
    %2 = vector.load %arg3[%c0_3, %c0_4] : memref<1x128xf32, #tpu.memory_space<vmem>>, vector<1x128xf32>
    %c0_5 = arith.constant 0 : index
    %c0_6 = arith.constant 0 : index
    %3 = vector.load %arg4[%c0_5, %c0_6] : memref<128x128xbf16, #tpu.memory_space<vmem>>, vector<128x128xbf16>
    %c0_7 = arith.constant 0 : index
    %c0_8 = arith.constant 0 : index
    %4 = vector.load %arg5[%c0_7, %c0_8] : memref<1x128xf32, #tpu.memory_space<vmem>>, vector<1x128xf32>
    %c0_9 = arith.constant 0 : index
    %c0_10 = arith.constant 0 : index
    %5 = vector.load %arg6[%c0_9, %c0_10] : memref<128x128xbf16, #tpu.memory_space<vmem>>, vector<128x128xbf16>
    %c0_11 = arith.constant 0 : index
    %c0_12 = arith.constant 0 : index
    %6 = vector.load %arg7[%c0_11, %c0_12] : memref<1x128xf32, #tpu.memory_space<vmem>>, vector<1x128xf32>
    %7 = arith.truncf %0 : vector<128x9xf32> to vector<128x9xbf16>
    %cst = arith.constant dense<0.000000e+00> : vector<128x128xf32>
    %8 = tpu.matmul %7, %1, %cst {dimension_numbers = #tpu.dot_dimension_numbers<[1], [0], [0], [1], [0, 0, 1, 1], [], []>} : vector<128x9xbf16>, vector<9x128xbf16>, vector<128x128xf32> -> vector<128x128xf32>
    %9 = vector.broadcast %2 : vector<1x128xf32> to vector<128x128xf32>
    %10 = arith.addf %8, %9 : vector<128x128xf32>
    %cst_13 = arith.constant 0.000000e+00 : f32
    %11 = vector.broadcast %cst_13 : f32 to vector<128x128xf32>
    %12 = arith.maximumf %10, %11 : vector<128x128xf32>
    %13 = arith.truncf %12 : vector<128x128xf32> to vector<128x128xbf16>
    %cst_14 = arith.constant dense<0.000000e+00> : vector<128x128xf32>
    %14 = tpu.matmul %13, %3, %cst_14 {dimension_numbers = #tpu.dot_dimension_numbers<[1], [0], [0], [1], [0, 0, 1, 1], [], []>} : vector<128x128xbf16>, vector<128x128xbf16>, vector<128x128xf32> -> vector<128x128xf32>
    %15 = vector.broadcast %4 : vector<1x128xf32> to vector<128x128xf32>
    %16 = arith.addf %14, %15 : vector<128x128xf32>
    %cst_15 = arith.constant 0.000000e+00 : f32
    %17 = vector.broadcast %cst_15 : f32 to vector<128x128xf32>
    %18 = arith.maximumf %16, %17 : vector<128x128xf32>
    %19 = arith.truncf %18 : vector<128x128xf32> to vector<128x128xbf16>
    %cst_16 = arith.constant dense<0.000000e+00> : vector<128x128xf32>
    %20 = tpu.matmul %19, %5, %cst_16 {dimension_numbers = #tpu.dot_dimension_numbers<[1], [0], [0], [1], [0, 0, 1, 1], [], []>} : vector<128x128xbf16>, vector<128x128xbf16>, vector<128x128xf32> -> vector<128x128xf32>
    %21 = vector.broadcast %6 : vector<1x128xf32> to vector<128x128xf32>
    %22 = arith.addf %20, %21 : vector<128x128xf32>
    %c0_17 = arith.constant 0 : index
    %c0_18 = arith.constant 0 : index
    %23 = vector.load %arg8[%c0_17, %c0_18] : memref<1x128xf32, #tpu.memory_space<vmem>>, vector<1x128xf32>
    %24 = vector.broadcast %23 : vector<1x128xf32> to vector<128x128xf32>
    %25 = arith.mulf %22, %24 : vector<128x128xf32>
    %c0_19 = arith.constant 0 : index
    %c0_20 = arith.constant 0 : index
    %26 = vector.load %arg9[%c0_19, %c0_20] : memref<1x128xf32, #tpu.memory_space<vmem>>, vector<1x128xf32>
    %27 = vector.broadcast %26 : vector<1x128xf32> to vector<128x128xf32>
    %28 = arith.addf %25, %27 : vector<128x128xf32>
    %cst_21 = arith.constant 0.000000e+00 : f32
    %29 = vector.broadcast %cst_21 : f32 to vector<128x128xf32>
    %30 = arith.maximumf %28, %29 : vector<128x128xf32>
    %c0_22 = arith.constant 0 : index
    %c0_23 = arith.constant 0 : index
    %31 = vector.load %arg10[%c0_22, %c0_23] : memref<128x128xf32, #tpu.memory_space<vmem>>, vector<128x128xf32>
    tpu.vector_store %arg10[%c0_22, %c0_23], %30 {strides = array<i32>} : memref<128x128xf32, #tpu.memory_space<vmem>>, vector<128x128xf32>,
    return
  }
  func.func @transform_0(%arg0: i32) -> (i32, i32) {
    %c0_i32 = arith.constant 0 : i32
    %c0_i32_0 = arith.constant 0 : i32
    return %arg0, %c0_i32 : i32, i32
  }
  func.func @transform_1(%arg0: i32) -> (i32, i32) {
    %c0_i32 = arith.constant 0 : i32
    %c0_i32_0 = arith.constant 0 : i32
    %c0_i32_1 = arith.constant 0 : i32
    return %c0_i32, %c0_i32_0 : i32, i32
  }
  func.func @transform_2(%arg0: i32) -> (i32, i32) {
    %c0_i32 = arith.constant 0 : i32
    %c0_i32_0 = arith.constant 0 : i32
    %c0_i32_1 = arith.constant 0 : i32
    return %c0_i32, %c0_i32_0 : i32, i32
  }
  func.func @transform_3(%arg0: i32) -> (i32, i32) {
    %c0_i32 = arith.constant 0 : i32
    %c0_i32_0 = arith.constant 0 : i32
    %c0_i32_1 = arith.constant 0 : i32
    return %c0_i32, %c0_i32_0 : i32, i32
  }
  func.func @transform_4(%arg0: i32) -> (i32, i32) {
    %c0_i32 = arith.constant 0 : i32
    %c0_i32_0 = arith.constant 0 : i32
    %c0_i32_1 = arith.constant 0 : i32
    return %c0_i32, %c0_i32_0 : i32, i32
  }
  func.func @transform_5(%arg0: i32) -> (i32, i32) {
    %c0_i32 = arith.constant 0 : i32
    %c0_i32_0 = arith.constant 0 : i32
    %c0_i32_1 = arith.constant 0 : i32
    return %c0_i32, %c0_i32_0 : i32, i32
  }
  func.func @transform_6(%arg0: i32) -> (i32, i32) {
    %c0_i32 = arith.constant 0 : i32
    %c0_i32_0 = arith.constant 0 : i32
    %c0_i32_1 = arith.constant 0 : i32
    return %c0_i32, %c0_i32_0 : i32, i32
  }
  func.func @transform_7(%arg0: i32) -> (i32, i32) {
    %c0_i32 = arith.constant 0 : i32
    %c0_i32_0 = arith.constant 0 : i32
    %c0_i32_1 = arith.constant 0 : i32
    return %c0_i32, %c0_i32_0 : i32, i32
  }
  func.func @transform_8(%arg0: i32) -> (i32, i32) {
    %c0_i32 = arith.constant 0 : i32
    %c0_i32_0 = arith.constant 0 : i32
    %c0_i32_1 = arith.constant 0 : i32
    return %c0_i32, %c0_i32_0 : i32, i32
  }
  func.func @transform_9(%arg0: i32) -> (i32, i32) {
    %c0_i32 = arith.constant 0 : i32
    %c0_i32_0 = arith.constant 0 : i32
    return %arg0, %c0_i32 : i32, i32
  }
}

module attributes {stable_mosaic.version = 11 : i64} {
  func.func @feature_stats_kernel(%arg0: i32, %arg1: memref<128x9xf32, #tpu.memory_space<vmem>>, %arg2: memref<9x128xbf16, #tpu.memory_space<vmem>>, %arg3: memref<1x128xf32, #tpu.memory_space<vmem>>, %arg4: memref<128x128xbf16, #tpu.memory_space<vmem>>, %arg5: memref<1x128xf32, #tpu.memory_space<vmem>>, %arg6: memref<128x128xbf16, #tpu.memory_space<vmem>>, %arg7: memref<1x128xf32, #tpu.memory_space<vmem>>, %arg8: memref<1x1x128xf32, #tpu.memory_space<vmem>>, %arg9: memref<1x1x128xf32, #tpu.memory_space<vmem>>) attributes {dimension_semantics = [#tpu.dimension_semantics<parallel>], iteration_bounds = array<i64: 2>, scalar_prefetch = 0 : i64, scratch_operands = 0 : i64, tpu.core_type = #tpu.core_type<tc>, window_params = [{transform_indices = @transform_0, window_bounds = array<i64: 128, 9>}, {pipeline_mode = #tpu.pipeline_mode<synchronous>, transform_indices = @transform_1, window_bounds = array<i64: 9, 128>}, {pipeline_mode = #tpu.pipeline_mode<synchronous>, transform_indices = @transform_2, window_bounds = array<i64: 1, 128>}, {pipeline_mode = #tpu.pipeline_mode<synchronous>, transform_indices = @transform_3, window_bounds = array<i64: 128, 128>}, {pipeline_mode = #tpu.pipeline_mode<synchronous>, transform_indices = @transform_4, window_bounds = array<i64: 1, 128>}, {pipeline_mode = #tpu.pipeline_mode<synchronous>, transform_indices = @transform_5, window_bounds = array<i64: 128, 128>}, {pipeline_mode = #tpu.pipeline_mode<synchronous>, transform_indices = @transform_6, window_bounds = array<i64: 1, 128>}, {transform_indices = @transform_7, window_bounds = array<i64: 1, 1, 128>}, {transform_indices = @transform_8, window_bounds = array<i64: 1, 1, 128>}]} {
    %c0 = arith.constant 0 : index
    %c0_0 = arith.constant 0 : index
    %0 = vector.load %arg1[%c0, %c0_0] : memref<128x9xf32, #tpu.memory_space<vmem>>, vector<128x9xf32>
    %c0_1 = arith.constant 0 : index
    %c0_2 = arith.constant 0 : index
    %1 = vector.load %arg2[%c0_1, %c0_2] : memref<9x128xbf16, #tpu.memory_space<vmem>>, vector<9x128xbf16>
    %c0_3 = arith.constant 0 : index
    %c0_4 = arith.constant 0 : index
    %2 = vector.load %arg3[%c0_3, %c0_4] : memref<1x128xf32, #tpu.memory_space<vmem>>, vector<1x128xf32>
    %c0_5 = arith.constant 0 : index
    %c0_6 = arith.constant 0 : index
    %3 = vector.load %arg4[%c0_5, %c0_6] : memref<128x128xbf16, #tpu.memory_space<vmem>>, vector<128x128xbf16>
    %c0_7 = arith.constant 0 : index
    %c0_8 = arith.constant 0 : index
    %4 = vector.load %arg5[%c0_7, %c0_8] : memref<1x128xf32, #tpu.memory_space<vmem>>, vector<1x128xf32>
    %c0_9 = arith.constant 0 : index
    %c0_10 = arith.constant 0 : index
    %5 = vector.load %arg6[%c0_9, %c0_10] : memref<128x128xbf16, #tpu.memory_space<vmem>>, vector<128x128xbf16>
    %c0_11 = arith.constant 0 : index
    %c0_12 = arith.constant 0 : index
    %6 = vector.load %arg7[%c0_11, %c0_12] : memref<1x128xf32, #tpu.memory_space<vmem>>, vector<1x128xf32>
    %7 = arith.truncf %0 : vector<128x9xf32> to vector<128x9xbf16>
    %cst = arith.constant dense<0.000000e+00> : vector<128x128xf32>
    %8 = tpu.matmul %7, %1, %cst {dimension_numbers = #tpu.dot_dimension_numbers<[1], [0], [0], [1], [0, 0, 1, 1], [], []>} : vector<128x9xbf16>, vector<9x128xbf16>, vector<128x128xf32> -> vector<128x128xf32>
    %9 = vector.broadcast %2 : vector<1x128xf32> to vector<128x128xf32>
    %10 = arith.addf %8, %9 : vector<128x128xf32>
    %cst_13 = arith.constant 0.000000e+00 : f32
    %11 = vector.broadcast %cst_13 : f32 to vector<128x128xf32>
    %12 = arith.maximumf %10, %11 : vector<128x128xf32>
    %13 = arith.truncf %12 : vector<128x128xf32> to vector<128x128xbf16>
    %cst_14 = arith.constant dense<0.000000e+00> : vector<128x128xf32>
    %14 = tpu.matmul %13, %3, %cst_14 {dimension_numbers = #tpu.dot_dimension_numbers<[1], [0], [0], [1], [0, 0, 1, 1], [], []>} : vector<128x128xbf16>, vector<128x128xbf16>, vector<128x128xf32> -> vector<128x128xf32>
    %15 = vector.broadcast %4 : vector<1x128xf32> to vector<128x128xf32>
    %16 = arith.addf %14, %15 : vector<128x128xf32>
    %cst_15 = arith.constant 0.000000e+00 : f32
    %17 = vector.broadcast %cst_15 : f32 to vector<128x128xf32>
    %18 = arith.maximumf %16, %17 : vector<128x128xf32>
    %19 = arith.truncf %18 : vector<128x128xf32> to vector<128x128xbf16>
    %cst_16 = arith.constant dense<0.000000e+00> : vector<128x128xf32>
    %20 = tpu.matmul %19, %5, %cst_16 {dimension_numbers = #tpu.dot_dimension_numbers<[1], [0], [0], [1], [0, 0, 1, 1], [], []>} : vector<128x128xbf16>, vector<128x128xbf16>, vector<128x128xf32> -> vector<128x128xf32>
    %21 = vector.broadcast %6 : vector<1x128xf32> to vector<128x128xf32>
    %22 = arith.addf %20, %21 : vector<128x128xf32>
    %c1_i32 = arith.constant 1 : i32
    %23 = arith.cmpi slt, %arg0, %c1_i32 : i32
    %24 = arith.extui %23 : i1 to i32
    %c0_i32 = arith.constant 0 : i32
    %25 = arith.cmpi ne, %24, %c0_i32 : i32
    scf.if %25 {
      %cst_19 = arith.constant 1.000000e+00 : f32
      %29 = vector.broadcast %cst_19 : f32 to vector<1x128xf32>
      %cst_20 = arith.constant dense<0.000000e+00> : vector<1x128xf32>
      %30 = tpu.matmul %29, %22, %cst_20 {dimension_numbers = #tpu.dot_dimension_numbers<[1], [0], [0], [1], [0, 0, 1, 1], [], []>} : vector<1x128xf32>, vector<128x128xf32>, vector<1x128xf32> -> vector<1x128xf32>
      %c0_21 = arith.constant 0 : index
      %c0_22 = arith.constant 0 : index
      %c0_23 = arith.constant 0 : index
      %31 = vector.load %arg8[%c0_21, %c0_22, %c0_23] : memref<1x1x128xf32, #tpu.memory_space<vmem>>, vector<1x1x128xf32>
      %32 = vector.shape_cast %31 : vector<1x1x128xf32> to vector<1x128xf32>
      %33 = vector.shape_cast %30 : vector<1x128xf32> to vector<1x1x128xf32>
      tpu.vector_store %arg8[%c0_21, %c0_22, %c0_23], %33 {strides = array<i32>} : memref<1x1x128xf32, #tpu.memory_space<vmem>>, vector<1x1x128xf32>,
      %34 = arith.mulf %22, %22 : vector<128x128xf32>
      %cst_24 = arith.constant dense<0.000000e+00> : vector<1x128xf32>
      %35 = tpu.matmul %29, %34, %cst_24 {dimension_numbers = #tpu.dot_dimension_numbers<[1], [0], [0], [1], [0, 0, 1, 1], [], []>} : vector<1x128xf32>, vector<128x128xf32>, vector<1x128xf32> -> vector<1x128xf32>
      %c0_25 = arith.constant 0 : index
      %c0_26 = arith.constant 0 : index
      %c0_27 = arith.constant 0 : index
      %36 = vector.load %arg9[%c0_25, %c0_26, %c0_27] : memref<1x1x128xf32, #tpu.memory_space<vmem>>, vector<1x1x128xf32>
      %37 = vector.shape_cast %36 : vector<1x1x128xf32> to vector<1x128xf32>
      %38 = vector.shape_cast %35 : vector<1x128xf32> to vector<1x1x128xf32>
      tpu.vector_store %arg9[%c0_25, %c0_26, %c0_27], %38 {strides = array<i32>} : memref<1x1x128xf32, #tpu.memory_space<vmem>>, vector<1x1x128xf32>,
    } else {
    }
    %c1_i32_17 = arith.constant 1 : i32
    %26 = arith.cmpi eq, %arg0, %c1_i32_17 : i32
    %27 = arith.extui %26 : i1 to i32
    %c0_i32_18 = arith.constant 0 : i32
    %28 = arith.cmpi ne, %27, %c0_i32_18 : i32
    scf.if %28 {
      %29 = tpu.iota {dimensions = array<i32: 1>} : vector<1x128xi32>
      %c128_i32 = arith.constant 128 : i32
      %30 = arith.muli %arg0, %c128_i32 : i32
      %31 = vector.broadcast %30 : i32 to vector<1x128xi32>
      %32 = arith.addi %31, %29 : vector<1x128xi32>
      %c256_i32 = arith.constant 256 : i32
      %33 = vector.broadcast %c256_i32 : i32 to vector<1x128xi32>
      %34 = arith.cmpi slt, %32, %33 : vector<1x128xi32>
      %35 = arith.extui %34 : vector<1x128xi1> to vector<1x128xi32>
      %36 = arith.sitofp %35 : vector<1x128xi32> to vector<1x128xf32>
      %cst_19 = arith.constant dense<0.000000e+00> : vector<1x128xf32>
      %37 = tpu.matmul %36, %22, %cst_19 {dimension_numbers = #tpu.dot_dimension_numbers<[1], [0], [0], [1], [0, 0, 1, 1], [], []>} : vector<1x128xf32>, vector<128x128xf32>, vector<1x128xf32> -> vector<1x128xf32>
      %c0_20 = arith.constant 0 : index
      %c0_21 = arith.constant 0 : index
      %c0_22 = arith.constant 0 : index
      %38 = vector.load %arg8[%c0_20, %c0_21, %c0_22] : memref<1x1x128xf32, #tpu.memory_space<vmem>>, vector<1x1x128xf32>
      %39 = vector.shape_cast %38 : vector<1x1x128xf32> to vector<1x128xf32>
      %40 = vector.shape_cast %37 : vector<1x128xf32> to vector<1x1x128xf32>
      tpu.vector_store %arg8[%c0_20, %c0_21, %c0_22], %40 {strides = array<i32>} : memref<1x1x128xf32, #tpu.memory_space<vmem>>, vector<1x1x128xf32>,
      %41 = arith.mulf %22, %22 : vector<128x128xf32>
      %cst_23 = arith.constant dense<0.000000e+00> : vector<1x128xf32>
      %42 = tpu.matmul %36, %41, %cst_23 {dimension_numbers = #tpu.dot_dimension_numbers<[1], [0], [0], [1], [0, 0, 1, 1], [], []>} : vector<1x128xf32>, vector<128x128xf32>, vector<1x128xf32> -> vector<1x128xf32>
      %c0_24 = arith.constant 0 : index
      %c0_25 = arith.constant 0 : index
      %c0_26 = arith.constant 0 : index
      %43 = vector.load %arg9[%c0_24, %c0_25, %c0_26] : memref<1x1x128xf32, #tpu.memory_space<vmem>>, vector<1x1x128xf32>
      %44 = vector.shape_cast %43 : vector<1x1x128xf32> to vector<1x128xf32>
      %45 = vector.shape_cast %42 : vector<1x128xf32> to vector<1x1x128xf32>
      tpu.vector_store %arg9[%c0_24, %c0_25, %c0_26], %45 {strides = array<i32>} : memref<1x1x128xf32, #tpu.memory_space<vmem>>, vector<1x1x128xf32>,
    } else {
    }
    return
  }
  func.func @transform_0(%arg0: i32) -> (i32, i32) {
    %c0_i32 = arith.constant 0 : i32
    %c0_i32_0 = arith.constant 0 : i32
    return %arg0, %c0_i32 : i32, i32
  }
  func.func @transform_1(%arg0: i32) -> (i32, i32) {
    %c0_i32 = arith.constant 0 : i32
    %c0_i32_0 = arith.constant 0 : i32
    %c0_i32_1 = arith.constant 0 : i32
    return %c0_i32, %c0_i32_0 : i32, i32
  }
  func.func @transform_2(%arg0: i32) -> (i32, i32) {
    %c0_i32 = arith.constant 0 : i32
    %c0_i32_0 = arith.constant 0 : i32
    %c0_i32_1 = arith.constant 0 : i32
    return %c0_i32, %c0_i32_0 : i32, i32
  }
  func.func @transform_3(%arg0: i32) -> (i32, i32) {
    %c0_i32 = arith.constant 0 : i32
    %c0_i32_0 = arith.constant 0 : i32
    %c0_i32_1 = arith.constant 0 : i32
    return %c0_i32, %c0_i32_0 : i32, i32
  }
  func.func @transform_4(%arg0: i32) -> (i32, i32) {
    %c0_i32 = arith.constant 0 : i32
    %c0_i32_0 = arith.constant 0 : i32
    %c0_i32_1 = arith.constant 0 : i32
    return %c0_i32, %c0_i32_0 : i32, i32
  }
  func.func @transform_5(%arg0: i32) -> (i32, i32) {
    %c0_i32 = arith.constant 0 : i32
    %c0_i32_0 = arith.constant 0 : i32
    %c0_i32_1 = arith.constant 0 : i32
    return %c0_i32, %c0_i32_0 : i32, i32
  }
  func.func @transform_6(%arg0: i32) -> (i32, i32) {
    %c0_i32 = arith.constant 0 : i32
    %c0_i32_0 = arith.constant 0 : i32
    %c0_i32_1 = arith.constant 0 : i32
    return %c0_i32, %c0_i32_0 : i32, i32
  }
  func.func @transform_7(%arg0: i32) -> (i32, i32, i32) {
    %c0_i32 = arith.constant 0 : i32
    %c0_i32_0 = arith.constant 0 : i32
    %c0_i32_1 = arith.constant 0 : i32
    return %arg0, %c0_i32, %c0_i32_0 : i32, i32, i32
  }
  func.func @transform_8(%arg0: i32) -> (i32, i32, i32) {
    %c0_i32 = arith.constant 0 : i32
    %c0_i32_0 = arith.constant 0 : i32
    %c0_i32_1 = arith.constant 0 : i32
    return %arg0, %c0_i32, %c0_i32_0 : i32, i32, i32
  }
}

module attributes {stable_mosaic.version = 11 : i64} {
  func.func @similarity_kernel(%arg0: i32, %arg1: memref<2x128x128xf32, #tpu.memory_space<vmem>>, %arg2: memref<3x128xf32, #tpu.memory_space<vmem>>, %arg3: memref<2x3x128xf32, #tpu.memory_space<vmem>>) attributes {dimension_semantics = [#tpu.dimension_semantics<parallel>], iteration_bounds = array<i64: 1>, scalar_prefetch = 0 : i64, scratch_operands = 0 : i64, tpu.core_type = #tpu.core_type<tc>, window_params = [{transform_indices = @transform_0, window_bounds = array<i64: 2, 128, 128>}, {pipeline_mode = #tpu.pipeline_mode<synchronous>, transform_indices = @transform_1, window_bounds = array<i64: 3, 128>}, {transform_indices = @transform_2, window_bounds = array<i64: 2, 3, 128>}]} {
    %c0 = arith.constant 0 : index
    %c0_0 = arith.constant 0 : index
    %c0_1 = arith.constant 0 : index
    %0 = vector.load %arg1[%c0, %c0_0, %c0_1] : memref<2x128x128xf32, #tpu.memory_space<vmem>>, vector<2x128x128xf32>
    %1 = arith.mulf %0, %0 : vector<2x128x128xf32>
    %cst = arith.constant dense<0.000000e+00> : vector<2x128xf32>
    %2 = vector.multi_reduction <add>, %1, %cst [2] : vector<2x128x128xf32> to vector<2x128xf32>
    %cst_2 = arith.constant 1.000000e-16 : f32
    %3 = vector.broadcast %cst_2 : f32 to vector<2x128xf32>
    %4 = arith.maximumf %2, %3 : vector<2x128xf32>
    %5 = math.rsqrt %4 : vector<2x128xf32>
    %c0_3 = arith.constant 0 : index
    %c0_4 = arith.constant 0 : index
    %6 = vector.load %arg2[%c0_3, %c0_4] : memref<3x128xf32, #tpu.memory_space<vmem>>, vector<3x128xf32>
    %7 = vector.shape_cast %6 : vector<3x128xf32> to vector<1x3x128xf32>
    %8 = vector.broadcast %7 : vector<1x3x128xf32> to vector<2x3x128xf32>
    "tpu.trace_start"() <{level = 10 : i32, message = "qcd,qnd->qcn"}> : () -> ()
    %cst_5 = arith.constant dense<0.000000e+00> : vector<2x3x128xf32>
    %9 = tpu.matmul %8, %0, %cst_5 {dimension_numbers = #tpu.dot_dimension_numbers<[2], [2], [1], [1], [0, 0, 0, 1, 1, 1], [0], [0]>} : vector<2x3x128xf32>, vector<2x128x128xf32>, vector<2x3x128xf32> -> vector<2x3x128xf32>
    "tpu.trace_stop"() : () -> ()
    %10 = vector.shape_cast %5 : vector<2x128xf32> to vector<2x1x128xf32>
    %11 = vector.broadcast %10 : vector<2x1x128xf32> to vector<2x3x128xf32>
    %12 = arith.mulf %9, %11 : vector<2x3x128xf32>
    %c0_6 = arith.constant 0 : index
    %c0_7 = arith.constant 0 : index
    %c0_8 = arith.constant 0 : index
    %13 = vector.load %arg3[%c0_6, %c0_7, %c0_8] : memref<2x3x128xf32, #tpu.memory_space<vmem>>, vector<2x3x128xf32>
    tpu.vector_store %arg3[%c0_6, %c0_7, %c0_8], %12 {strides = array<i32>} : memref<2x3x128xf32, #tpu.memory_space<vmem>>, vector<2x3x128xf32>,
    return
  }
  func.func @transform_0(%arg0: i32) -> (i32, i32, i32) {
    %c0_i32 = arith.constant 0 : i32
    %c0_i32_0 = arith.constant 0 : i32
    %c0_i32_1 = arith.constant 0 : i32
    return %arg0, %c0_i32, %c0_i32_0 : i32, i32, i32
  }
  func.func @transform_1(%arg0: i32) -> (i32, i32) {
    %c0_i32 = arith.constant 0 : i32
    %c0_i32_0 = arith.constant 0 : i32
    %c0_i32_1 = arith.constant 0 : i32
    return %c0_i32, %c0_i32_0 : i32, i32
  }
  func.func @transform_2(%arg0: i32) -> (i32, i32, i32) {
    %c0_i32 = arith.constant 0 : i32
    %c0_i32_0 = arith.constant 0 : i32
    %c0_i32_1 = arith.constant 0 : i32
    return %arg0, %c0_i32, %c0_i32_0 : i32, i32, i32
  }
}

module attributes {stable_mosaic.version = 11 : i64} {
  func.func @masked_pool_kernel(%arg0: i32, %arg1: memref<4x128x128xf32, #tpu.memory_space<vmem>>, %arg2: memref<4x2x128xf32, #tpu.memory_space<vmem>>, %arg3: memref<4x2x128xf32, #tpu.memory_space<vmem>>) attributes {dimension_semantics = [#tpu.dimension_semantics<parallel>], iteration_bounds = array<i64: 1>, scalar_prefetch = 0 : i64, scratch_operands = 0 : i64, tpu.core_type = #tpu.core_type<tc>, window_params = [{transform_indices = @transform_0, window_bounds = array<i64: 4, 128, 128>}, {transform_indices = @transform_1, window_bounds = array<i64: 4, 2, 128>}, {transform_indices = @transform_2, window_bounds = array<i64: 4, 2, 128>}]} {
    %c0 = arith.constant 0 : index
    %c0_0 = arith.constant 0 : index
    %c0_1 = arith.constant 0 : index
    %0 = vector.load %arg1[%c0, %c0_0, %c0_1] : memref<4x128x128xf32, #tpu.memory_space<vmem>>, vector<4x128x128xf32>
    %c0_2 = arith.constant 0 : index
    %c0_3 = arith.constant 0 : index
    %c0_4 = arith.constant 0 : index
    %1 = vector.load %arg2[%c0_2, %c0_3, %c0_4] : memref<4x2x128xf32, #tpu.memory_space<vmem>>, vector<4x2x128xf32>
    "tpu.trace_start"() <{level = 10 : i32, message = "gmn,gnd->gmd"}> : () -> ()
    %cst = arith.constant dense<0.000000e+00> : vector<4x2x128xf32>
    %2 = tpu.matmul %1, %0, %cst {dimension_numbers = #tpu.dot_dimension_numbers<[2], [1], [1], [2], [0, 0, 0, 1, 1, 2], [0], [0]>} : vector<4x2x128xf32>, vector<4x128x128xf32>, vector<4x2x128xf32> -> vector<4x2x128xf32>
    "tpu.trace_stop"() : () -> ()
    %cst_5 = arith.constant dense<0.000000e+00> : vector<4x2xf32>
    %3 = vector.multi_reduction <add>, %1, %cst_5 [2] : vector<4x2x128xf32> to vector<4x2xf32>
    %4 = vector.shape_cast %3 : vector<4x2xf32> to vector<4x2x1xf32>
    %cst_6 = arith.constant 9.99999974E-6 : f32
    %5 = vector.broadcast %cst_6 : f32 to vector<4x2x1xf32>
    %6 = arith.addf %4, %5 : vector<4x2x1xf32>
    %7 = vector.broadcast %6 : vector<4x2x1xf32> to vector<4x2x128xf32>
    %8 = arith.divf %2, %7 : vector<4x2x128xf32>
    %c0_7 = arith.constant 0 : index
    %c0_8 = arith.constant 0 : index
    %c0_9 = arith.constant 0 : index
    %9 = vector.load %arg3[%c0_7, %c0_8, %c0_9] : memref<4x2x128xf32, #tpu.memory_space<vmem>>, vector<4x2x128xf32>
    tpu.vector_store %arg3[%c0_7, %c0_8, %c0_9], %8 {strides = array<i32>} : memref<4x2x128xf32, #tpu.memory_space<vmem>>, vector<4x2x128xf32>,
    return
  }
  func.func @transform_0(%arg0: i32) -> (i32, i32, i32) {
    %c0_i32 = arith.constant 0 : i32
    %c0_i32_0 = arith.constant 0 : i32
    %c0_i32_1 = arith.constant 0 : i32
    return %arg0, %c0_i32, %c0_i32_0 : i32, i32, i32
  }
  func.func @transform_1(%arg0: i32) -> (i32, i32, i32) {
    %c0_i32 = arith.constant 0 : i32
    %c0_i32_0 = arith.constant 0 : i32
    %c0_i32_1 = arith.constant 0 : i32
    return %arg0, %c0_i32, %c0_i32_0 : i32, i32, i32
  }
  func.func @transform_2(%arg0: i32) -> (i32, i32, i32) {
    %c0_i32 = arith.constant 0 : i32
    %c0_i32_0 = arith.constant 0 : i32
    %c0_i32_1 = arith.constant 0 : i32
    return %arg0, %c0_i32, %c0_i32_0 : i32, i32, i32
  }
}

</mosaic_0001>

<bundles_post_ra>
// kernel: protonet_forward.7
= control target key start
LH: loop header
LB: loop body
LE: loop exit
PB: predicated region body
PF: predicated region fallthrough
CT: control target
= control target key end

     0   :  { %s1705_s30 = smov 0   ;;  %s2064_s0 = inlined_call_operand.vmem [shape: f32[512,9], index: 0, kind: input, shape index: {}]   ;;  %s2065_s1 = inlined_call_operand.vmem [shape: bf16[9,128], index: 1, kind: input, shape index: {}]   ;;  %s2066_s2 = inlined_call_operand.vmem [shape: f32[1,128], index: 2, kind: input, shape index: {}]   ;;  %s2067_s3 = inlined_call_operand.vmem [shape: bf16[128,128], index: 3, kind: input, shape index: {}]   ;;  %s2068_s4 = inlined_call_operand.vmem [shape: f32[1,128], index: 4, kind: input, shape index: {}]   ;;  %s2069_s5 = inlined_call_operand.vmem [shape: bf16[128,128], index: 5, kind: input, shape index: {}]   ;;  %s2070_s6 = inlined_call_operand.vmem [shape: f32[1,128], index: 6, kind: input, shape index: {}]   ;;  %s2071_s7 = inlined_call_operand.vmem [shape: f32[1,128], index: 7, kind: input, shape index: {}]   ;;  %s2072_s8 = inlined_call_operand.vmem [shape: f32[1,128], index: 8, kind: input, shape index: {}]   ;;  %s2073_s9 = inlined_call_operand.vmem [shape: f32[512,128], index: 9, kind: output, shape index: {}]  }
   0x1 LB: > { %s1374_s10 = sadd.s32 4294967295, %s1652_s30   ;;  %p1378_p0 = scmp.ge.s32.totalorder %s1652_s30, 1  ;;  %s1652_s30 = sphi %s1705_s30, %s19_s30  }
   0x2   : > { %p288_p1 = scmp.lt.s32.totalorder %s1652_s30, 3 }
   0x4   : > { %p289_p2 = pnand %p1378_p0, %p288_p1 }
   0x5   : > { %s1379_s13 = sshll.u32 (!%p289_p2), %s1374_s10, 5 }
   0x6   : > { %292 = sbr.rel (%p289_p2) target bundleno = 696 (0x2b8), region = 56  ;;  %p325_p3 = scmp.lt.s32.totalorder (!%p289_p2), %s1379_s13, 63 }
   0xb   : > { %v1629_v0 = vld [vmem:[%s2065_s1] sm:$0x1f]   ;;  %vm482_vm0 = vcmask 1043456   ;;  %vm483_vm1 = vcmask 1044480   ;;  %v1654_v1 = vmov 65535   ;;  %s2075_s13 = smov (!%p325_p3, %s1379_s13), 63 }
   0xc   : > { %v484_v2 = vsel %vm482_vm0, 4294967295, %v1654_v1  ;;  %v1630_v5 = vld [vmem:[%s2067_s3 + $0x38] sm:$0xff]   ;;  %s1380_s16 = sshll.u32 %s2075_s13, 3  ;;  %vm433_vm2 = vcmask 72704   ;;  %v1631_v27 = vld [vmem:[%s2067_s3 + $0x30] sm:$0xff]   ;;  %v1632_v33 = vld [vmem:[%s2067_s3 + $0x28] sm:$0xff]  }
   0xd   : > { %v485_v3 = vsel %vm483_vm1, %v484_v2, 0  ;;  %s1727_s19 = scalar_lea.vmem %s2064_s0, %s1380_s16  ;;  %v1633_v41 = vld [vmem:[%s2067_s3 + $0x20] sm:$0xff]   ;;  %v1634_v49 = vld [vmem:[%s2067_s3 + $0x18] sm:$0xff]   ;;  %v1635_v58 = vld [vmem:[%s2067_s3 + $0x10] sm:$0xff]   ;;  %s1937_s26 = scalar_lea.vmem %s2073_s9, %s1380_s16 }
   0xe   : > { %v487_v4 = vand.u32 %v1629_v0, %v485_v3  ;;  %v337_v6 = vld [vmem:[%s1727_s19] sm:$0xff]  ;;  %v338_v7 = vld [vmem:[%s1727_s19 + $0x8] sm:$0xff]  ;;  %v339_v8 = vld [vmem:[%s1727_s19 + $0x10] sm:$0xff] }
   0xf   : > { %v406_v9 = vpack.c.bf16 %v338_v7, %v337_v6  ;;  %v340_v10 = vld [vmem:[%s1727_s19 + $0x18] sm:$0xff]  ;;  %v341_v11 = vld [vmem:[%s1727_s19 + $0x20] sm:$0xff]  ;;  %v342_v12 = vld [vmem:[%s1727_s19 + $0x28] sm:$0xff] }
  0x10   : > { %1488 = vmatprep.subr.bf16.mxu0 %v487_v4  ;;  %1618 = vmatprep.subr.bf16.mxu1 %v487_v4  ;;  %v407_v13 = vpack.c.bf16 %v340_v10, %v339_v8  ;;  %v408_v14 = vpack.c.bf16 %v342_v12, %v341_v11  ;;  %v343_v15 = vld [vmem:[%s1727_s19 + $0x30] sm:$0xff]  ;;  %v344_v16 = vld [vmem:[%s1727_s19 + $0x38] sm:$0xff]  ;;  %v345_v17 = vld [vmem:[%s1727_s19 + $0x40] sm:$0xff] }
  0x11   : > { %1489 = vmatpush3.bf16.msra.mxu0 %v487_v4  ;;  %1619 = vmatpush3.bf16.msra.mxu1 %v487_v4  ;;  %v346_v18 = vld [vmem:[%s1727_s19 + $0x48] sm:$0xff]  ;;  %v353_v19 = vld [vmem:[%s1727_s19 + $0x80] sm:$0xff]  ;;  %v355_v22 = vld [vmem:[%s1727_s19 + $0x90] sm:$0xff]  ;;  %v409_v28 = vpack.c.bf16 %v344_v16, %v343_v15 }
  0x12   : > { %1522 = vmatprep.subr.bf16.mxu1 %v1630_v5  ;;  %1490 = vmatprep.mubr.msk.bf16.mxu0 %vm433_vm2, %v406_v9  ;;  %v354_v20 = vld [vmem:[%s1727_s19 + $0x88] sm:$0xff]  ;;  %v356_v23 = vld [vmem:[%s1727_s19 + $0x98] sm:$0xff]  ;;  %v357_v24 = vld [vmem:[%s1727_s19 + $0xa0] sm:$0xff]  ;;  %v410_v30 = vpack.c.bf16 %v346_v18, %v345_v17 }
  0x13   : > { %v414_v21 = vpack.c.bf16 %v354_v20, %v353_v19  ;;  %v415_v25 = vpack.c.bf16 %v356_v23, %v355_v22  ;;  %v358_v26 = vld [vmem:[%s1727_s19 + $0xa8] sm:$0xff]  ;;  %v359_v31 = vld [vmem:[%s1727_s19 + $0xb0] sm:$0xff]  ;;  %v360_v32 = vld [vmem:[%s1727_s19 + $0xb8] sm:$0xff] }
  0x14   : > { %1491 = vmatmul.mubr.msk.bf16.vlgmr.msra.gmra.mxu0 %vm433_vm2, %v407_v13  ;;  %v416_v29 = vpack.c.bf16 %v358_v26, %v357_v24  ;;  %v361_v34 = vld [vmem:[%s1727_s19 + $0xc0] sm:$0xff]  ;;  %v362_v35 = vld [vmem:[%s1727_s19 + $0xc8] sm:$0xff]  ;;  %v347_v36 = vld [vmem:[%s1727_s19 + $0x50] sm:$0xff]  ;;  %v417_v40 = vpack.c.bf16 %v360_v32, %v359_v31 }
  0x15   : > { %1494 = vmatprep.mubr.msk.bf16.mxu0 %vm433_vm2, %v408_v14  ;;  %1506 = vmatprep.mubr.msk.bf16.mxu1 %vm433_vm2, %v414_v21  ;;  %v348_v37 = vld [vmem:[%s1727_s19 + $0x58] sm:$0xff]  ;;  %v349_v38 = vld [vmem:[%s1727_s19 + $0x60] sm:$0xff]  ;;  %v350_v39 = vld [vmem:[%s1727_s19 + $0x68] sm:$0xff]  ;;  %v418_v42 = vpack.c.bf16 %v362_v35, %v361_v34 }
  0x16   : > { %1507 = vmatmul.mubr.msk.bf16.vlgmr.msra.gmra.mxu1 %vm433_vm2, %v415_v25  ;;  %v411_v43 = vpack.c.bf16 %v348_v37, %v347_v36  ;;  %v412_v44 = vpack.c.bf16 %v350_v39, %v349_v38  ;;  %v363_v45 = vld [vmem:[%s1727_s19 + $0xd0] sm:$0xff]  ;;  %v364_v46 = vld [vmem:[%s1727_s19 + $0xd8] sm:$0xff]  ;;  %v365_v47 = vld [vmem:[%s1727_s19 + $0xe0] sm:$0xff] }
  0x17   : > { %1510 = vmatprep.mubr.msk.bf16.mxu1 %vm433_vm2, %v416_v29  ;;  %1523 = vmatpush3.bf16.msra.mxu1 %v1630_v5  ;;  %v366_v48 = vld [vmem:[%s1727_s19 + $0xe8] sm:$0xff]  ;;  %v351_v50 = vld [vmem:[%s1727_s19 + $0x70] sm:$0xff]  ;;  %v352_v51 = vld [vmem:[%s1727_s19 + $0x78] sm:$0xff]  ;;  %v419_v52 = vpack.c.bf16 %v364_v46, %v363_v45 }
  0x18   : > { %1524 = vmatprep.subr.bf16.mxu1 %v1631_v27  ;;  %v420_v53 = vpack.c.bf16 %v366_v48, %v365_v47  ;;  %v413_v54 = vpack.c.bf16 %v352_v51, %v351_v50  ;;  %v367_v55 = vld [vmem:[%s1727_s19 + $0xf0] sm:$0xff]  ;;  %v368_v56 = vld [vmem:[%s1727_s19 + $0xf8] sm:$0xff]  ;;  %v1636_v59 = vld [vmem:[%s2067_s3 + $0x8] sm:$0xff]  }
  0x19   : > { %v421_v57 = vpack.c.bf16 %v368_v56, %v367_v55  ;;  %v1637_v60 = vld [vmem:[%s2067_s3] sm:$0xff]   ;;  %v1638_v61 = vld [vmem:[%s2069_s5 + $0x38] sm:$0xff]   ;;  %v1639_v62 = vld [vmem:[%s2069_s5 + $0x30] sm:$0xff]  }
  0x1a   : > { %1570 = vmatprep.subr.bf16.mxu0 %v1638_v61  ;;  %v1640_v63 = vld [vmem:[%s2069_s5 + $0x28] sm:$0xff]   ;;  %v1641_v0 = vld [vmem:[%s2069_s5 + $0x20] sm:$0xff]   ;;  %v1642_v1 = vld [vmem:[%s2069_s5 + $0x18] sm:$0xff]  }
  0x1b   : > { %1525 = vmatpush3.bf16.msra.mxu1 %v1631_v27  ;;  %1571 = vmatpush3.bf16.msra.mxu0 %v1638_v61  ;;  %v1816_v4 = vld [vmem:[%s2066_s2] ss:$0 sm:$0xff] }
  0x1c   : > { %1495 = vmatmul.mubr.msk.bf16.gmra.mxu0 %vm433_vm2, %v409_v28  ;;  %1526 = vmatprep.subr.bf16.mxu1 %v1632_v33 }
  0x1d   : > { %1498 = vmatprep.mubr.msk.bf16.mxu0 %vm433_vm2, %v410_v30  ;;  %1572 = vmatprep.subr.bf16.mxu0 %v1639_v62 }
  0x1e   : > { %1511 = vmatmul.mubr.msk.bf16.gmra.mxu1 %vm433_vm2, %v417_v40 }
  0x1f   : > { %1514 = vmatprep.mubr.msk.bf16.mxu1 %vm433_vm2, %v418_v42  ;;  %1527 = vmatpush3.bf16.msra.mxu1 %v1632_v33 }
  0x20   : > { %1528 = vmatprep.subr.bf16.mxu1 %v1633_v41  ;;  %1573 = vmatpush3.bf16.msra.mxu0 %v1639_v62 }
  0x21   : > { %1574 = vmatprep.subr.bf16.mxu0 %v1640_v63 }
  0x23   : > { %1529 = vmatpush3.bf16.msra.mxu1 %v1633_v41 }
  0x24   : > { %1499 = vmatmul.mubr.msk.bf16.gmra.mxu0 %vm433_vm2, %v411_v43  ;;  %1530 = vmatprep.subr.bf16.mxu1 %v1634_v49 }
  0x25   : > { %1502 = vmatprep.mubr.msk.bf16.mxu0 %vm433_vm2, %v412_v44  ;;  %1575 = vmatpush3.bf16.msra.mxu0 %v1640_v63 }
  0x26   : > { %1515 = vmatmul.mubr.msk.bf16.gmra.mxu1 %vm433_vm2, %v419_v52  ;;  %1576 = vmatprep.subr.bf16.mxu0 %v1641_v0 }
  0x27   : > { %1518 = vmatprep.mubr.msk.bf16.mxu1 %vm433_vm2, %v420_v53  ;;  %1531 = vmatpush3.bf16.msra.mxu1 %v1634_v49 }
  0x28   : > { %1532 = vmatprep.subr.bf16.mxu1 %v1635_v58 }
  0x29   : > { %1577 = vmatpush3.bf16.msra.mxu0 %v1641_v0 }
  0x2a   : > { %1578 = vmatprep.subr.bf16.mxu0 %v1642_v1 }
  0x2b   : > { %1533 = vmatpush3.bf16.msra.mxu1 %v1635_v58 }
  0x2c   : > { %1503 = vmatmul.mubr.msk.bf16.gmra.mxu0 %vm433_vm2, %v413_v54  ;;  %1534 = vmatprep.subr.bf16.mxu1 %v1636_v59 }
  0x2d   : > { %1579 = vmatpush3.bf16.msra.mxu0 %v1642_v1 }
  0x2e   : > { %1519 = vmatmul.mubr.msk.bf16.gmra.mxu1 %vm433_vm2, %v421_v57 }
  0x2f   : > { %1535 = vmatpush3.bf16.msra.mxu1 %v1636_v59 }
  0x30   : > { %1536 = vmatprep.subr.bf16.mxu1 %v1637_v60 }
  0x33   : > { %1537 = vmatpush3.bf16.msra.mxu1 %v1637_v60 }
  0xd4   : > { %v1492_v2 = vpop.f32.mrf.mxu0 }
  0xd5   : > { %v532_v9 = vadd.f32 %v1492_v2, %v1816_v4 }
  0xd6   : > { %v523_v3 = vpop.f32.mrf.mxu0  ;;  %v1820_v8 = vpop.f32.mrf.mxu1 }
  0xd7   : > { %v524_v6 = vadd.f32 %v1816_v4, %v523_v3  ;;  %v652_v18 = vmax.f32 %v532_v9, 0.0 }
  0xd8   : > { %v1493_v5 = vpop.f32.mrf.mxu0  ;;  %v587_v12 = vpop.f32.mrf.mxu1 }
  0xd9   : > { %v535_v7 = vadd.f32 %v1493_v5, %v1816_v4  ;;  %v650_v15 = vmax.f32 %v524_v6, 0.0  ;;  %v588_v56 = vadd.f32 %v1816_v4, %v587_v12 }
  0xda   : > { %v526_v10 = vpop.f32.mrf.mxu0  ;;  %v1824_v17 = vpop.f32.mrf.mxu1 }
  0xdb   : > { %v527_v11 = vadd.f32 %v1816_v4, %v526_v10  ;;  %v653_v13 = vmax.f32 %v535_v7, 0.0  ;;  %v666_v1 = vmax.f32 %v588_v56, 0.0  ;;  %v1877_v56 = vld [vmem:[%s2068_s4] ss:$0 sm:$0xff] }
  0xdc   : > { %v1496_v14 = vpop.f32.mrf.mxu0  ;;  %v590_v21 = vpop.f32.mrf.mxu1 }
  0xdd   : > { %v651_v16 = vmax.f32 %v527_v11, 0.0  ;;  %v683_v22 = vpack.c.bf16 %v653_v13, %v652_v18  ;;  %v548_v27 = vadd.f32 %v1496_v14, %v1816_v4  ;;  %v591_v57 = vadd.f32 %v1816_v4, %v590_v21 }
  0xde   : > { %v539_v19 = vpop.f32.mrf.mxu0  ;;  %v1828_v26 = vpop.f32.mrf.mxu1  ;;  %v599_v18 = vadd.f32 %v1824_v17, %v1816_v4 }
  0xdf   : > { %v682_v20 = vpack.c.bf16 %v651_v16, %v650_v15  ;;  %v540_v24 = vadd.f32 %v1816_v4, %v539_v19  ;;  %v656_v36 = vmax.f32 %v548_v27, 0.0  ;;  %v667_v3 = vmax.f32 %v591_v57, 0.0 }
  0xe0   : > { %v1497_v23 = vpop.f32.mrf.mxu0  ;;  %v603_v30 = vpop.f32.mrf.mxu1  ;;  %v596_v15 = vadd.f32 %v1820_v8, %v1816_v4  ;;  %v612_v8 = vadd.f32 %v1828_v26, %v1816_v4 }
  0xe1   : > { %v551_v25 = vadd.f32 %v1497_v23, %v1816_v4  ;;  %1538 = vmatprep.mubr.bf16.mxu1 %v682_v20  ;;  %v654_v33 = vmax.f32 %v540_v24, 0.0  ;;  %v690_v12 = vpack.c.bf16 %v667_v3, %v666_v1  ;;  %v604_v13 = vadd.f32 %v1816_v4, %v603_v30 }
  0xe2   : > { %v542_v28 = vpop.f32.mrf.mxu0  ;;  %1539 = vmatmul.mubr.bf16.vlgmr.msra.gmra.mxu1 %v683_v22  ;;  %v1832_v35 = vpop.f32.mrf.mxu1  ;;  %v668_v22 = vmax.f32 %v596_v15, 0.0  ;;  %v669_v23 = vmax.f32 %v599_v18, 0.0 }
  0xe3   : > { %v543_v29 = vadd.f32 %v1816_v4, %v542_v28  ;;  %v657_v31 = vmax.f32 %v551_v25, 0.0  ;;  %v670_v20 = vmax.f32 %v604_v13, 0.0  ;;  %v615_v17 = vadd.f32 %v1832_v35, %v1816_v4 }
  0xe4   : > { %v1500_v32 = vpop.f32.mrf.mxu0  ;;  %v606_v39 = vpop.f32.mrf.mxu1 }
  0xe5   : > { %v655_v34 = vmax.f32 %v543_v29, 0.0  ;;  %v685_v40 = vpack.c.bf16 %v657_v31, %v656_v36  ;;  %v564_v45 = vadd.f32 %v1500_v32, %v1816_v4  ;;  %v607_v14 = vadd.f32 %v1816_v4, %v606_v39 }
  0xe6   : > { %v555_v37 = vpop.f32.mrf.mxu0  ;;  %v1836_v44 = vpop.f32.mrf.mxu1  ;;  %v691_v29 = vpack.c.bf16 %v669_v23, %v668_v22 }
  0xe7   : > { %v684_v38 = vpack.c.bf16 %v655_v34, %v654_v33  ;;  %v556_v42 = vadd.f32 %v1816_v4, %v555_v37  ;;  %v660_v53 = vmax.f32 %v564_v45, 0.0  ;;  %v671_v21 = vmax.f32 %v607_v14, 0.0 }
  0xe8   : > { %v1501_v41 = vpop.f32.mrf.mxu0  ;;  %v619_v50 = vpop.f32.mrf.mxu1  ;;  %v672_v33 = vmax.f32 %v612_v8, 0.0  ;;  %v673_v34 = vmax.f32 %v615_v17, 0.0  ;;  %v628_v26 = vadd.f32 %v1836_v44, %v1816_v4  ;;  %v1643_v44 = vld [vmem:[%s2069_s5 + $0x10] sm:$0xff]  }
  0xe9   : > { %v567_v43 = vadd.f32 %v1501_v41, %v1816_v4  ;;  %1542 = vmatprep.mubr.bf16.mxu1 %v684_v38  ;;  %v658_v51 = vmax.f32 %v556_v42, 0.0  ;;  %v692_v25 = vpack.c.bf16 %v671_v21, %v670_v20  ;;  %v620_v27 = vadd.f32 %v1816_v4, %v619_v50  ;;  %1580 = vmatprep.subr.bf16.mxu0 %v1643_v44 }
  0xea   : > { %v558_v46 = vpop.f32.mrf.mxu0  ;;  %1543 = vmatmul.mubr.bf16.gmra.mxu1 %v685_v40  ;;  %v1517_v60 = vpop.f32.mrf.mxu1  ;;  %v693_v40 = vpack.c.bf16 %v673_v34, %v672_v33  ;;  %1581 = vmatpush3.bf16.msra.mxu0 %v1643_v44 }
  0xeb   : > { %v559_v47 = vadd.f32 %v1816_v4, %v558_v46  ;;  %v661_v48 = vmax.f32 %v567_v43, 0.0  ;;  %v674_v31 = vmax.f32 %v620_v27, 0.0  ;;  %v631_v41 = vadd.f32 %v1517_v60, %v1816_v4 }
  0xec   : > { %v1504_v49 = vpop.f32.mrf.mxu0  ;;  %v622_v6 = vpop.f32.mrf.mxu1  ;;  %v676_v43 = vmax.f32 %v628_v26, 0.0 }
  0xed   : > { %v659_v52 = vmax.f32 %v559_v47, 0.0  ;;  %v687_v58 = vpack.c.bf16 %v661_v48, %v660_v53  ;;  %v580_v63 = vadd.f32 %v1504_v49, %v1816_v4  ;;  %v623_v28 = vadd.f32 %v1816_v4, %v622_v6  ;;  %v1644_v53 = vld [vmem:[%s2069_s5 + $0x8] sm:$0xff]  }
  0xee   : > { %v571_v54 = vpop.f32.mrf.mxu0  ;;  %v1520_v19 = vpop.f32.mrf.mxu1  ;;  %v677_v45 = vmax.f32 %v631_v41, 0.0  ;;  %1582 = vmatprep.subr.bf16.mxu0 %v1644_v53 }
  0xef   : > { %v686_v55 = vpack.c.bf16 %v659_v52, %v658_v51  ;;  %v572_v61 = vadd.f32 %v1816_v4, %v571_v54  ;;  %v664_v10 = vmax.f32 %v580_v63, 0.0  ;;  %v675_v32 = vmax.f32 %v623_v28, 0.0  ;;  %1583 = vmatpush3.bf16.msra.mxu0 %v1644_v53 }
  0xf0   : > { %v1505_v59 = vpop.f32.mrf.mxu0  ;;  %v635_v24 = vpop.f32.mrf.mxu1  ;;  %v695_v47 = vpack.c.bf16 %v677_v45, %v676_v43  ;;  %v644_v48 = vadd.f32 %v1520_v19, %v1816_v4 }
  0xf1   : > { %v583_v62 = vadd.f32 %v1505_v59, %v1816_v4  ;;  %1546 = vmatprep.mubr.bf16.mxu1 %v686_v55  ;;  %v662_v7 = vmax.f32 %v572_v61, 0.0  ;;  %v694_v37 = vpack.c.bf16 %v675_v32, %v674_v31  ;;  %v636_v38 = vadd.f32 %v1816_v4, %v635_v24 }
  0xf2   : > { %v574_v0 = vpop.f32.mrf.mxu0  ;;  %1547 = vmatmul.mubr.bf16.gmra.mxu1 %v687_v58  ;;  %v1521_v30 = vpop.f32.mrf.mxu1  ;;  %v680_v50 = vmax.f32 %v644_v48, 0.0 }
  0xf3   : > { %v575_v2 = vadd.f32 %v1816_v4, %v574_v0  ;;  %v665_v5 = vmax.f32 %v583_v62, 0.0  ;;  %v678_v35 = vmax.f32 %v636_v38, 0.0  ;;  %v647_v49 = vadd.f32 %v1521_v30, %v1816_v4 }
  0xf4   : > { %v638_v36 = vpop.f32.mrf.mxu1 }
  0xf5   : > { %v663_v9 = vmax.f32 %v575_v2, 0.0  ;;  %v689_v16 = vpack.c.bf16 %v665_v5, %v664_v10  ;;  %v639_v39 = vadd.f32 %v1816_v4, %v638_v36  ;;  %v681_v51 = vmax.f32 %v647_v49, 0.0  ;;  %v1645_v4 = vld [vmem:[%s2069_s5] sm:$0xff]  }
  0xf6   : > { %1584 = vmatprep.subr.bf16.mxu0 %v1645_v4 }
  0xf7   : > { %v688_v11 = vpack.c.bf16 %v663_v9, %v662_v7  ;;  %v679_v42 = vmax.f32 %v639_v39, 0.0  ;;  %v697_v52 = vpack.c.bf16 %v681_v51, %v680_v50  ;;  %1585 = vmatpush3.bf16.msra.mxu0 %v1645_v4 }
  0xf9   : > { %1550 = vmatprep.mubr.bf16.mxu1 %v688_v11  ;;  %v696_v46 = vpack.c.bf16 %v679_v42, %v678_v35 }
  0xfa   : > { %1551 = vmatmul.mubr.bf16.gmra.mxu1 %v689_v16 }
  0xfb   : > { %1554 = vmatprep.mubr.bf16.mxu1 %v690_v12 }
 0x102   : > { %1555 = vmatmul.mubr.bf16.gmra.mxu1 %v691_v29 }
 0x103   : > { %1558 = vmatprep.mubr.bf16.mxu1 %v692_v25 }
 0x10a   : > { %1559 = vmatmul.mubr.bf16.gmra.mxu1 %v693_v40 }
 0x10b   : > { %1562 = vmatprep.mubr.bf16.mxu1 %v694_v37 }
 0x112   : > { %1563 = vmatmul.mubr.bf16.gmra.mxu1 %v695_v47 }
 0x113   : > { %1566 = vmatprep.mubr.bf16.mxu1 %v696_v46 }
 0x11a   : > { %1567 = vmatmul.mubr.bf16.gmra.mxu1 %v697_v52 }
 0x1a2   : > { %v1540_v54 = vpop.f32.mrf.mxu1 }
 0x1a3   : > { %v795_v60 = vadd.f32 %v1540_v54, %v1877_v56 }
 0x1a4   : > { %v786_v55 = vpop.f32.mrf.mxu1 }
 0x1a5   : > { %v787_v58 = vadd.f32 %v1877_v56, %v786_v55  ;;  %v915_v3 = vmax.f32 %v795_v60, 0.0 }
 0x1a6   : > { %v1541_v57 = vpop.f32.mrf.mxu1 }
 0x1a7   : > { %v798_v59 = vadd.f32 %v1541_v57, %v1877_v56  ;;  %v913_v1 = vmax.f32 %v787_v58, 0.0 }
 0x1a8   : > { %v789_v61 = vpop.f32.mrf.mxu1 }
 0x1a9   : > { %v790_v62 = vadd.f32 %v1877_v56, %v789_v61  ;;  %v916_v63 = vmax.f32 %v798_v59, 0.0 }
 0x1aa   : > { %v1544_v0 = vpop.f32.mrf.mxu1 }
 0x1ab   : > { %v914_v2 = vmax.f32 %v790_v62, 0.0  ;;  %v946_v7 = vpack.c.bf16 %v916_v63, %v915_v3  ;;  %v811_v12 = vadd.f32 %v1544_v0, %v1877_v56 }
 0x1ac   : > { %v802_v5 = vpop.f32.mrf.mxu1 }
 0x1ad   : > { %v945_v6 = vpack.c.bf16 %v914_v2, %v913_v1  ;;  %v803_v10 = vadd.f32 %v1877_v56, %v802_v5  ;;  %v919_v20 = vmax.f32 %v811_v12, 0.0 }
 0x1ae   : > { %v1545_v9 = vpop.f32.mrf.mxu1 }
 0x1af   : > { %v814_v11 = vadd.f32 %v1545_v9, %v1877_v56  ;;  %1586 = vmatprep.mubr.bf16.mxu0 %v945_v6  ;;  %v917_v18 = vmax.f32 %v803_v10, 0.0 }
 0x1b0   : > { %v805_v13 = vpop.f32.mrf.mxu1  ;;  %1587 = vmatmul.mubr.bf16.vlgmr.msra.gmra.mxu0 %v946_v7 }
 0x1b1   : > { %v806_v14 = vadd.f32 %v1877_v56, %v805_v13  ;;  %v920_v15 = vmax.f32 %v814_v11, 0.0 }
 0x1b2   : > { %v1548_v16 = vpop.f32.mrf.mxu1 }
 0x1b3   : > { %v918_v19 = vmax.f32 %v806_v14, 0.0  ;;  %v948_v23 = vpack.c.bf16 %v920_v15, %v919_v20  ;;  %v827_v28 = vadd.f32 %v1548_v16, %v1877_v56 }
 0x1b4   : > { %v818_v21 = vpop.f32.mrf.mxu1 }
 0x1b5   : > { %v947_v22 = vpack.c.bf16 %v918_v19, %v917_v18  ;;  %v819_v25 = vadd.f32 %v1877_v56, %v818_v21  ;;  %v923_v33 = vmax.f32 %v827_v28, 0.0 }
 0x1b6   : > { %v1549_v24 = vpop.f32.mrf.mxu1 }
 0x1b7   : > { %v830_v27 = vadd.f32 %v1549_v24, %v1877_v56  ;;  %1590 = vmatprep.mubr.bf16.mxu0 %v947_v22  ;;  %v921_v31 = vmax.f32 %v819_v25, 0.0 }
 0x1b8   : > { %v821_v29 = vpop.f32.mrf.mxu1  ;;  %1591 = vmatmul.mubr.bf16.gmra.mxu0 %v948_v23 }
 0x1b9   : > { %v822_v8 = vadd.f32 %v1877_v56, %v821_v29  ;;  %v924_v17 = vmax.f32 %v830_v27, 0.0 }
 0x1ba   : > { %v1552_v30 = vpop.f32.mrf.mxu1 }
 0x1bb   : > { %v922_v32 = vmax.f32 %v822_v8, 0.0  ;;  %v950_v37 = vpack.c.bf16 %v924_v17, %v923_v33  ;;  %v843_v26 = vadd.f32 %v1552_v30, %v1877_v56 }
 0x1bc   : > { %v834_v34 = vpop.f32.mrf.mxu1 }
 0x1bd   : > { %v949_v36 = vpack.c.bf16 %v922_v32, %v921_v31  ;;  %v835_v39 = vadd.f32 %v1877_v56, %v834_v34  ;;  %v927_v47 = vmax.f32 %v843_v26, 0.0 }
 0x1be   : > { %v1553_v38 = vpop.f32.mrf.mxu1 }
 0x1bf   : > { %v846_v40 = vadd.f32 %v1553_v38, %v1877_v56  ;;  %1594 = vmatprep.mubr.bf16.mxu0 %v949_v36  ;;  %v925_v45 = vmax.f32 %v835_v39, 0.0 }
 0x1c0   : > { %v837_v41 = vpop.f32.mrf.mxu1  ;;  %1595 = vmatmul.mubr.bf16.gmra.mxu0 %v950_v37 }
 0x1c1   : > { %v838_v35 = vadd.f32 %v1877_v56, %v837_v41  ;;  %v928_v42 = vmax.f32 %v846_v40, 0.0 }
 0x1c2   : > { %v1556_v43 = vpop.f32.mrf.mxu1 }
 0x1c3   : > { %v926_v46 = vmax.f32 %v838_v35, 0.0  ;;  %v952_v50 = vpack.c.bf16 %v928_v42, %v927_v47  ;;  %v859_v53 = vadd.f32 %v1556_v43, %v1877_v56  ;;  %v1914_v35 = vld [vmem:[%s2070_s6] ss:$0 sm:$0xff] }
 0x1c4   : > { %v850_v48 = vpop.f32.mrf.mxu1  ;;  %v1919_v43 = vld [vmem:[%s2071_s7] ss:$0 sm:$0xff] }
 0x1c5   : > { %v951_v49 = vpack.c.bf16 %v926_v46, %v925_v45  ;;  %v851_v52 = vadd.f32 %v1877_v56, %v850_v48  ;;  %v931_v60 = vmax.f32 %v859_v53, 0.0  ;;  %v1925_v45 = vld [vmem:[%s2072_s8] ss:$0 sm:$0xff] }
 0x1c6   : > { %v1557_v51 = vpop.f32.mrf.mxu1 }
 0x1c7   : > { %v862_v44 = vadd.f32 %v1557_v51, %v1877_v56  ;;  %1598 = vmatprep.mubr.bf16.mxu0 %v951_v49  ;;  %v929_v58 = vmax.f32 %v851_v52, 0.0 }
 0x1c8   : > { %v853_v4 = vpop.f32.mrf.mxu1  ;;  %1599 = vmatmul.mubr.bf16.gmra.mxu0 %v952_v50 }
 0x1c9   : > { %v854_v54 = vadd.f32 %v1877_v56, %v853_v4  ;;  %v932_v55 = vmax.f32 %v862_v44, 0.0 }
 0x1ca   : > { %v1560_v57 = vpop.f32.mrf.mxu1 }
 0x1cb   : > { %v930_v59 = vmax.f32 %v854_v54, 0.0  ;;  %v954_v63 = vpack.c.bf16 %v932_v55, %v931_v60  ;;  %v875_v3 = vadd.f32 %v1560_v57, %v1877_v56 }
 0x1cc   : > { %v866_v61 = vpop.f32.mrf.mxu1 }
 0x1cd   : > { %v953_v62 = vpack.c.bf16 %v930_v59, %v929_v58  ;;  %v867_v1 = vadd.f32 %v1877_v56, %v866_v61  ;;  %v935_v12 = vmax.f32 %v875_v3, 0.0 }
 0x1ce   : > { %v1561_v0 = vpop.f32.mrf.mxu1 }
 0x1cf   : > { %v878_v2 = vadd.f32 %v1561_v0, %v1877_v56  ;;  %1602 = vmatprep.mubr.bf16.mxu0 %v953_v62  ;;  %v933_v10 = vmax.f32 %v867_v1, 0.0 }
 0x1d0   : > { %v869_v5 = vpop.f32.mrf.mxu1  ;;  %1603 = vmatmul.mubr.bf16.gmra.mxu0 %v954_v63 }
 0x1d1   : > { %v870_v6 = vadd.f32 %v1877_v56, %v869_v5  ;;  %v936_v7 = vmax.f32 %v878_v2, 0.0 }
 0x1d2   : > { %v1564_v9 = vpop.f32.mrf.mxu1 }
 0x1d3   : > { %v934_v11 = vmax.f32 %v870_v6, 0.0  ;;  %v956_v15 = vpack.c.bf16 %v936_v7, %v935_v12  ;;  %v891_v20 = vadd.f32 %v1564_v9, %v1877_v56 }
 0x1d4   : > { %v882_v13 = vpop.f32.mrf.mxu1 }
 0x1d5   : > { %v955_v14 = vpack.c.bf16 %v934_v11, %v933_v10  ;;  %v883_v18 = vadd.f32 %v1877_v56, %v882_v13  ;;  %v939_v28 = vmax.f32 %v891_v20, 0.0 }
 0x1d6   : > { %v1565_v16 = vpop.f32.mrf.mxu1 }
 0x1d7   : > { %v894_v19 = vadd.f32 %v1565_v16, %v1877_v56  ;;  %1606 = vmatprep.mubr.bf16.mxu0 %v955_v14  ;;  %v937_v25 = vmax.f32 %v883_v18, 0.0 }
 0x1d8   : > { %v885_v21 = vpop.f32.mrf.mxu1  ;;  %1607 = vmatmul.mubr.bf16.gmra.mxu0 %v956_v15 }
 0x1d9   : > { %v886_v22 = vadd.f32 %v1877_v56, %v885_v21  ;;  %v940_v23 = vmax.f32 %v894_v19, 0.0 }
 0x1da   : > { %v1568_v24 = vpop.f32.mrf.mxu1 }
 0x1db   : > { %v938_v27 = vmax.f32 %v886_v22, 0.0  ;;  %v958_v17 = vpack.c.bf16 %v940_v23, %v939_v28  ;;  %v907_v33 = vadd.f32 %v1568_v24, %v1877_v56 }
 0x1dc   : > { %v898_v29 = vpop.f32.mrf.mxu1 }
 0x1dd   : > { %v957_v8 = vpack.c.bf16 %v938_v27, %v937_v25  ;;  %v899_v31 = vadd.f32 %v1877_v56, %v898_v29  ;;  %v943_v40 = vmax.f32 %v907_v33, 0.0 }
 0x1de   : > { %v1569_v30 = vpop.f32.mrf.mxu1 }
 0x1df   : > { %v910_v32 = vadd.f32 %v1569_v30, %v1877_v56  ;;  %1610 = vmatprep.mubr.bf16.mxu0 %v957_v8  ;;  %v941_v38 = vmax.f32 %v899_v31, 0.0 }
 0x1e0   : > { %v901_v34 = vpop.f32.mrf.mxu1  ;;  %1611 = vmatmul.mubr.bf16.gmra.mxu0 %v958_v17 }
 0x1e1   : > { %v902_v36 = vadd.f32 %v1877_v56, %v901_v34  ;;  %v944_v37 = vmax.f32 %v910_v32, 0.0 }
 0x1e3   : > { %v942_v39 = vmax.f32 %v902_v36, 0.0  ;;  %v960_v41 = vpack.c.bf16 %v944_v37, %v943_v40 }
 0x1e5   : > { %v959_v26 = vpack.c.bf16 %v942_v39, %v941_v38 }
 0x1e7   : > { %1614 = vmatprep.mubr.bf16.mxu0 %v959_v26 }
 0x1e8   : > { %1615 = vmatmul.mubr.bf16.gmra.mxu0 %v960_v41 }
 0x270   : > { %v1588_v42 = vpop.f32.mrf.mxu0 }
 0x271   : > { %v1058_v56 = vadd.f32 %v1588_v42, %v1914_v35 }
 0x272   : > { %v1049_v46 = vpop.f32.mrf.mxu0 }
 0x273   : > { %v1185_v47 = vmul.f32 %v1919_v43, %v1058_v56  ;;  %v1050_v48 = vadd.f32 %v1914_v35, %v1049_v46 }
 0x274   : > { %v1589_v49 = vpop.f32.mrf.mxu0 }
 0x275   : > { %v1224_v50 = vadd.f32 %v1925_v45, %v1185_v47  ;;  %v1183_v51 = vmul.f32 %v1919_v43, %v1050_v48  ;;  %v1061_v52 = vadd.f32 %v1589_v49, %v1914_v35 }
 0x276   : > { %v1052_v44 = vpop.f32.mrf.mxu0 }
 0x277   : > { %v1256_v53 = vmax.f32 %v1224_v50, 0.0  ;;  %v1222_v4 = vadd.f32 %v1925_v45, %v1183_v51  ;;  %v1186_v54 = vmul.f32 %v1919_v43, %v1061_v52  ;;  %v1053_v55 = vadd.f32 %v1914_v35, %v1052_v44 }
 0x278   : > { %v1592_v57 = vpop.f32.mrf.mxu0 }
 0x279   : > { %1288 = vst [vmem:[%s1937_s26 + $0x10] sm:$0xff] %v1256_v53  ;;  %v1254_v58 = vmax.f32 %v1222_v4, 0.0  ;;  %v1225_v59 = vadd.f32 %v1925_v45, %v1186_v54  ;;  %v1184_v60 = vmul.f32 %v1919_v43, %v1053_v55  ;;  %v1074_v61 = vadd.f32 %v1592_v57, %v1914_v35 }
 0x27a   : > { %v1065_v62 = vpop.f32.mrf.mxu0 }
 0x27b   : > { %1286 = vst [vmem:[%s1937_s26] sm:$0xff] %v1254_v58  ;;  %v1257_v63 = vmax.f32 %v1225_v59, 0.0  ;;  %v1223_v0 = vadd.f32 %v1925_v45, %v1184_v60  ;;  %v1189_v1 = vmul.f32 %v1919_v43, %v1074_v61  ;;  %v1066_v2 = vadd.f32 %v1914_v35, %v1065_v62 }
 0x27c   : > { %v1593_v3 = vpop.f32.mrf.mxu0 }
 0x27d   : > { %1289 = vst [vmem:[%s1937_s26 + $0x18] sm:$0xff] %v1257_v63  ;;  %v1255_v5 = vmax.f32 %v1223_v0, 0.0  ;;  %v1228_v6 = vadd.f32 %v1925_v45, %v1189_v1  ;;  %v1187_v7 = vmul.f32 %v1919_v43, %v1066_v2  ;;  %v1077_v9 = vadd.f32 %v1593_v3, %v1914_v35 }
 0x27e   : > { %v1068_v10 = vpop.f32.mrf.mxu0 }
 0x27f   : > { %1287 = vst [vmem:[%s1937_s26 + $0x8] sm:$0xff] %v1255_v5  ;;  %v1260_v11 = vmax.f32 %v1228_v6, 0.0  ;;  %v1226_v12 = vadd.f32 %v1925_v45, %v1187_v7  ;;  %v1190_v13 = vmul.f32 %v1919_v43, %v1077_v9  ;;  %v1069_v14 = vadd.f32 %v1914_v35, %v1068_v10 }
 0x280   : > { %v1596_v15 = vpop.f32.mrf.mxu0 }
 0x281   : > { %1292 = vst [vmem:[%s1937_s26 + $0x30] sm:$0xff] %v1260_v11  ;;  %v1258_v16 = vmax.f32 %v1226_v12, 0.0  ;;  %v1229_v18 = vadd.f32 %v1925_v45, %v1190_v13  ;;  %v1188_v19 = vmul.f32 %v1919_v43, %v1069_v14  ;;  %v1090_v20 = vadd.f32 %v1596_v15, %v1914_v35 }
 0x282   : > { %v1081_v21 = vpop.f32.mrf.mxu0 }
 0x283   : > { %1290 = vst [vmem:[%s1937_s26 + $0x20] sm:$0xff] %v1258_v16  ;;  %v1261_v22 = vmax.f32 %v1229_v18, 0.0  ;;  %v1227_v23 = vadd.f32 %v1925_v45, %v1188_v19  ;;  %v1193_v24 = vmul.f32 %v1919_v43, %v1090_v20  ;;  %v1082_v25 = vadd.f32 %v1914_v35, %v1081_v21 }
 0x284   : > { %v1597_v27 = vpop.f32.mrf.mxu0 }
 0x285   : > { %1293 = vst [vmem:[%s1937_s26 + $0x38] sm:$0xff] %v1261_v22  ;;  %v1259_v28 = vmax.f32 %v1227_v23, 0.0  ;;  %v1232_v29 = vadd.f32 %v1925_v45, %v1193_v24  ;;  %v1191_v8 = vmul.f32 %v1919_v43, %v1082_v25  ;;  %v1093_v17 = vadd.f32 %v1597_v27, %v1914_v35 }
 0x286   : > { %v1084_v30 = vpop.f32.mrf.mxu0 }
 0x287   : > { %1291 = vst [vmem:[%s1937_s26 + $0x28] sm:$0xff] %v1259_v28  ;;  %v1264_v31 = vmax.f32 %v1232_v29, 0.0  ;;  %v1230_v32 = vadd.f32 %v1925_v45, %v1191_v8  ;;  %v1194_v33 = vmul.f32 %v1919_v43, %v1093_v17  ;;  %v1085_v34 = vadd.f32 %v1914_v35, %v1084_v30 }
 0x288   : > { %v1600_v36 = vpop.f32.mrf.mxu0 }
 0x289   : > { %1296 = vst [vmem:[%s1937_s26 + $0x50] sm:$0xff] %v1264_v31  ;;  %v1262_v37 = vmax.f32 %v1230_v32, 0.0  ;;  %v1233_v38 = vadd.f32 %v1925_v45, %v1194_v33  ;;  %v1192_v39 = vmul.f32 %v1919_v43, %v1085_v34  ;;  %v1106_v40 = vadd.f32 %v1600_v36, %v1914_v35 }
 0x28a   : > { %v1097_v26 = vpop.f32.mrf.mxu0 }
 0x28b   : > { %1294 = vst [vmem:[%s1937_s26 + $0x40] sm:$0xff] %v1262_v37  ;;  %v1265_v41 = vmax.f32 %v1233_v38, 0.0  ;;  %v1231_v42 = vadd.f32 %v1925_v45, %v1192_v39  ;;  %v1197_v56 = vmul.f32 %v1919_v43, %v1106_v40  ;;  %v1098_v46 = vadd.f32 %v1914_v35, %v1097_v26 }
 0x28c   : > { %v1601_v47 = vpop.f32.mrf.mxu0 }
 0x28d   : > { %1297 = vst [vmem:[%s1937_s26 + $0x58] sm:$0xff] %v1265_v41  ;;  %v1263_v48 = vmax.f32 %v1231_v42, 0.0  ;;  %v1236_v49 = vadd.f32 %v1925_v45, %v1197_v56  ;;  %v1195_v50 = vmul.f32 %v1919_v43, %v1098_v46  ;;  %v1109_v51 = vadd.f32 %v1601_v47, %v1914_v35 }
 0x28e   : > { %v1100_v52 = vpop.f32.mrf.mxu0 }
 0x28f   : > { %1295 = vst [vmem:[%s1937_s26 + $0x48] sm:$0xff] %v1263_v48  ;;  %v1268_v44 = vmax.f32 %v1236_v49, 0.0  ;;  %v1234_v53 = vadd.f32 %v1925_v45, %v1195_v50  ;;  %v1198_v4 = vmul.f32 %v1919_v43, %v1109_v51  ;;  %v1101_v54 = vadd.f32 %v1914_v35, %v1100_v52 }
 0x290   : > { %v1604_v55 = vpop.f32.mrf.mxu0 }
 0x291   : > { %1300 = vst [vmem:[%s1937_s26 + $0x70] sm:$0xff] %v1268_v44  ;;  %v1266_v57 = vmax.f32 %v1234_v53, 0.0  ;;  %v1237_v58 = vadd.f32 %v1925_v45, %v1198_v4  ;;  %v1196_v59 = vmul.f32 %v1919_v43, %v1101_v54  ;;  %v1122_v60 = vadd.f32 %v1604_v55, %v1914_v35 }
 0x292   : > { %v1113_v61 = vpop.f32.mrf.mxu0 }
 0x293   : > { %1298 = vst [vmem:[%s1937_s26 + $0x60] sm:$0xff] %v1266_v57  ;;  %v1269_v62 = vmax.f32 %v1237_v58, 0.0  ;;  %v1235_v63 = vadd.f32 %v1925_v45, %v1196_v59  ;;  %v1201_v0 = vmul.f32 %v1919_v43, %v1122_v60  ;;  %v1114_v1 = vadd.f32 %v1914_v35, %v1113_v61 }
 0x294   : > { %v1605_v2 = vpop.f32.mrf.mxu0 }
 0x295   : > { %1301 = vst [vmem:[%s1937_s26 + $0x78] sm:$0xff] %v1269_v62  ;;  %v1267_v3 = vmax.f32 %v1235_v63, 0.0  ;;  %v1240_v5 = vadd.f32 %v1925_v45, %v1201_v0  ;;  %v1199_v6 = vmul.f32 %v1919_v43, %v1114_v1  ;;  %v1125_v7 = vadd.f32 %v1605_v2, %v1914_v35 }
 0x296   : > { %v1116_v9 = vpop.f32.mrf.mxu0 }
 0x297   : > { %1299 = vst [vmem:[%s1937_s26 + $0x68] sm:$0xff] %v1267_v3  ;;  %v1272_v10 = vmax.f32 %v1240_v5, 0.0  ;;  %v1238_v11 = vadd.f32 %v1925_v45, %v1199_v6  ;;  %v1202_v12 = vmul.f32 %v1919_v43, %v1125_v7  ;;  %v1117_v13 = vadd.f32 %v1914_v35, %v1116_v9 }
 0x298   : > { %v1608_v14 = vpop.f32.mrf.mxu0 }
 0x299   : > { %1304 = vst [vmem:[%s1937_s26 + $0x90] sm:$0xff] %v1272_v10  ;;  %v1270_v15 = vmax.f32 %v1238_v11, 0.0  ;;  %v1241_v16 = vadd.f32 %v1925_v45, %v1202_v12  ;;  %v1200_v18 = vmul.f32 %v1919_v43, %v1117_v13  ;;  %v1138_v19 = vadd.f32 %v1608_v14, %v1914_v35 }
 0x29a   : > { %v1129_v20 = vpop.f32.mrf.mxu0 }
 0x29b   : > { %1302 = vst [vmem:[%s1937_s26 + $0x80] sm:$0xff] %v1270_v15  ;;  %v1273_v21 = vmax.f32 %v1241_v16, 0.0  ;;  %v1239_v22 = vadd.f32 %v1925_v45, %v1200_v18  ;;  %v1205_v23 = vmul.f32 %v1919_v43, %v1138_v19  ;;  %v1130_v24 = vadd.f32 %v1914_v35, %v1129_v20 }
 0x29c   : > { %v1609_v25 = vpop.f32.mrf.mxu0 }
 0x29d   : > { %1305 = vst [vmem:[%s1937_s26 + $0x98] sm:$0xff] %v1273_v21  ;;  %v1271_v27 = vmax.f32 %v1239_v22, 0.0  ;;  %v1244_v28 = vadd.f32 %v1925_v45, %v1205_v23  ;;  %v1203_v29 = vmul.f32 %v1919_v43, %v1130_v24  ;;  %v1141_v8 = vadd.f32 %v1609_v25, %v1914_v35 }
 0x29e   : > { %v1132_v17 = vpop.f32.mrf.mxu0 }
 0x29f   : > { %1303 = vst [vmem:[%s1937_s26 + $0x88] sm:$0xff] %v1271_v27  ;;  %v1276_v30 = vmax.f32 %v1244_v28, 0.0  ;;  %v1242_v31 = vadd.f32 %v1925_v45, %v1203_v29  ;;  %v1206_v32 = vmul.f32 %v1919_v43, %v1141_v8  ;;  %v1133_v33 = vadd.f32 %v1914_v35, %v1132_v17 }
 0x2a0   : > { %v1612_v34 = vpop.f32.mrf.mxu0 }
 0x2a1   : > { %1308 = vst [vmem:[%s1937_s26 + $0xb0] sm:$0xff] %v1276_v30  ;;  %v1274_v36 = vmax.f32 %v1242_v31, 0.0  ;;  %v1245_v37 = vadd.f32 %v1925_v45, %v1206_v32  ;;  %v1204_v38 = vmul.f32 %v1919_v43, %v1133_v33  ;;  %v1154_v39 = vadd.f32 %v1612_v34, %v1914_v35 }
 0x2a2   : > { %v1145_v40 = vpop.f32.mrf.mxu0 }
 0x2a3   : > { %1306 = vst [vmem:[%s1937_s26 + $0xa0] sm:$0xff] %v1274_v36  ;;  %v1277_v26 = vmax.f32 %v1245_v37, 0.0  ;;  %v1243_v41 = vadd.f32 %v1925_v45, %v1204_v38  ;;  %v1209_v42 = vmul.f32 %v1919_v43, %v1154_v39  ;;  %v1146_v56 = vadd.f32 %v1914_v35, %v1145_v40 }
 0x2a4   : > { %v1613_v46 = vpop.f32.mrf.mxu0 }
 0x2a5   : > { %1309 = vst [vmem:[%s1937_s26 + $0xb8] sm:$0xff] %v1277_v26  ;;  %v1275_v47 = vmax.f32 %v1243_v41, 0.0  ;;  %v1248_v48 = vadd.f32 %v1925_v45, %v1209_v42  ;;  %v1207_v49 = vmul.f32 %v1919_v43, %v1146_v56  ;;  %v1157_v50 = vadd.f32 %v1613_v46, %v1914_v35 }
 0x2a6   : > { %v1148_v51 = vpop.f32.mrf.mxu0 }
 0x2a7   : > { %1307 = vst [vmem:[%s1937_s26 + $0xa8] sm:$0xff] %v1275_v47  ;;  %v1280_v52 = vmax.f32 %v1248_v48, 0.0  ;;  %v1246_v44 = vadd.f32 %v1925_v45, %v1207_v49  ;;  %v1210_v53 = vmul.f32 %v1919_v43, %v1157_v50  ;;  %v1149_v4 = vadd.f32 %v1914_v35, %v1148_v51 }
 0x2a8   : > { %v1616_v54 = vpop.f32.mrf.mxu0 }
 0x2a9   : > { %1312 = vst [vmem:[%s1937_s26 + $0xd0] sm:$0xff] %v1280_v52  ;;  %v1278_v55 = vmax.f32 %v1246_v44, 0.0  ;;  %v1249_v57 = vadd.f32 %v1925_v45, %v1210_v53  ;;  %v1208_v58 = vmul.f32 %v1919_v43, %v1149_v4  ;;  %v1170_v59 = vadd.f32 %v1616_v54, %v1914_v35 }
 0x2aa   : > { %v1161_v60 = vpop.f32.mrf.mxu0 }
 0x2ab   : > { %1310 = vst [vmem:[%s1937_s26 + $0xc0] sm:$0xff] %v1278_v55  ;;  %v1281_v61 = vmax.f32 %v1249_v57, 0.0  ;;  %v1247_v62 = vadd.f32 %v1925_v45, %v1208_v58  ;;  %v1213_v63 = vmul.f32 %v1919_v43, %v1170_v59  ;;  %v1162_v0 = vadd.f32 %v1914_v35, %v1161_v60 }
 0x2ac   : > { %v1617_v1 = vpop.f32.mrf.mxu0 }
 0x2ad   : > { %1313 = vst [vmem:[%s1937_s26 + $0xd8] sm:$0xff] %v1281_v61  ;;  %v1279_v2 = vmax.f32 %v1247_v62, 0.0  ;;  %v1252_v3 = vadd.f32 %v1925_v45, %v1213_v63  ;;  %v1211_v5 = vmul.f32 %v1919_v43, %v1162_v0  ;;  %v1173_v6 = vadd.f32 %v1617_v1, %v1914_v35 }
 0x2ae   : > { %v1164_v7 = vpop.f32.mrf.mxu0 }
 0x2af   : > { %1311 = vst [vmem:[%s1937_s26 + $0xc8] sm:$0xff] %v1279_v2  ;;  %v1284_v9 = vmax.f32 %v1252_v3, 0.0  ;;  %v1250_v10 = vadd.f32 %v1925_v45, %v1211_v5  ;;  %v1214_v11 = vmul.f32 %v1919_v43, %v1173_v6  ;;  %v1165_v12 = vadd.f32 %v1914_v35, %v1164_v7 }
 0x2b1   : > { %1316 = vst [vmem:[%s1937_s26 + $0xf0] sm:$0xff] %v1284_v9  ;;  %v1282_v13 = vmax.f32 %v1250_v10, 0.0  ;;  %v1253_v14 = vadd.f32 %v1925_v45, %v1214_v11  ;;  %v1212_v15 = vmul.f32 %v1919_v43, %v1165_v12 }
 0x2b3   : > { %1314 = vst [vmem:[%s1937_s26 + $0xe0] sm:$0xff] %v1282_v13  ;;  %v1285_v16 = vmax.f32 %v1253_v14, 0.0  ;;  %v1251_v18 = vadd.f32 %v1925_v45, %v1212_v15 }
 0x2b5   : > { %1317 = vst [vmem:[%s1937_s26 + $0xf8] sm:$0xff] %v1285_v16  ;;  %v1283_v19 = vmax.f32 %v1251_v18, 0.0 }
 0x2b7   : > { %1315 = vst [vmem:[%s1937_s26 + $0xe8] sm:$0xff] %v1283_v19 }
 0x2b8 PF: > { %s19_s30 = sadd.s32 1, %s1652_s30  }
 0x2b9   : > { %p16_p4 = scmp.ge.s32.totalorder %s19_s30, 4  }
 0x2bb   :  { %18 = sbr.rel (!%p16_p4) target bundleno = 1 (0x1), region = 86 }

// kernel: protonet_forward.6
= control target key start
LH: loop header
LB: loop body
LE: loop exit
PB: predicated region body
PF: predicated region fallthrough
CT: control target
= control target key end

     0   :  { %s2069_s27 = smov 0   ;;  %s2588_s0 = inlined_call_operand.vmem [shape: f32[512,9], index: 0, kind: input, shape index: {}]   ;;  %s2589_s1 = inlined_call_operand.vmem [shape: bf16[9,128], index: 1, kind: input, shape index: {}]   ;;  %s2590_s2 = inlined_call_operand.vmem [shape: f32[1,128], index: 2, kind: input, shape index: {}]   ;;  %s2591_s3 = inlined_call_operand.vmem [shape: bf16[128,128], index: 3, kind: input, shape index: {}]   ;;  %s2592_s4 = inlined_call_operand.vmem [shape: f32[1,128], index: 4, kind: input, shape index: {}]   ;;  %s2593_s5 = inlined_call_operand.vmem [shape: bf16[128,128], index: 5, kind: input, shape index: {}]   ;;  %s2594_s6 = inlined_call_operand.vmem [shape: f32[1,128], index: 6, kind: input, shape index: {}]   ;;  %s2595_s7 = inlined_call_operand.vmem [shape: f32[2,1,128], index: 7, kind: output, shape index: {0}]   ;;  %s2596_s8 = inlined_call_operand.vmem [shape: f32[2,1,128], index: 8, kind: output, shape index: {1}]  }
   0x1 LB: > { %s2075_s28 = sadd.s32 4294967295, %s2019_s27   ;;  %p1598_p0 = scmp.ge.s32.totalorder %s2019_s27, 1  ;;  %s2019_s27 = sphi %s2069_s27, %s19_s27  }
   0x2   : > { %p266_p1 = scmp.lt.s32.totalorder %s2019_s27, 3 }
   0x4   : > { %p267_p2 = pnand %p1598_p0, %p266_p1 }
   0x5   : > { %p307_p3 = scmp.lt.s32.totalorder (!%p267_p2), %s2075_s28, 1  ;;  %s1599_s9 = sshll.u32 (!%p267_p2), %s2075_s28, 5 }
   0x6   : > { %270 = sbr.rel (%p267_p2) target bundleno = 1161 (0x489), region = 48  ;;  %p302_p4 = scmp.lt.s32.totalorder (!%p267_p2), %s1599_s9, 63 }
   0x7   : > { %p1637_p5 = scmp.ge.s32.totalorder (!%p267_p2), %s2075_s28, 1 }
   0xb   : > { %vm459_vm0 = vcmask 1043456   ;;  %v1996_v0 = vld [vmem:[%s2589_s1] sm:$0x1f]   ;;  %vm460_vm1 = vcmask 1044480   ;;  %s308_s10 = scalar_select %p307_p3, %s2075_s28, 1  ;;  %v2021_v1 = vmov 65535  }
   0xc   : > { %v461_v2 = vsel %vm459_vm0, 4294967295, %v2021_v1  ;;  %v1997_v4 = vld [vmem:[%s2591_s3 + $0x38] sm:$0xff]   ;;  %s2598_s9 = smov (!%p302_p4, %s1599_s9), 63  ;;  %vm410_vm2 = vcmask 72704   ;;  %v1998_v27 = vld [vmem:[%s2591_s3 + $0x30] sm:$0xff]   ;;  %v1999_v33 = vld [vmem:[%s2591_s3 + $0x28] sm:$0xff]  }
   0xd   : > { %v462_v3 = vsel %vm460_vm1, %v461_v2, 0  ;;  %s2091_s15 = scalar_lea.vmem %s2595_s7, %s308_s10  ;;  %s2096_s18 = scalar_lea.vmem %s2596_s8, %s308_s10  ;;  %v2000_v41 = vld [vmem:[%s2591_s3 + $0x20] sm:$0xff]   ;;  %v2001_v49 = vld [vmem:[%s2591_s3 + $0x18] sm:$0xff]   ;;  %v2002_v58 = vld [vmem:[%s2591_s3 + $0x10] sm:$0xff]  }
   0xe   : > { %v464_v5 = vand.u32 %v1996_v0, %v462_v3  ;;  %s1600_s19 = sshll.u32 %s2598_s9, 3  ;;  %v2003_v59 = vld [vmem:[%s2591_s3 + $0x8] sm:$0xff]   ;;  %v2004_v60 = vld [vmem:[%s2591_s3] sm:$0xff]   ;;  %v2005_v61 = vld [vmem:[%s2593_s5 + $0x38] sm:$0xff]  }
   0xf   : > { %s2101_s22 = scalar_lea.vmem %s2588_s0, %s1600_s19  ;;  %v2006_v62 = vld [vmem:[%s2593_s5 + $0x30] sm:$0xff]   ;;  %v2007_v63 = vld [vmem:[%s2593_s5 + $0x28] sm:$0xff]   ;;  %v2008_v0 = vld [vmem:[%s2593_s5 + $0x20] sm:$0xff]  }
  0x10   : > { %1853 = vmatprep.subr.bf16.mxu0 %v464_v5  ;;  %1983 = vmatprep.subr.bf16.mxu1 %v464_v5  ;;  %v314_v6 = vld [vmem:[%s2101_s22] sm:$0xff]  ;;  %v315_v7 = vld [vmem:[%s2101_s22 + $0x8] sm:$0xff]  ;;  %v316_v8 = vld [vmem:[%s2101_s22 + $0x10] sm:$0xff] }
  0x11   : > { %1854 = vmatpush3.bf16.msra.mxu0 %v464_v5  ;;  %1984 = vmatpush3.bf16.msra.mxu1 %v464_v5  ;;  %v383_v9 = vpack.c.bf16 %v315_v7, %v314_v6  ;;  %v317_v10 = vld [vmem:[%s2101_s22 + $0x18] sm:$0xff]  ;;  %v318_v11 = vld [vmem:[%s2101_s22 + $0x20] sm:$0xff]  ;;  %v319_v12 = vld [vmem:[%s2101_s22 + $0x28] sm:$0xff] }
  0x12   : > { %1887 = vmatprep.subr.bf16.mxu1 %v1997_v4  ;;  %v384_v13 = vpack.c.bf16 %v317_v10, %v316_v8  ;;  %v385_v14 = vpack.c.bf16 %v319_v12, %v318_v11  ;;  %v320_v15 = vld [vmem:[%s2101_s22 + $0x30] sm:$0xff]  ;;  %v321_v16 = vld [vmem:[%s2101_s22 + $0x38] sm:$0xff]  ;;  %v322_v17 = vld [vmem:[%s2101_s22 + $0x40] sm:$0xff]  ;;  %1935 = vmatprep.subr.bf16.mxu0 %v2005_v61 }
  0x13   : > { %1855 = vmatprep.mubr.msk.bf16.mxu0 %vm410_vm2, %v383_v9  ;;  %v323_v18 = vld [vmem:[%s2101_s22 + $0x48] sm:$0xff]  ;;  %v330_v19 = vld [vmem:[%s2101_s22 + $0x80] sm:$0xff]  ;;  %v332_v22 = vld [vmem:[%s2101_s22 + $0x90] sm:$0xff]  ;;  %v386_v28 = vpack.c.bf16 %v321_v16, %v320_v15 }
  0x14   : > { %1856 = vmatmul.mubr.msk.bf16.vlgmr.msra.gmra.mxu0 %vm410_vm2, %v384_v13  ;;  %v331_v20 = vld [vmem:[%s2101_s22 + $0x88] sm:$0xff]  ;;  %v333_v23 = vld [vmem:[%s2101_s22 + $0x98] sm:$0xff]  ;;  %v334_v24 = vld [vmem:[%s2101_s22 + $0xa0] sm:$0xff]  ;;  %v387_v30 = vpack.c.bf16 %v323_v18, %v322_v17 }
  0x15   : > { %1859 = vmatprep.mubr.msk.bf16.mxu0 %vm410_vm2, %v385_v14  ;;  %v391_v21 = vpack.c.bf16 %v331_v20, %v330_v19  ;;  %v392_v25 = vpack.c.bf16 %v333_v23, %v332_v22  ;;  %v335_v26 = vld [vmem:[%s2101_s22 + $0xa8] sm:$0xff]  ;;  %v336_v31 = vld [vmem:[%s2101_s22 + $0xb0] sm:$0xff]  ;;  %v337_v32 = vld [vmem:[%s2101_s22 + $0xb8] sm:$0xff]  ;;  %1936 = vmatpush3.bf16.msra.mxu0 %v2005_v61 }
  0x16   : > { %v393_v29 = vpack.c.bf16 %v335_v26, %v334_v24  ;;  %v338_v34 = vld [vmem:[%s2101_s22 + $0xc0] sm:$0xff]  ;;  %v339_v35 = vld [vmem:[%s2101_s22 + $0xc8] sm:$0xff]  ;;  %v324_v36 = vld [vmem:[%s2101_s22 + $0x50] sm:$0xff]  ;;  %v394_v40 = vpack.c.bf16 %v337_v32, %v336_v31  ;;  %1937 = vmatprep.subr.bf16.mxu0 %v2006_v62 }
  0x17   : > { %1871 = vmatprep.mubr.msk.bf16.mxu1 %vm410_vm2, %v391_v21  ;;  %v325_v37 = vld [vmem:[%s2101_s22 + $0x58] sm:$0xff]  ;;  %v326_v38 = vld [vmem:[%s2101_s22 + $0x60] sm:$0xff]  ;;  %v327_v39 = vld [vmem:[%s2101_s22 + $0x68] sm:$0xff]  ;;  %v395_v42 = vpack.c.bf16 %v339_v35, %v338_v34 }
  0x18   : > { %1872 = vmatmul.mubr.msk.bf16.vlgmr.msra.gmra.mxu1 %vm410_vm2, %v392_v25  ;;  %v388_v43 = vpack.c.bf16 %v325_v37, %v324_v36  ;;  %v389_v44 = vpack.c.bf16 %v327_v39, %v326_v38  ;;  %v340_v45 = vld [vmem:[%s2101_s22 + $0xd0] sm:$0xff]  ;;  %v341_v46 = vld [vmem:[%s2101_s22 + $0xd8] sm:$0xff]  ;;  %v342_v47 = vld [vmem:[%s2101_s22 + $0xe0] sm:$0xff] }
  0x19   : > { %1875 = vmatprep.mubr.msk.bf16.mxu1 %vm410_vm2, %v393_v29  ;;  %1888 = vmatpush3.bf16.msra.mxu1 %v1997_v4  ;;  %v343_v48 = vld [vmem:[%s2101_s22 + $0xe8] sm:$0xff]  ;;  %v328_v50 = vld [vmem:[%s2101_s22 + $0x70] sm:$0xff]  ;;  %v329_v51 = vld [vmem:[%s2101_s22 + $0x78] sm:$0xff]  ;;  %v396_v52 = vpack.c.bf16 %v341_v46, %v340_v45 }
  0x1a   : > { %1889 = vmatprep.subr.bf16.mxu1 %v1998_v27  ;;  %v397_v53 = vpack.c.bf16 %v343_v48, %v342_v47  ;;  %v390_v54 = vpack.c.bf16 %v329_v51, %v328_v50  ;;  %v344_v55 = vld [vmem:[%s2101_s22 + $0xf0] sm:$0xff]  ;;  %v345_v56 = vld [vmem:[%s2101_s22 + $0xf8] sm:$0xff]  ;;  %1938 = vmatpush3.bf16.msra.mxu0 %v2006_v62  ;;  %v2190_v4 = vld [vmem:[%s2590_s2] ss:$0 sm:$0xff] }
  0x1b   : > { %v398_v57 = vpack.c.bf16 %v345_v56, %v344_v55  ;;  %1939 = vmatprep.subr.bf16.mxu0 %v2007_v63  ;;  %v2009_v1 = vld [vmem:[%s2593_s5 + $0x18] sm:$0xff]  }
  0x1c   : > { %1860 = vmatmul.mubr.msk.bf16.gmra.mxu0 %vm410_vm2, %v386_v28 }
  0x1d   : > { %1863 = vmatprep.mubr.msk.bf16.mxu0 %vm410_vm2, %v387_v30  ;;  %1890 = vmatpush3.bf16.msra.mxu1 %v1998_v27 }
  0x1e   : > { %1891 = vmatprep.subr.bf16.mxu1 %v1999_v33  ;;  %1940 = vmatpush3.bf16.msra.mxu0 %v2007_v63 }
  0x1f   : > { %1941 = vmatprep.subr.bf16.mxu0 %v2008_v0 }
  0x20   : > { %1876 = vmatmul.mubr.msk.bf16.gmra.mxu1 %vm410_vm2, %v394_v40 }
  0x21   : > { %1879 = vmatprep.mubr.msk.bf16.mxu1 %vm410_vm2, %v395_v42  ;;  %1892 = vmatpush3.bf16.msra.mxu1 %v1999_v33 }
  0x22   : > { %1893 = vmatprep.subr.bf16.mxu1 %v2000_v41  ;;  %1942 = vmatpush3.bf16.msra.mxu0 %v2008_v0 }
  0x23   : > { %1943 = vmatprep.subr.bf16.mxu0 %v2009_v1 }
  0x24   : > { %1864 = vmatmul.mubr.msk.bf16.gmra.mxu0 %vm410_vm2, %v388_v43 }
  0x25   : > { %1867 = vmatprep.mubr.msk.bf16.mxu0 %vm410_vm2, %v389_v44  ;;  %1894 = vmatpush3.bf16.msra.mxu1 %v2000_v41 }
  0x26   : > { %1895 = vmatprep.subr.bf16.mxu1 %v2001_v49  ;;  %1944 = vmatpush3.bf16.msra.mxu0 %v2009_v1 }
  0x28   : > { %1880 = vmatmul.mubr.msk.bf16.gmra.mxu1 %vm410_vm2, %v396_v52 }
  0x29   : > { %1883 = vmatprep.mubr.msk.bf16.mxu1 %vm410_vm2, %v397_v53  ;;  %1896 = vmatpush3.bf16.msra.mxu1 %v2001_v49 }
  0x2a   : > { %1897 = vmatprep.subr.bf16.mxu1 %v2002_v58 }
  0x2c   : > { %1868 = vmatmul.mubr.msk.bf16.gmra.mxu0 %vm410_vm2, %v390_v54 }
  0x2d   : > { %1898 = vmatpush3.bf16.msra.mxu1 %v2002_v58 }
  0x2e   : > { %1899 = vmatprep.subr.bf16.mxu1 %v2003_v59 }
  0x30   : > { %1884 = vmatmul.mubr.msk.bf16.gmra.mxu1 %vm410_vm2, %v398_v57 }
  0x31   : > { %1900 = vmatpush3.bf16.msra.mxu1 %v2003_v59 }
  0x32   : > { %1901 = vmatprep.subr.bf16.mxu1 %v2004_v60 }
  0x35   : > { %1902 = vmatpush3.bf16.msra.mxu1 %v2004_v60 }
  0xd4   : > { %v1857_v2 = vpop.f32.mrf.mxu0 }
  0xd5   : > { %v509_v9 = vadd.f32 %v1857_v2, %v2190_v4 }
  0xd6   : > { %v500_v3 = vpop.f32.mrf.mxu0 }
  0xd7   : > { %v501_v6 = vadd.f32 %v2190_v4, %v500_v3  ;;  %v629_v18 = vmax.f32 %v509_v9, 0.0 }
  0xd8   : > { %v1858_v5 = vpop.f32.mrf.mxu0  ;;  %v2194_v8 = vpop.f32.mrf.mxu1 }
  0xd9   : > { %v512_v7 = vadd.f32 %v1858_v5, %v2190_v4  ;;  %v627_v15 = vmax.f32 %v501_v6, 0.0 }
  0xda   : > { %v503_v10 = vpop.f32.mrf.mxu0  ;;  %v564_v12 = vpop.f32.mrf.mxu1 }
  0xdb   : > { %v504_v11 = vadd.f32 %v2190_v4, %v503_v10  ;;  %v630_v13 = vmax.f32 %v512_v7, 0.0  ;;  %v565_v56 = vadd.f32 %v2190_v4, %v564_v12 }
  0xdc   : > { %v1861_v14 = vpop.f32.mrf.mxu0  ;;  %v2198_v17 = vpop.f32.mrf.mxu1 }
  0xdd   : > { %v628_v16 = vmax.f32 %v504_v11, 0.0  ;;  %v660_v22 = vpack.c.bf16 %v630_v13, %v629_v18  ;;  %v525_v27 = vadd.f32 %v1861_v14, %v2190_v4  ;;  %v643_v1 = vmax.f32 %v565_v56, 0.0  ;;  %v2251_v56 = vld [vmem:[%s2592_s4] ss:$0 sm:$0xff] }
  0xde   : > { %v516_v19 = vpop.f32.mrf.mxu0  ;;  %v567_v21 = vpop.f32.mrf.mxu1  ;;  %v576_v18 = vadd.f32 %v2198_v17, %v2190_v4 }
  0xdf   : > { %v659_v20 = vpack.c.bf16 %v628_v16, %v627_v15  ;;  %v517_v24 = vadd.f32 %v2190_v4, %v516_v19  ;;  %v633_v36 = vmax.f32 %v525_v27, 0.0  ;;  %v568_v57 = vadd.f32 %v2190_v4, %v567_v21 }
  0xe0   : > { %v1862_v23 = vpop.f32.mrf.mxu0  ;;  %v2202_v26 = vpop.f32.mrf.mxu1  ;;  %v573_v15 = vadd.f32 %v2194_v8, %v2190_v4 }
  0xe1   : > { %v528_v25 = vadd.f32 %v1862_v23, %v2190_v4  ;;  %1903 = vmatprep.mubr.bf16.mxu1 %v659_v20  ;;  %v631_v33 = vmax.f32 %v517_v24, 0.0  ;;  %v644_v3 = vmax.f32 %v568_v57, 0.0  ;;  %v646_v23 = vmax.f32 %v576_v18, 0.0 }
  0xe2   : > { %v519_v28 = vpop.f32.mrf.mxu0  ;;  %1904 = vmatmul.mubr.bf16.vlgmr.msra.gmra.mxu1 %v660_v22  ;;  %v580_v30 = vpop.f32.mrf.mxu1  ;;  %v645_v22 = vmax.f32 %v573_v15, 0.0  ;;  %v589_v8 = vadd.f32 %v2202_v26, %v2190_v4 }
  0xe3   : > { %v520_v29 = vadd.f32 %v2190_v4, %v519_v28  ;;  %v634_v31 = vmax.f32 %v528_v25, 0.0  ;;  %v667_v12 = vpack.c.bf16 %v644_v3, %v643_v1  ;;  %v581_v13 = vadd.f32 %v2190_v4, %v580_v30 }
  0xe4   : > { %v1865_v32 = vpop.f32.mrf.mxu0  ;;  %v2206_v35 = vpop.f32.mrf.mxu1 }
  0xe5   : > { %v632_v34 = vmax.f32 %v520_v29, 0.0  ;;  %v662_v40 = vpack.c.bf16 %v634_v31, %v633_v36  ;;  %v541_v45 = vadd.f32 %v1865_v32, %v2190_v4  ;;  %v647_v20 = vmax.f32 %v581_v13, 0.0 }
  0xe6   : > { %v532_v37 = vpop.f32.mrf.mxu0  ;;  %v583_v39 = vpop.f32.mrf.mxu1  ;;  %v668_v29 = vpack.c.bf16 %v646_v23, %v645_v22  ;;  %v592_v17 = vadd.f32 %v2206_v35, %v2190_v4 }
  0xe7   : > { %v661_v38 = vpack.c.bf16 %v632_v34, %v631_v33  ;;  %v533_v42 = vadd.f32 %v2190_v4, %v532_v37  ;;  %v637_v53 = vmax.f32 %v541_v45, 0.0  ;;  %v584_v14 = vadd.f32 %v2190_v4, %v583_v39 }
  0xe8   : > { %v1866_v41 = vpop.f32.mrf.mxu0  ;;  %v2210_v44 = vpop.f32.mrf.mxu1  ;;  %v649_v33 = vmax.f32 %v589_v8, 0.0  ;;  %v650_v34 = vmax.f32 %v592_v17, 0.0 }
  0xe9   : > { %v544_v43 = vadd.f32 %v1866_v41, %v2190_v4  ;;  %1907 = vmatprep.mubr.bf16.mxu1 %v661_v38  ;;  %v635_v51 = vmax.f32 %v533_v42, 0.0  ;;  %v648_v21 = vmax.f32 %v584_v14, 0.0  ;;  %v605_v26 = vadd.f32 %v2210_v44, %v2190_v4  ;;  %v2010_v44 = vld [vmem:[%s2593_s5 + $0x10] sm:$0xff]  }
  0xea   : > { %v535_v46 = vpop.f32.mrf.mxu0  ;;  %1908 = vmatmul.mubr.bf16.gmra.mxu1 %v662_v40  ;;  %v596_v50 = vpop.f32.mrf.mxu1  ;;  %v670_v40 = vpack.c.bf16 %v650_v34, %v649_v33  ;;  %1945 = vmatprep.subr.bf16.mxu0 %v2010_v44 }
  0xeb   : > { %v536_v47 = vadd.f32 %v2190_v4, %v535_v46  ;;  %v638_v48 = vmax.f32 %v544_v43, 0.0  ;;  %v669_v25 = vpack.c.bf16 %v648_v21, %v647_v20  ;;  %v597_v27 = vadd.f32 %v2190_v4, %v596_v50  ;;  %1946 = vmatpush3.bf16.msra.mxu0 %v2010_v44 }
  0xec   : > { %v1869_v49 = vpop.f32.mrf.mxu0  ;;  %v1882_v60 = vpop.f32.mrf.mxu1  ;;  %v653_v43 = vmax.f32 %v605_v26, 0.0 }
  0xed   : > { %v636_v52 = vmax.f32 %v536_v47, 0.0  ;;  %v664_v58 = vpack.c.bf16 %v638_v48, %v637_v53  ;;  %v557_v63 = vadd.f32 %v1869_v49, %v2190_v4  ;;  %v651_v31 = vmax.f32 %v597_v27, 0.0  ;;  %v2011_v53 = vld [vmem:[%s2593_s5 + $0x8] sm:$0xff]  }
  0xee   : > { %v548_v54 = vpop.f32.mrf.mxu0  ;;  %v599_v6 = vpop.f32.mrf.mxu1  ;;  %v608_v41 = vadd.f32 %v1882_v60, %v2190_v4  ;;  %1947 = vmatprep.subr.bf16.mxu0 %v2011_v53 }
  0xef   : > { %v663_v55 = vpack.c.bf16 %v636_v52, %v635_v51  ;;  %v549_v61 = vadd.f32 %v2190_v4, %v548_v54  ;;  %v641_v10 = vmax.f32 %v557_v63, 0.0  ;;  %v600_v28 = vadd.f32 %v2190_v4, %v599_v6  ;;  %1948 = vmatpush3.bf16.msra.mxu0 %v2011_v53 }
  0xf0   : > { %v1870_v59 = vpop.f32.mrf.mxu0  ;;  %v1885_v19 = vpop.f32.mrf.mxu1  ;;  %v654_v45 = vmax.f32 %v608_v41, 0.0 }
  0xf1   : > { %v560_v62 = vadd.f32 %v1870_v59, %v2190_v4  ;;  %1911 = vmatprep.mubr.bf16.mxu1 %v663_v55  ;;  %v639_v7 = vmax.f32 %v549_v61, 0.0  ;;  %v652_v32 = vmax.f32 %v600_v28, 0.0  ;;  %v621_v48 = vadd.f32 %v1885_v19, %v2190_v4 }
  0xf2   : > { %v551_v0 = vpop.f32.mrf.mxu0  ;;  %1912 = vmatmul.mubr.bf16.gmra.mxu1 %v664_v58  ;;  %v612_v24 = vpop.f32.mrf.mxu1  ;;  %v672_v47 = vpack.c.bf16 %v654_v45, %v653_v43 }
  0xf3   : > { %v552_v2 = vadd.f32 %v2190_v4, %v551_v0  ;;  %v642_v5 = vmax.f32 %v560_v62, 0.0  ;;  %v671_v37 = vpack.c.bf16 %v652_v32, %v651_v31  ;;  %v613_v38 = vadd.f32 %v2190_v4, %v612_v24 }
  0xf4   : > { %v1886_v30 = vpop.f32.mrf.mxu1  ;;  %v657_v50 = vmax.f32 %v621_v48, 0.0 }
  0xf5   : > { %v640_v9 = vmax.f32 %v552_v2, 0.0  ;;  %v666_v16 = vpack.c.bf16 %v642_v5, %v641_v10  ;;  %v655_v35 = vmax.f32 %v613_v38, 0.0  ;;  %v624_v49 = vadd.f32 %v1886_v30, %v2190_v4 }
  0xf6   : > { %v615_v36 = vpop.f32.mrf.mxu1 }
  0xf7   : > { %v665_v11 = vpack.c.bf16 %v640_v9, %v639_v7  ;;  %v616_v39 = vadd.f32 %v2190_v4, %v615_v36  ;;  %v658_v51 = vmax.f32 %v624_v49, 0.0  ;;  %v2012_v4 = vld [vmem:[%s2593_s5] sm:$0xff]  }
  0xf8   : > { %1949 = vmatprep.subr.bf16.mxu0 %v2012_v4 }
  0xf9   : > { %1915 = vmatprep.mubr.bf16.mxu1 %v665_v11  ;;  %v656_v42 = vmax.f32 %v616_v39, 0.0  ;;  %v674_v52 = vpack.c.bf16 %v658_v51, %v657_v50  ;;  %1950 = vmatpush3.bf16.msra.mxu0 %v2012_v4 }
  0xfa   : > { %1916 = vmatmul.mubr.bf16.gmra.mxu1 %v666_v16 }
  0xfb   : > { %1919 = vmatprep.mubr.bf16.mxu1 %v667_v12  ;;  %v673_v46 = vpack.c.bf16 %v656_v42, %v655_v35 }
 0x102   : > { %1920 = vmatmul.mubr.bf16.gmra.mxu1 %v668_v29 }
 0x103   : > { %1923 = vmatprep.mubr.bf16.mxu1 %v669_v25 }
 0x10a   : > { %1924 = vmatmul.mubr.bf16.gmra.mxu1 %v670_v40 }
 0x10b   : > { %1927 = vmatprep.mubr.bf16.mxu1 %v671_v37 }
 0x112   : > { %1928 = vmatmul.mubr.bf16.gmra.mxu1 %v672_v47 }
 0x113   : > { %1931 = vmatprep.mubr.bf16.mxu1 %v673_v46 }
 0x11a   : > { %1932 = vmatmul.mubr.bf16.gmra.mxu1 %v674_v52 }
 0x1a2   : > { %v1905_v54 = vpop.f32.mrf.mxu1 }
 0x1a3   : > { %v772_v60 = vadd.f32 %v1905_v54, %v2251_v56 }
 0x1a4   : > { %v763_v55 = vpop.f32.mrf.mxu1 }
 0x1a5   : > { %v764_v58 = vadd.f32 %v2251_v56, %v763_v55  ;;  %v892_v3 = vmax.f32 %v772_v60, 0.0 }
 0x1a6   : > { %v1906_v57 = vpop.f32.mrf.mxu1 }
 0x1a7   : > { %v775_v59 = vadd.f32 %v1906_v57, %v2251_v56  ;;  %v890_v1 = vmax.f32 %v764_v58, 0.0 }
 0x1a8   : > { %v766_v61 = vpop.f32.mrf.mxu1 }
 0x1a9   : > { %v767_v62 = vadd.f32 %v2251_v56, %v766_v61  ;;  %v893_v63 = vmax.f32 %v775_v59, 0.0 }
 0x1aa   : > { %v1909_v0 = vpop.f32.mrf.mxu1 }
 0x1ab   : > { %v891_v2 = vmax.f32 %v767_v62, 0.0  ;;  %v923_v7 = vpack.c.bf16 %v893_v63, %v892_v3  ;;  %v788_v12 = vadd.f32 %v1909_v0, %v2251_v56 }
 0x1ac   : > { %v779_v5 = vpop.f32.mrf.mxu1 }
 0x1ad   : > { %v922_v6 = vpack.c.bf16 %v891_v2, %v890_v1  ;;  %v780_v10 = vadd.f32 %v2251_v56, %v779_v5  ;;  %v896_v20 = vmax.f32 %v788_v12, 0.0 }
 0x1ae   : > { %v1910_v9 = vpop.f32.mrf.mxu1 }
 0x1af   : > { %v791_v11 = vadd.f32 %v1910_v9, %v2251_v56  ;;  %1951 = vmatprep.mubr.bf16.mxu0 %v922_v6  ;;  %v894_v18 = vmax.f32 %v780_v10, 0.0 }
 0x1b0   : > { %v782_v13 = vpop.f32.mrf.mxu1  ;;  %1952 = vmatmul.mubr.bf16.vlgmr.msra.gmra.mxu0 %v923_v7 }
 0x1b1   : > { %v783_v14 = vadd.f32 %v2251_v56, %v782_v13  ;;  %v897_v15 = vmax.f32 %v791_v11, 0.0 }
 0x1b2   : > { %v1913_v16 = vpop.f32.mrf.mxu1 }
 0x1b3   : > { %v895_v19 = vmax.f32 %v783_v14, 0.0  ;;  %v925_v23 = vpack.c.bf16 %v897_v15, %v896_v20  ;;  %v804_v28 = vadd.f32 %v1913_v16, %v2251_v56 }
 0x1b4   : > { %v795_v21 = vpop.f32.mrf.mxu1 }
 0x1b5   : > { %v924_v22 = vpack.c.bf16 %v895_v19, %v894_v18  ;;  %v796_v25 = vadd.f32 %v2251_v56, %v795_v21  ;;  %v900_v33 = vmax.f32 %v804_v28, 0.0 }
 0x1b6   : > { %v1914_v24 = vpop.f32.mrf.mxu1 }
 0x1b7   : > { %v807_v27 = vadd.f32 %v1914_v24, %v2251_v56  ;;  %1955 = vmatprep.mubr.bf16.mxu0 %v924_v22  ;;  %v898_v31 = vmax.f32 %v796_v25, 0.0 }
 0x1b8   : > { %v798_v29 = vpop.f32.mrf.mxu1  ;;  %1956 = vmatmul.mubr.bf16.gmra.mxu0 %v925_v23 }
 0x1b9   : > { %v799_v8 = vadd.f32 %v2251_v56, %v798_v29  ;;  %v901_v17 = vmax.f32 %v807_v27, 0.0 }
 0x1ba   : > { %v1917_v30 = vpop.f32.mrf.mxu1 }
 0x1bb   : > { %v899_v32 = vmax.f32 %v799_v8, 0.0  ;;  %v927_v37 = vpack.c.bf16 %v901_v17, %v900_v33  ;;  %v820_v26 = vadd.f32 %v1917_v30, %v2251_v56 }
 0x1bc   : > { %v811_v34 = vpop.f32.mrf.mxu1 }
 0x1bd   : > { %v926_v36 = vpack.c.bf16 %v899_v32, %v898_v31  ;;  %v812_v39 = vadd.f32 %v2251_v56, %v811_v34  ;;  %v904_v47 = vmax.f32 %v820_v26, 0.0 }
 0x1be   : > { %v1918_v38 = vpop.f32.mrf.mxu1 }
 0x1bf   : > { %v823_v40 = vadd.f32 %v1918_v38, %v2251_v56  ;;  %1959 = vmatprep.mubr.bf16.mxu0 %v926_v36  ;;  %v902_v45 = vmax.f32 %v812_v39, 0.0 }
 0x1c0   : > { %v814_v41 = vpop.f32.mrf.mxu1  ;;  %1960 = vmatmul.mubr.bf16.gmra.mxu0 %v927_v37 }
 0x1c1   : > { %v815_v35 = vadd.f32 %v2251_v56, %v814_v41  ;;  %v905_v42 = vmax.f32 %v823_v40, 0.0 }
 0x1c2   : > { %v1921_v43 = vpop.f32.mrf.mxu1 }
 0x1c3   : > { %v903_v46 = vmax.f32 %v815_v35, 0.0  ;;  %v929_v50 = vpack.c.bf16 %v905_v42, %v904_v47  ;;  %v836_v53 = vadd.f32 %v1921_v43, %v2251_v56  ;;  %v2288_v35 = vld [vmem:[%s2594_s6] ss:$0 sm:$0xff] }
 0x1c4   : > { %v827_v48 = vpop.f32.mrf.mxu1 }
 0x1c5   : > { %v928_v49 = vpack.c.bf16 %v903_v46, %v902_v45  ;;  %v828_v52 = vadd.f32 %v2251_v56, %v827_v48  ;;  %v908_v60 = vmax.f32 %v836_v53, 0.0 }
 0x1c6   : > { %v1922_v51 = vpop.f32.mrf.mxu1 }
 0x1c7   : > { %v839_v44 = vadd.f32 %v1922_v51, %v2251_v56  ;;  %1963 = vmatprep.mubr.bf16.mxu0 %v928_v49  ;;  %v906_v58 = vmax.f32 %v828_v52, 0.0 }
 0x1c8   : > { %v830_v4 = vpop.f32.mrf.mxu1  ;;  %1964 = vmatmul.mubr.bf16.gmra.mxu0 %v929_v50 }
 0x1c9   : > { %v831_v54 = vadd.f32 %v2251_v56, %v830_v4  ;;  %v909_v55 = vmax.f32 %v839_v44, 0.0 }
 0x1ca   : > { %v1925_v57 = vpop.f32.mrf.mxu1 }
 0x1cb   : > { %v907_v59 = vmax.f32 %v831_v54, 0.0  ;;  %v931_v63 = vpack.c.bf16 %v909_v55, %v908_v60  ;;  %v852_v3 = vadd.f32 %v1925_v57, %v2251_v56 }
 0x1cc   : > { %v843_v61 = vpop.f32.mrf.mxu1 }
 0x1cd   : > { %v930_v62 = vpack.c.bf16 %v907_v59, %v906_v58  ;;  %v844_v1 = vadd.f32 %v2251_v56, %v843_v61  ;;  %v912_v12 = vmax.f32 %v852_v3, 0.0 }
 0x1ce   : > { %v1926_v0 = vpop.f32.mrf.mxu1 }
 0x1cf   : > { %v855_v2 = vadd.f32 %v1926_v0, %v2251_v56  ;;  %1967 = vmatprep.mubr.bf16.mxu0 %v930_v62  ;;  %v910_v10 = vmax.f32 %v844_v1, 0.0 }
 0x1d0   : > { %v846_v5 = vpop.f32.mrf.mxu1  ;;  %1968 = vmatmul.mubr.bf16.gmra.mxu0 %v931_v63 }
 0x1d1   : > { %v847_v6 = vadd.f32 %v2251_v56, %v846_v5  ;;  %v913_v7 = vmax.f32 %v855_v2, 0.0 }
 0x1d2   : > { %v1929_v9 = vpop.f32.mrf.mxu1 }
 0x1d3   : > { %v911_v11 = vmax.f32 %v847_v6, 0.0  ;;  %v933_v15 = vpack.c.bf16 %v913_v7, %v912_v12  ;;  %v868_v20 = vadd.f32 %v1929_v9, %v2251_v56 }
 0x1d4   : > { %v859_v13 = vpop.f32.mrf.mxu1 }
 0x1d5   : > { %v932_v14 = vpack.c.bf16 %v911_v11, %v910_v10  ;;  %v860_v18 = vadd.f32 %v2251_v56, %v859_v13  ;;  %v916_v28 = vmax.f32 %v868_v20, 0.0 }
 0x1d6   : > { %v1930_v16 = vpop.f32.mrf.mxu1 }
 0x1d7   : > { %v871_v19 = vadd.f32 %v1930_v16, %v2251_v56  ;;  %1971 = vmatprep.mubr.bf16.mxu0 %v932_v14  ;;  %v914_v25 = vmax.f32 %v860_v18, 0.0 }
 0x1d8   : > { %v862_v21 = vpop.f32.mrf.mxu1  ;;  %1972 = vmatmul.mubr.bf16.gmra.mxu0 %v933_v15 }
 0x1d9   : > { %v863_v22 = vadd.f32 %v2251_v56, %v862_v21  ;;  %v917_v23 = vmax.f32 %v871_v19, 0.0 }
 0x1da   : > { %v1933_v24 = vpop.f32.mrf.mxu1 }
 0x1db   : > { %v915_v27 = vmax.f32 %v863_v22, 0.0  ;;  %v935_v17 = vpack.c.bf16 %v917_v23, %v916_v28  ;;  %v884_v33 = vadd.f32 %v1933_v24, %v2251_v56 }
 0x1dc   : > { %v875_v29 = vpop.f32.mrf.mxu1 }
 0x1dd   : > { %v934_v8 = vpack.c.bf16 %v915_v27, %v914_v25  ;;  %v876_v31 = vadd.f32 %v2251_v56, %v875_v29  ;;  %v920_v40 = vmax.f32 %v884_v33, 0.0 }
 0x1de   : > { %v1934_v30 = vpop.f32.mrf.mxu1 }
 0x1df   : > { %v887_v32 = vadd.f32 %v1934_v30, %v2251_v56  ;;  %1975 = vmatprep.mubr.bf16.mxu0 %v934_v8  ;;  %v918_v38 = vmax.f32 %v876_v31, 0.0 }
 0x1e0   : > { %v878_v34 = vpop.f32.mrf.mxu1  ;;  %1976 = vmatmul.mubr.bf16.gmra.mxu0 %v935_v17 }
 0x1e1   : > { %v879_v36 = vadd.f32 %v2251_v56, %v878_v34  ;;  %v921_v37 = vmax.f32 %v887_v32, 0.0 }
 0x1e3   : > { %v919_v39 = vmax.f32 %v879_v36, 0.0  ;;  %v937_v41 = vpack.c.bf16 %v921_v37, %v920_v40 }
 0x1e5   : > { %v936_v26 = vpack.c.bf16 %v919_v39, %v918_v38 }
 0x1e7   : > { %1979 = vmatprep.mubr.bf16.mxu0 %v936_v26 }
 0x1e8   : > { %1980 = vmatmul.mubr.bf16.gmra.mxu0 %v937_v41 }
 0x270   : > { %v1953_v42 = vpop.f32.mrf.mxu0 }
 0x271   : > { %v2291_v43 = vadd.f32 %v1953_v42, %v2288_v35 }
 0x272   : > { %v1026_v45 = vpop.f32.mrf.mxu0 }
 0x273   : > { %v2294_v56 = vadd.f32 %v2288_v35, %v1026_v45 }
 0x274   : > { %v1954_v46 = vpop.f32.mrf.mxu0 }
 0x275   : > { %v2297_v47 = vadd.f32 %v1954_v46, %v2288_v35 }
 0x276   : > { %v1029_v48 = vpop.f32.mrf.mxu0 }
 0x277   : > { %v2300_v49 = vadd.f32 %v2288_v35, %v1029_v48 }
 0x278   : > { %v1957_v50 = vpop.f32.mrf.mxu0 }
 0x279   : > { %v2303_v51 = vadd.f32 %v1957_v50, %v2288_v35 }
 0x27a   : > { %v1042_v52 = vpop.f32.mrf.mxu0 }
 0x27b   : > { %v2306_v44 = vadd.f32 %v2288_v35, %v1042_v52 }
 0x27c   : > { %v1958_v53 = vpop.f32.mrf.mxu0 }
 0x27d   : > { %v2309_v4 = vadd.f32 %v1958_v53, %v2288_v35 }
 0x27e   : > { %v1045_v54 = vpop.f32.mrf.mxu0 }
 0x27f   : > { %v2312_v55 = vadd.f32 %v2288_v35, %v1045_v54 }
 0x280   : > { %v1961_v57 = vpop.f32.mrf.mxu0 }
 0x281   : > { %v2315_v58 = vadd.f32 %v1961_v57, %v2288_v35 }
 0x282   : > { %v1058_v59 = vpop.f32.mrf.mxu0 }
 0x283   : > { %v2318_v60 = vadd.f32 %v2288_v35, %v1058_v59 }
 0x284   : > { %v1962_v61 = vpop.f32.mrf.mxu0 }
 0x285   : > { %v2321_v62 = vadd.f32 %v1962_v61, %v2288_v35 }
 0x286   : > { %v1061_v63 = vpop.f32.mrf.mxu0 }
 0x287   : > { %v2324_v0 = vadd.f32 %v2288_v35, %v1061_v63 }
 0x288   : > { %v1965_v1 = vpop.f32.mrf.mxu0 }
 0x289   : > { %v2327_v2 = vadd.f32 %v1965_v1, %v2288_v35 }
 0x28a   : > { %v1074_v3 = vpop.f32.mrf.mxu0 }
 0x28b   : > { %v2330_v5 = vadd.f32 %v2288_v35, %v1074_v3 }
 0x28c   : > { %v1966_v6 = vpop.f32.mrf.mxu0 }
 0x28d   : > { %v2333_v7 = vadd.f32 %v1966_v6, %v2288_v35 }
 0x28e   : > { %v1077_v9 = vpop.f32.mrf.mxu0 }
 0x28f   : > { %v2336_v10 = vadd.f32 %v2288_v35, %v1077_v9 }
 0x290   : > { %v1969_v11 = vpop.f32.mrf.mxu0 }
 0x291   : > { %v2339_v12 = vadd.f32 %v1969_v11, %v2288_v35 }
 0x292   : > { %v1090_v13 = vpop.f32.mrf.mxu0 }
 0x293   : > { %v2342_v14 = vadd.f32 %v2288_v35, %v1090_v13 }
 0x294   : > { %v1970_v15 = vpop.f32.mrf.mxu0 }
 0x295   : > { %v2345_v16 = vadd.f32 %v1970_v15, %v2288_v35 }
 0x296   : > { %v1093_v18 = vpop.f32.mrf.mxu0 }
 0x297   : > { %v2348_v19 = vadd.f32 %v2288_v35, %v1093_v18 }
 0x298   : > { %v1973_v20 = vpop.f32.mrf.mxu0 }
 0x299   : > { %v2351_v21 = vadd.f32 %v1973_v20, %v2288_v35 }
 0x29a   : > { %v1106_v22 = vpop.f32.mrf.mxu0 }
 0x29b   : > { %v2354_v23 = vadd.f32 %v2288_v35, %v1106_v22 }
 0x29c   : > { %v1974_v24 = vpop.f32.mrf.mxu0 }
 0x29d   : > { %v2357_v25 = vadd.f32 %v1974_v24, %v2288_v35 }
 0x29e   : > { %v1109_v27 = vpop.f32.mrf.mxu0 }
 0x29f   : > { %v2360_v28 = vadd.f32 %v2288_v35, %v1109_v27 }
 0x2a0   : > { %v1977_v29 = vpop.f32.mrf.mxu0 }
 0x2a1   : > { %v2363_v8 = vadd.f32 %v1977_v29, %v2288_v35 }
 0x2a2   : > { %v1122_v17 = vpop.f32.mrf.mxu0 }
 0x2a3   : > { %v2366_v30 = vadd.f32 %v2288_v35, %v1122_v17 }
 0x2a4   : > { %v1978_v31 = vpop.f32.mrf.mxu0 }
 0x2a5   : > { %v2369_v32 = vadd.f32 %v1978_v31, %v2288_v35 }
 0x2a6   : > { %v1125_v33 = vpop.f32.mrf.mxu0 }
 0x2a7   : > { %v2372_v34 = vadd.f32 %v2288_v35, %v1125_v33 }
 0x2a8   : > { %v1981_v36 = vpop.f32.mrf.mxu0 }
 0x2a9   : > { %v2375_v37 = vadd.f32 %v1981_v36, %v2288_v35 }
 0x2aa   : > { %v1138_v38 = vpop.f32.mrf.mxu0 }
 0x2ab   : > { %v2378_v39 = vadd.f32 %v2288_v35, %v1138_v38  ;;  %1156 = sbr.rel (%p1637_p5) target bundleno = 921 (0x399), region = 52 }
 0x2ac   : > { %v1982_v40 = vpop.f32.mrf.mxu0 }
 0x2ad   : > { %v2381_v26 = vadd.f32 %v1982_v40, %v2288_v35 }
 0x2ae   : > { %v1141_v41 = vpop.f32.mrf.mxu0 }
 0x2af   : > { %v2384_v42 = vadd.f32 %v2288_v35, %v1141_v41 }
 0x2b0   : > { %1713 = vmatprep.subr.mxu0 %v2381_v26  ;;  %v1259_v45 = vmul.f32 %v2381_v26, %v2381_v26  ;;  %v1243_v46 = vmul.f32 %v2333_v7, %v2333_v7  ;;  %v1258_v48 = vmul.f32 %v2375_v37, %v2375_v37  ;;  %v1242_v35 = vmul.f32 %v2327_v2, %v2327_v2 }
 0x2b1   : > { %1714 = vmatpush3.msra.mxu0 %v2333_v7  ;;  %v1257_v50 = vmul.f32 %v2384_v42, %v2384_v42  ;;  %v1241_v52 = vmul.f32 %v2336_v10, %v2336_v10  ;;  %v1256_v53 = vmul.f32 %v2378_v39, %v2378_v39  ;;  %v1240_v54 = vmul.f32 %v2330_v5, %v2330_v5 }
 0x2b2   : > { %1715 = vmatprep.subr.mxu0 %v2375_v37  ;;  %1748 = vmatprep.subr.mxu1 %v1259_v45  ;;  %v1255_v57 = vmul.f32 %v2369_v32, %v2369_v32  ;;  %v1239_v59 = vmul.f32 %v2321_v62, %v2321_v62  ;;  %v1254_v61 = vmul.f32 %v2363_v8, %v2363_v8  ;;  %v2022_v45 = vmov 1.0  }
 0x2b3   : > { %1716 = vmatpush3.msra.mxu0 %v2327_v2  ;;  %1749 = vmatpush3.msra.mxu1 %v1243_v46  ;;  %v1238_v63 = vmul.f32 %v2315_v58, %v2315_v58  ;;  %v1253_v1 = vmul.f32 %v2372_v34, %v2372_v34  ;;  %v1237_v3 = vmul.f32 %v2324_v0, %v2324_v0 }
 0x2b4   : > { %1717 = vmatprep.subr.mxu0 %v2384_v42  ;;  %1750 = vmatprep.subr.mxu1 %v1258_v48  ;;  %v1252_v6 = vmul.f32 %v2366_v30, %v2366_v30  ;;  %v1236_v9 = vmul.f32 %v2318_v60, %v2318_v60  ;;  %v1251_v11 = vmul.f32 %v2357_v25, %v2357_v25 }
 0x2b5   : > { %1718 = vmatpush3.msra.mxu0 %v2336_v10  ;;  %1751 = vmatpush3.msra.mxu1 %v1242_v35  ;;  %v1235_v13 = vmul.f32 %v2309_v4, %v2309_v4  ;;  %v1250_v15 = vmul.f32 %v2351_v21, %v2351_v21  ;;  %v1234_v18 = vmul.f32 %v2303_v51, %v2303_v51 }
 0x2b6   : > { %1719 = vmatprep.subr.mxu0 %v2378_v39  ;;  %1752 = vmatprep.subr.mxu1 %v1257_v50  ;;  %v1249_v20 = vmul.f32 %v2360_v28, %v2360_v28  ;;  %v1233_v22 = vmul.f32 %v2312_v55, %v2312_v55  ;;  %v1248_v24 = vmul.f32 %v2354_v23, %v2354_v23 }
 0x2b7   : > { %1720 = vmatpush3.msra.mxu0 %v2330_v5  ;;  %1753 = vmatpush3.msra.mxu1 %v1241_v52  ;;  %v1232_v27 = vmul.f32 %v2306_v44, %v2306_v44  ;;  %v1247_v29 = vmul.f32 %v2345_v16, %v2345_v16  ;;  %v1231_v17 = vmul.f32 %v2297_v47, %v2297_v47 }
 0x2b8   : > { %1721 = vmatprep.subr.mxu0 %v2369_v32  ;;  %1754 = vmatprep.subr.mxu1 %v1256_v53  ;;  %v1246_v31 = vmul.f32 %v2339_v12, %v2339_v12  ;;  %v1230_v33 = vmul.f32 %v2291_v43, %v2291_v43  ;;  %v1245_v36 = vmul.f32 %v2348_v19, %v2348_v19 }
 0x2b9   : > { %1722 = vmatpush3.msra.mxu0 %v2321_v62  ;;  %1755 = vmatpush3.msra.mxu1 %v1240_v54  ;;  %v1229_v38 = vmul.f32 %v2300_v49, %v2300_v49  ;;  %v1244_v40 = vmul.f32 %v2342_v14, %v2342_v14  ;;  %v1228_v41 = vmul.f32 %v2294_v56, %v2294_v56 }
 0x2ba   : > { %1723 = vmatprep.subr.mxu0 %v2363_v8  ;;  %1756 = vmatprep.subr.mxu1 %v1255_v57 }
 0x2bb   : > { %1724 = vmatpush3.msra.mxu0 %v2315_v58  ;;  %1757 = vmatpush3.msra.mxu1 %v1239_v59 }
 0x2bc   : > { %1725 = vmatprep.subr.mxu0 %v2372_v34  ;;  %1758 = vmatprep.subr.mxu1 %v1254_v61 }
 0x2bd   : > { %1726 = vmatpush3.msra.mxu0 %v2324_v0  ;;  %1759 = vmatpush3.msra.mxu1 %v1238_v63 }
 0x2be   : > { %1727 = vmatprep.subr.mxu0 %v2366_v30  ;;  %1760 = vmatprep.subr.mxu1 %v1253_v1 }
 0x2bf   : > { %1728 = vmatpush3.msra.mxu0 %v2318_v60  ;;  %1761 = vmatpush3.msra.mxu1 %v1237_v3 }
 0x2c0   : > { %1729 = vmatprep.subr.mxu0 %v2357_v25  ;;  %1762 = vmatprep.subr.mxu1 %v1252_v6 }
 0x2c1   : > { %1730 = vmatpush3.msra.mxu0 %v2309_v4  ;;  %1763 = vmatpush3.msra.mxu1 %v1236_v9 }
 0x2c2   : > { %1731 = vmatprep.subr.mxu0 %v2351_v21  ;;  %1764 = vmatprep.subr.mxu1 %v1251_v11 }
 0x2c3   : > { %1732 = vmatpush3.msra.mxu0 %v2303_v51  ;;  %1765 = vmatpush3.msra.mxu1 %v1235_v13 }
 0x2c4   : > { %1733 = vmatprep.subr.mxu0 %v2360_v28  ;;  %1766 = vmatprep.subr.mxu1 %v1250_v15 }
 0x2c5   : > { %1734 = vmatpush3.msra.mxu0 %v2312_v55  ;;  %1767 = vmatpush3.msra.mxu1 %v1234_v18 }
 0x2c6   : > { %1735 = vmatprep.subr.mxu0 %v2354_v23  ;;  %1768 = vmatprep.subr.mxu1 %v1249_v20 }
 0x2c7   : > { %1736 = vmatpush3.msra.mxu0 %v2306_v44  ;;  %1769 = vmatpush3.msra.mxu1 %v1233_v22 }
 0x2c8   : > { %1737 = vmatprep.subr.mxu0 %v2345_v16  ;;  %1770 = vmatprep.subr.mxu1 %v1248_v24 }
 0x2c9   : > { %1738 = vmatpush3.msra.mxu0 %v2297_v47  ;;  %1771 = vmatpush3.msra.mxu1 %v1232_v27 }
 0x2ca   : > { %1739 = vmatprep.subr.mxu0 %v2339_v12  ;;  %1772 = vmatprep.subr.mxu1 %v1247_v29 }
 0x2cb   : > { %1740 = vmatpush3.msra.mxu0 %v2291_v43  ;;  %1773 = vmatpush3.msra.mxu1 %v1231_v17 }
 0x2cc   : > { %1741 = vmatprep.subr.mxu0 %v2348_v19  ;;  %1774 = vmatprep.subr.mxu1 %v1246_v31 }
 0x2cd   : > { %1742 = vmatpush3.msra.mxu0 %v2300_v49  ;;  %1775 = vmatpush3.msra.mxu1 %v1230_v33 }
 0x2ce   : > { %1743 = vmatprep.subr.mxu0 %v2342_v14  ;;  %1776 = vmatprep.subr.mxu1 %v1245_v36 }
 0x2cf   : > { %1744 = vmatpush3.msra.mxu0 %v2294_v56  ;;  %1221 = vmatprep.mubr.f32.mxu0 %v2022_v45 }
 0x2d0   : > { %1777 = vmatpush3.msra.mxu1 %v1229_v38  ;;  %1222 = vmatmul.mubr.f32.vlgmr.msra.gmra.mxu0 %v2022_v45 }
 0x2d1   : > { %1778 = vmatprep.subr.mxu1 %v1244_v40  ;;  %1324 = vmatprep.mubr.f32.mxu1 %v2022_v45 }
 0x2d2   : > { %1779 = vmatpush3.msra.mxu1 %v1228_v41 }
 0x2d3   : > { %1325 = vmatmul.mubr.f32.vlgmr.msra.gmra.mxu1 %v2022_v45 }
 0x390   : > { %v1745_v46 = vpop.f32.mrf.mxu0 }
 0x392   : > { %v1746_v48 = vpop.f32.mrf.mxu0 }
 0x393   : > { %v1747_v35 = vadd.f32 %v1746_v48, %v1745_v46  ;;  %v1780_v50 = vpop.f32.mrf.mxu1 }
 0x395   : > { %1227 = vst [vmem:[%s2091_s15] sm:$0x1] %v1747_v35  ;;  %v1781_v52 = vpop.f32.mrf.mxu1 }
 0x396   : > { %v1782_v53 = vadd.f32 %v1781_v52, %v1780_v50 }
 0x398   : > { %1330 = vst [vmem:[%s2096_s18] sm:$0x1] %v1782_v53 }
 0x399 PF: > { %p1638_p6 = scmp.ne.s32.totalorder %s2075_s28, 1 }
 0x39a   : > { %s1639_s23 = sshll.u32 (!%p1638_p6), %s2075_s28, 8 }
 0x39b   : > { %1334 = sbr.rel (%p1638_p6) target bundleno = 1161 (0x489), region = 56 }
 0x3a0   : > { %1783 = vmatprep.subr.mxu0 %v2381_v26  ;;  %v1450_v54 = vmul.f32 %v2381_v26, %v2381_v26  ;;  %v1434_v57 = vmul.f32 %v2333_v7, %v2333_v7  ;;  %v1449_v59 = vmul.f32 %v2375_v37, %v2375_v37  ;;  %v1433_v61 = vmul.f32 %v2327_v2, %v2327_v2 }
 0x3a1   : > { %1784 = vmatpush3.msra.mxu0 %v2333_v7  ;;  %v1448_v63 = vmul.f32 %v2384_v42, %v2384_v42  ;;  %v1432_v26 = vmul.f32 %v2336_v10, %v2336_v10  ;;  %v1447_v7 = vmul.f32 %v2378_v39, %v2378_v39  ;;  %v1335_v1 = vlaneseq }
 0x3a2   : > { %1785 = vmatprep.subr.mxu0 %v2375_v37  ;;  %1818 = vmatprep.subr.mxu1 %v1450_v54  ;;  %v1431_v37 = vmul.f32 %v2330_v5, %v2330_v5  ;;  %v1339_v9 = vstv %s1639_s23 }
 0x3a3   : > { %1786 = vmatpush3.msra.mxu0 %v2327_v2  ;;  %1819 = vmatpush3.msra.mxu1 %v1434_v57  ;;  %v1446_v2 = vmul.f32 %v2369_v32, %v2369_v32  ;;  %v1336_v3 = vand.u32 127, %v1335_v1 }
 0x3a4   : > { %1787 = vmatprep.subr.mxu0 %v2384_v42  ;;  %1820 = vmatprep.subr.mxu1 %v1449_v59  ;;  %v1430_v42 = vmul.f32 %v2321_v62, %v2321_v62 }
 0x3a5   : > { %1788 = vmatpush3.msra.mxu0 %v2336_v10  ;;  %1821 = vmatpush3.msra.mxu1 %v1433_v61  ;;  %v1445_v10 = vmul.f32 %v2363_v8, %v2363_v8  ;;  %v1337_v6 = vadd.s32 128, %v1336_v3  ;;  %v1340_v13 = vadd.s32 %v1339_v9, %v1336_v3 }
 0x3a6   : > { %1789 = vmatprep.subr.mxu0 %v2378_v39  ;;  %1822 = vmatprep.subr.mxu1 %v1448_v63  ;;  %v1429_v39 = vmul.f32 %v2315_v58, %v2315_v58 }
 0x3a7   : > { %1790 = vmatpush3.msra.mxu0 %v2330_v5  ;;  %1823 = vmatpush3.msra.mxu1 %v1432_v26  ;;  %v1444_v5 = vmul.f32 %v2372_v34, %v2372_v34  ;;  %v1341_v11 = vadd.s32 %v1339_v9, %v1337_v6  ;;  %vm1342_vm4 = vcmp.lt.s32.totalorder %v1340_v13, 512 }
 0x3a8   : > { %1791 = vmatprep.subr.mxu0 %v2369_v32  ;;  %1824 = vmatprep.subr.mxu1 %v1447_v7  ;;  %v1428_v32 = vmul.f32 %v2324_v0, %v2324_v0 }
 0x3a9   : > { %1792 = vmatpush3.msra.mxu0 %v2321_v62  ;;  %1825 = vmatpush3.msra.mxu1 %v1431_v37  ;;  %v1443_v62 = vmul.f32 %v2366_v30, %v2366_v30  ;;  %vm1343_vm3 = vcmp.lt.s32.totalorder %v1341_v11, 512 }
 0x3aa   : > { %1793 = vmatprep.subr.mxu0 %v2363_v8  ;;  %1826 = vmatprep.subr.mxu1 %v1446_v2  ;;  %v1427_v8 = vmul.f32 %v2318_v60, %v2318_v60 }
 0x3ab   : > { %1794 = vmatpush3.msra.mxu0 %v2315_v58  ;;  %1827 = vmatpush3.msra.mxu1 %v1430_v42  ;;  %v1442_v58 = vmul.f32 %v2357_v25, %v2357_v25 }
 0x3ac   : > { %1795 = vmatprep.subr.mxu0 %v2372_v34  ;;  %1828 = vmatprep.subr.mxu1 %v1445_v10  ;;  %v1426_v34 = vmul.f32 %v2309_v4, %v2309_v4 }
 0x3ad   : > { %1796 = vmatpush3.msra.mxu0 %v2324_v0  ;;  %1829 = vmatpush3.msra.mxu1 %v1429_v39  ;;  %v1441_v0 = vmul.f32 %v2351_v21, %v2351_v21 }
 0x3ae   : > { %1797 = vmatprep.subr.mxu0 %v2366_v30  ;;  %1830 = vmatprep.subr.mxu1 %v1444_v5  ;;  %v1425_v30 = vmul.f32 %v2303_v51, %v2303_v51 }
 0x3af   : > { %1798 = vmatpush3.msra.mxu0 %v2318_v60  ;;  %1831 = vmatpush3.msra.mxu1 %v1428_v32  ;;  %v1440_v60 = vmul.f32 %v2360_v28, %v2360_v28 }
 0x3b0   : > { %1799 = vmatprep.subr.mxu0 %v2357_v25  ;;  %1832 = vmatprep.subr.mxu1 %v1443_v62  ;;  %v1424_v25 = vmul.f32 %v2312_v55, %v2312_v55 }
 0x3b1   : > { %1800 = vmatpush3.msra.mxu0 %v2309_v4  ;;  %1833 = vmatpush3.msra.mxu1 %v1427_v8  ;;  %v1439_v4 = vmul.f32 %v2354_v23, %v2354_v23 }
 0x3b2   : > { %1801 = vmatprep.subr.mxu0 %v2351_v21  ;;  %1834 = vmatprep.subr.mxu1 %v1442_v58  ;;  %v1423_v21 = vmul.f32 %v2306_v44, %v2306_v44 }
 0x3b3   : > { %1802 = vmatpush3.msra.mxu0 %v2303_v51  ;;  %1835 = vmatpush3.msra.mxu1 %v1426_v34  ;;  %v1438_v51 = vmul.f32 %v2345_v16, %v2345_v16 }
 0x3b4   : > { %1803 = vmatprep.subr.mxu0 %v2360_v28  ;;  %1836 = vmatprep.subr.mxu1 %v1441_v0  ;;  %v1422_v28 = vmul.f32 %v2297_v47, %v2297_v47 }
 0x3b5   : > { %1804 = vmatpush3.msra.mxu0 %v2312_v55  ;;  %1837 = vmatpush3.msra.mxu1 %v1425_v30  ;;  %v1437_v55 = vmul.f32 %v2339_v12, %v2339_v12 }
 0x3b6   : > { %1805 = vmatprep.subr.mxu0 %v2354_v23  ;;  %1838 = vmatprep.subr.mxu1 %v1440_v60  ;;  %v1421_v23 = vmul.f32 %v2291_v43, %v2291_v43 }
 0x3b7   : > { %1806 = vmatpush3.msra.mxu0 %v2306_v44  ;;  %1839 = vmatpush3.msra.mxu1 %v1424_v25  ;;  %v1436_v44 = vmul.f32 %v2348_v19, %v2348_v19 }
 0x3b8   : > { %1807 = vmatprep.subr.mxu0 %v2345_v16  ;;  %1840 = vmatprep.subr.mxu1 %v1439_v4  ;;  %v2023_v16 = vmov 1.0  }
 0x3b9   : > { %1808 = vmatpush3.msra.mxu0 %v2297_v47  ;;  %1841 = vmatpush3.msra.mxu1 %v1423_v21  ;;  %v1420_v47 = vmul.f32 %v2300_v49, %v2300_v49 }
 0x3ba   : > { %1809 = vmatprep.subr.mxu0 %v2339_v12  ;;  %1842 = vmatprep.subr.mxu1 %v1438_v51  ;;  %v1435_v12 = vmul.f32 %v2342_v14, %v2342_v14 }
 0x3bb   : > { %1810 = vmatpush3.msra.mxu0 %v2291_v43  ;;  %1843 = vmatpush3.msra.mxu1 %v1422_v28  ;;  %v1419_v43 = vmul.f32 %v2294_v56, %v2294_v56 }
 0x3bc   : > { %1811 = vmatprep.subr.mxu0 %v2348_v19  ;;  %1844 = vmatprep.subr.mxu1 %v1437_v55 }
 0x3bd   : > { %1812 = vmatpush3.msra.mxu0 %v2300_v49  ;;  %1845 = vmatpush3.msra.mxu1 %v1421_v23 }
 0x3be   : > { %1813 = vmatprep.subr.mxu0 %v2342_v14  ;;  %1846 = vmatprep.subr.mxu1 %v1436_v44 }
 0x3bf   : > { %1814 = vmatpush3.msra.mxu0 %v2294_v56  ;;  %1642 = vmatprep.mubr.msk.f32.mxu0 %vm1343_vm3, %v2023_v16 }
 0x3c0   : > { %1847 = vmatpush3.msra.mxu1 %v1420_v47  ;;  %1643 = vmatmul.mubr.msk.f32.vlgmr.msra.gmra.mxu0 %vm1342_vm4, %v2023_v16 }
 0x3c1   : > { %1848 = vmatprep.subr.mxu1 %v1435_v12  ;;  %1644 = vmatprep.mubr.msk.f32.mxu1 %vm1343_vm3, %v2023_v16 }
 0x3c2   : > { %1849 = vmatpush3.msra.mxu1 %v1419_v43 }
 0x3c3   : > { %1645 = vmatmul.mubr.msk.f32.vlgmr.msra.gmra.mxu1 %vm1342_vm4, %v2023_v16 }
 0x480   : > { %v1815_v49 = vpop.f32.mrf.mxu0 }
 0x482   : > { %v1816_v19 = vpop.f32.mrf.mxu0 }
 0x483   : > { %v1817_v15 = vadd.f32 %v1816_v19, %v1815_v49  ;;  %v1850_v14 = vpop.f32.mrf.mxu1 }
 0x485   : > { %1418 = vst [vmem:[%s2091_s15] sm:$0x1] %v1817_v15  ;;  %v1851_v18 = vpop.f32.mrf.mxu1 }
 0x486   : > { %v1852_v20 = vadd.f32 %v1851_v18, %v1850_v14 }
 0x488   : > { %1521 = vst [vmem:[%s2096_s18] sm:$0x1] %v1852_v20 }
 0x489 PF: > { %s19_s27 = sadd.s32 1, %s2019_s27  }
 0x48a   : > { %p16_p7 = scmp.ge.s32.totalorder %s19_s27, 4  }
 0x48c   :  { %18 = sbr.rel (!%p16_p7) target bundleno = 1 (0x1), region = 98 }

// kernel: protonet_forward.9
= control target key start
LH: loop header
LB: loop body
LE: loop exit
PB: predicated region body
PF: predicated region fallthrough
CT: control target
= control target key end

     0   :  { %s1271_s30 = smov 0   ;;  %s1459_s0 = inlined_call_operand.vmem [shape: f32[256,9], index: 0, kind: input, shape index: {}]   ;;  %s1460_s1 = inlined_call_operand.vmem [shape: bf16[9,128], index: 1, kind: input, shape index: {}]   ;;  %s1461_s2 = inlined_call_operand.vmem [shape: f32[1,128], index: 2, kind: input, shape index: {}]   ;;  %s1462_s3 = inlined_call_operand.vmem [shape: bf16[128,128], index: 3, kind: input, shape index: {}]   ;;  %s1463_s4 = inlined_call_operand.vmem [shape: f32[1,128], index: 4, kind: input, shape index: {}]   ;;  %s1464_s5 = inlined_call_operand.vmem [shape: bf16[128,128], index: 5, kind: input, shape index: {}]   ;;  %s1465_s6 = inlined_call_operand.vmem [shape: f32[1,128], index: 6, kind: input, shape index: {}]   ;;  %s1466_s7 = inlined_call_operand.vmem [shape: f32[1,128], index: 7, kind: input, shape index: {}]   ;;  %s1467_s8 = inlined_call_operand.vmem [shape: f32[1,128], index: 8, kind: input, shape index: {}]   ;;  %s1468_s9 = inlined_call_operand.vmem [shape: f32[256,128], index: 9, kind: output, shape index: {}]  }
   0x1 LB: > { %s1022_s10 = sadd.s32 4294967295, %s1218_s30   ;;  %p1026_p0 = scmp.ge.s32.totalorder %s1218_s30, 1  ;;  %s1218_s30 = sphi %s1271_s30, %s19_s30  }
   0x2   : > { %p288_p1 = scmp.lt.s32.totalorder %s1218_s30, 3 }
   0x4   : > { %p289_p2 = pnand %p1026_p0, %p288_p1 }
   0x5   : > { %s1027_s13 = sshll.u32 (!%p289_p2), %s1022_s10, 4 }
   0x6   : > { %292 = sbr.rel (%p289_p2) target bundleno = 664 (0x298), region = 56  ;;  %p325_p3 = scmp.lt.s32.totalorder (!%p289_p2), %s1027_s13, 31 }
   0xb   : > { %v1195_v0 = vld [vmem:[%s1460_s1] sm:$0x1f]   ;;  %vm434_vm0 = vcmask 1043456   ;;  %vm435_vm1 = vcmask 1044480   ;;  %v1196_v1 = vld [vmem:[%s1462_s3 + $0x38] sm:$0xff]   ;;  %v1220_v2 = vmov 65535  }
   0xc   : > { %v436_v3 = vsel %vm434_vm0, 4294967295, %v1220_v2  ;;  %1122 = vmatprep.subr.bf16.mxu1 %v1196_v1  ;;  %v1197_v5 = vld [vmem:[%s1462_s3 + $0x30] sm:$0xff]   ;;  %s1470_s13 = smov (!%p325_p3, %s1027_s13), 31  ;;  %v1198_v7 = vld [vmem:[%s1462_s3 + $0x28] sm:$0xff]   ;;  %v1199_v8 = vld [vmem:[%s1462_s3 + $0x20] sm:$0xff]   ;;  %vm409_vm2 = vcmask 72704  }
   0xd   : > { %v437_v4 = vsel %vm435_vm1, %v436_v3, 0  ;;  %1123 = vmatpush3.bf16.msra.mxu1 %v1196_v1  ;;  %s1028_s20 = sshll.u32 %s1470_s13, 3  ;;  %v1200_v18 = vld [vmem:[%s1462_s3 + $0x18] sm:$0xff]   ;;  %v1201_v34 = vld [vmem:[%s1462_s3 + $0x10] sm:$0xff]   ;;  %v1202_v35 = vld [vmem:[%s1462_s3 + $0x8] sm:$0xff]  }
   0xe   : > { %v439_v6 = vand.u32 %v1195_v0, %v437_v4  ;;  %1124 = vmatprep.subr.bf16.mxu1 %v1197_v5  ;;  %s1299_s23 = scalar_lea.vmem %s1459_s0, %s1028_s20  ;;  %v1203_v36 = vld [vmem:[%s1462_s3] sm:$0xff]   ;;  %v1204_v37 = vld [vmem:[%s1464_s5 + $0x38] sm:$0xff]   ;;  %v1205_v38 = vld [vmem:[%s1464_s5 + $0x30] sm:$0xff]   ;;  %s1396_s26 = scalar_lea.vmem %s1468_s9, %s1028_s20 }
   0xf   : > { %v337_v9 = vld [vmem:[%s1299_s23] sm:$0xff]  ;;  %v338_v10 = vld [vmem:[%s1299_s23 + $0x8] sm:$0xff]  ;;  %v339_v11 = vld [vmem:[%s1299_s23 + $0x10] sm:$0xff] }
  0x10   : > { %1104 = vmatprep.subr.bf16.mxu0 %v439_v6  ;;  %v390_v12 = vpack.c.bf16 %v338_v10, %v337_v9  ;;  %v340_v13 = vld [vmem:[%s1299_s23 + $0x18] sm:$0xff]  ;;  %v341_v14 = vld [vmem:[%s1299_s23 + $0x20] sm:$0xff]  ;;  %v342_v15 = vld [vmem:[%s1299_s23 + $0x28] sm:$0xff] }
  0x11   : > { %1105 = vmatpush3.bf16.msra.mxu0 %v439_v6  ;;  %1125 = vmatpush3.bf16.msra.mxu1 %v1197_v5  ;;  %v391_v16 = vpack.c.bf16 %v340_v13, %v339_v11  ;;  %v392_v17 = vpack.c.bf16 %v342_v15, %v341_v14  ;;  %v343_v19 = vld [vmem:[%s1299_s23 + $0x30] sm:$0xff]  ;;  %v344_v20 = vld [vmem:[%s1299_s23 + $0x38] sm:$0xff]  ;;  %v345_v21 = vld [vmem:[%s1299_s23 + $0x40] sm:$0xff] }
  0x12   : > { %1126 = vmatprep.subr.bf16.mxu1 %v1198_v7  ;;  %1106 = vmatprep.mubr.msk.bf16.mxu0 %vm409_vm2, %v390_v12  ;;  %v346_v22 = vld [vmem:[%s1299_s23 + $0x48] sm:$0xff]  ;;  %v393_v23 = vpack.c.bf16 %v344_v20, %v343_v19  ;;  %v347_v25 = vld [vmem:[%s1299_s23 + $0x50] sm:$0xff]  ;;  %v348_v26 = vld [vmem:[%s1299_s23 + $0x58] sm:$0xff] }
  0x13   : > { %v394_v24 = vpack.c.bf16 %v346_v22, %v345_v21  ;;  %v349_v27 = vld [vmem:[%s1299_s23 + $0x60] sm:$0xff]  ;;  %v350_v28 = vld [vmem:[%s1299_s23 + $0x68] sm:$0xff]  ;;  %v395_v29 = vpack.c.bf16 %v348_v26, %v347_v25  ;;  %v351_v31 = vld [vmem:[%s1299_s23 + $0x70] sm:$0xff]  ;;  %1154 = vmatprep.subr.bf16.mxu0 %v1204_v37 }
  0x14   : > { %1107 = vmatmul.mubr.msk.bf16.vlgmr.msra.gmra.mxu0 %vm409_vm2, %v391_v16  ;;  %v396_v30 = vpack.c.bf16 %v350_v28, %v349_v27  ;;  %v352_v32 = vld [vmem:[%s1299_s23 + $0x78] sm:$0xff]  ;;  %v1206_v39 = vld [vmem:[%s1464_s5 + $0x28] sm:$0xff]   ;;  %v1207_v40 = vld [vmem:[%s1464_s5 + $0x20] sm:$0xff]  }
  0x15   : > { %1127 = vmatpush3.bf16.msra.mxu1 %v1198_v7  ;;  %1110 = vmatprep.mubr.msk.bf16.mxu0 %vm409_vm2, %v392_v17  ;;  %v397_v33 = vpack.c.bf16 %v352_v32, %v351_v31  ;;  %v1208_v41 = vld [vmem:[%s1464_s5 + $0x18] sm:$0xff]   ;;  %v1031_v44 = vld [vmem:[%s1461_s2] ss:$0 sm:$0xff] }
  0x16   : > { %1128 = vmatprep.subr.bf16.mxu1 %v1199_v8  ;;  %1155 = vmatpush3.bf16.msra.mxu0 %v1204_v37  ;;  %v1211_v37 = vld [vmem:[%s1464_s5] sm:$0xff]  }
  0x17   : > { %1156 = vmatprep.subr.bf16.mxu0 %v1205_v38 }
  0x19   : > { %1129 = vmatpush3.bf16.msra.mxu1 %v1199_v8 }
  0x1a   : > { %1130 = vmatprep.subr.bf16.mxu1 %v1200_v18  ;;  %1157 = vmatpush3.bf16.msra.mxu0 %v1205_v38 }
  0x1b   : > { %1158 = vmatprep.subr.bf16.mxu0 %v1206_v39 }
  0x1c   : > { %1111 = vmatmul.mubr.msk.bf16.gmra.mxu0 %vm409_vm2, %v393_v23 }
  0x1d   : > { %1131 = vmatpush3.bf16.msra.mxu1 %v1200_v18  ;;  %1114 = vmatprep.mubr.msk.bf16.mxu0 %vm409_vm2, %v394_v24 }
  0x1e   : > { %1132 = vmatprep.subr.bf16.mxu1 %v1201_v34  ;;  %1159 = vmatpush3.bf16.msra.mxu0 %v1206_v39 }
  0x1f   : > { %1160 = vmatprep.subr.bf16.mxu0 %v1207_v40 }
  0x21   : > { %1133 = vmatpush3.bf16.msra.mxu1 %v1201_v34 }
  0x22   : > { %1134 = vmatprep.subr.bf16.mxu1 %v1202_v35  ;;  %1161 = vmatpush3.bf16.msra.mxu0 %v1207_v40  ;;  %v1041_v40 = vld [vmem:[%s1463_s4] ss:$0 sm:$0xff] }
  0x23   : > { %1162 = vmatprep.subr.bf16.mxu0 %v1208_v41 }
  0x24   : > { %1115 = vmatmul.mubr.msk.bf16.gmra.mxu0 %vm409_vm2, %v395_v29 }
  0x25   : > { %1118 = vmatprep.mubr.msk.bf16.mxu0 %vm409_vm2, %v396_v30  ;;  %1135 = vmatpush3.bf16.msra.mxu1 %v1202_v35  ;;  %v1209_v35 = vld [vmem:[%s1464_s5 + $0x10] sm:$0xff]  }
  0x26   : > { %1136 = vmatprep.subr.bf16.mxu1 %v1203_v36  ;;  %1163 = vmatpush3.bf16.msra.mxu0 %v1208_v41 }
  0x27   : > { %1164 = vmatprep.subr.bf16.mxu0 %v1209_v35 }
  0x29   : > { %1137 = vmatpush3.bf16.msra.mxu1 %v1203_v36  ;;  %v1210_v36 = vld [vmem:[%s1464_s5 + $0x8] sm:$0xff]  }
  0x2a   : > { %1165 = vmatpush3.bf16.msra.mxu0 %v1209_v35  ;;  %v1384_v35 = vld [vmem:[%s1467_s8] ss:$0 sm:$0xff] }
  0x2b   : > { %1166 = vmatprep.subr.bf16.mxu0 %v1210_v36 }
  0x2c   : > { %1119 = vmatmul.mubr.msk.bf16.gmra.mxu0 %vm409_vm2, %v397_v33 }
  0x2e   : > { %1167 = vmatpush3.bf16.msra.mxu0 %v1210_v36 }
  0x2f   : > { %1168 = vmatprep.subr.bf16.mxu0 %v1211_v37 }
  0x32   : > { %1169 = vmatpush3.bf16.msra.mxu0 %v1211_v37 }
  0xd4   : > { %v1108_v42 = vpop.f32.mrf.mxu0 }
  0xd5   : > { %v484_v48 = vadd.f32 %v1108_v42, %v1031_v44 }
  0xd6   : > { %v475_v43 = vpop.f32.mrf.mxu0 }
  0xd7   : > { %v476_v46 = vadd.f32 %v1031_v44, %v475_v43  ;;  %v540_v55 = vmax.f32 %v484_v48, 0.0 }
  0xd8   : > { %v1109_v45 = vpop.f32.mrf.mxu0 }
  0xd9   : > { %v487_v47 = vadd.f32 %v1109_v45, %v1031_v44  ;;  %v538_v53 = vmax.f32 %v476_v46, 0.0 }
  0xda   : > { %v478_v49 = vpop.f32.mrf.mxu0 }
  0xdb   : > { %v479_v50 = vadd.f32 %v1031_v44, %v478_v49  ;;  %v541_v51 = vmax.f32 %v487_v47, 0.0 }
  0xdc   : > { %v1112_v52 = vpop.f32.mrf.mxu0 }
  0xdd   : > { %v539_v54 = vmax.f32 %v479_v50, 0.0  ;;  %v555_v58 = vpack.c.bf16 %v541_v51, %v540_v55  ;;  %v500_v62 = vadd.f32 %v1112_v52, %v1031_v44 }
  0xde   : > { %v491_v56 = vpop.f32.mrf.mxu0 }
  0xdf   : > { %v554_v57 = vpack.c.bf16 %v539_v54, %v538_v53  ;;  %v492_v60 = vadd.f32 %v1031_v44, %v491_v56  ;;  %v544_v5 = vmax.f32 %v500_v62, 0.0 }
  0xe0   : > { %v1113_v59 = vpop.f32.mrf.mxu0 }
  0xe1   : > { %v503_v61 = vadd.f32 %v1113_v59, %v1031_v44  ;;  %1138 = vmatprep.mubr.bf16.mxu1 %v554_v57  ;;  %v542_v3 = vmax.f32 %v492_v60, 0.0 }
  0xe2   : > { %v494_v63 = vpop.f32.mrf.mxu0  ;;  %1139 = vmatmul.mubr.bf16.vlgmr.msra.gmra.mxu1 %v555_v58 }
  0xe3   : > { %v495_v0 = vadd.f32 %v1031_v44, %v494_v63  ;;  %v545_v1 = vmax.f32 %v503_v61, 0.0 }
  0xe4   : > { %v1116_v2 = vpop.f32.mrf.mxu0 }
  0xe5   : > { %v543_v4 = vmax.f32 %v495_v0, 0.0  ;;  %v557_v8 = vpack.c.bf16 %v545_v1, %v544_v5  ;;  %v516_v12 = vadd.f32 %v1116_v2, %v1031_v44 }
  0xe6   : > { %v507_v6 = vpop.f32.mrf.mxu0 }
  0xe7   : > { %v556_v7 = vpack.c.bf16 %v543_v4, %v542_v3  ;;  %v508_v10 = vadd.f32 %v1031_v44, %v507_v6  ;;  %v548_v19 = vmax.f32 %v516_v12, 0.0 }
  0xe8   : > { %v1117_v9 = vpop.f32.mrf.mxu0 }
  0xe9   : > { %v519_v11 = vadd.f32 %v1117_v9, %v1031_v44  ;;  %1142 = vmatprep.mubr.bf16.mxu1 %v556_v7  ;;  %v546_v17 = vmax.f32 %v508_v10, 0.0 }
  0xea   : > { %v510_v13 = vpop.f32.mrf.mxu0  ;;  %1143 = vmatmul.mubr.bf16.gmra.mxu1 %v557_v8 }
  0xeb   : > { %v511_v14 = vadd.f32 %v1031_v44, %v510_v13  ;;  %v549_v15 = vmax.f32 %v519_v11, 0.0 }
  0xec   : > { %v1120_v16 = vpop.f32.mrf.mxu0 }
  0xed   : > { %v547_v18 = vmax.f32 %v511_v14, 0.0  ;;  %v559_v22 = vpack.c.bf16 %v549_v15, %v548_v19  ;;  %v532_v26 = vadd.f32 %v1120_v16, %v1031_v44 }
  0xee   : > { %v523_v20 = vpop.f32.mrf.mxu0 }
  0xef   : > { %v558_v21 = vpack.c.bf16 %v547_v18, %v546_v17  ;;  %v524_v24 = vadd.f32 %v1031_v44, %v523_v20  ;;  %v552_v32 = vmax.f32 %v532_v26, 0.0 }
  0xf0   : > { %v1121_v23 = vpop.f32.mrf.mxu0 }
  0xf1   : > { %v535_v25 = vadd.f32 %v1121_v23, %v1031_v44  ;;  %1146 = vmatprep.mubr.bf16.mxu1 %v558_v21  ;;  %v550_v30 = vmax.f32 %v524_v24, 0.0 }
  0xf2   : > { %v526_v27 = vpop.f32.mrf.mxu0  ;;  %1147 = vmatmul.mubr.bf16.gmra.mxu1 %v559_v22 }
  0xf3   : > { %v527_v28 = vadd.f32 %v1031_v44, %v526_v27  ;;  %v553_v29 = vmax.f32 %v535_v25, 0.0 }
  0xf5   : > { %v551_v31 = vmax.f32 %v527_v28, 0.0  ;;  %v561_v34 = vpack.c.bf16 %v553_v29, %v552_v32 }
  0xf7   : > { %v560_v33 = vpack.c.bf16 %v551_v31, %v550_v30  ;;  %v1373_v31 = vld [vmem:[%s1465_s6] ss:$0 sm:$0xff] }
  0xf9   : > { %1150 = vmatprep.mubr.bf16.mxu1 %v560_v33  ;;  %v1378_v33 = vld [vmem:[%s1466_s7] ss:$0 sm:$0xff] }
  0xfa   : > { %1151 = vmatmul.mubr.bf16.gmra.mxu1 %v561_v34 }
 0x1a2   : > { %v1140_v38 = vpop.f32.mrf.mxu1 }
 0x1a3   : > { %v659_v44 = vadd.f32 %v1140_v38, %v1041_v40 }
 0x1a4   : > { %v650_v39 = vpop.f32.mrf.mxu1 }
 0x1a5   : > { %v651_v42 = vadd.f32 %v1041_v40, %v650_v39  ;;  %v715_v51 = vmax.f32 %v659_v44, 0.0 }
 0x1a6   : > { %v1141_v41 = vpop.f32.mrf.mxu1 }
 0x1a7   : > { %v662_v43 = vadd.f32 %v1141_v41, %v1041_v40  ;;  %v713_v49 = vmax.f32 %v651_v42, 0.0 }
 0x1a8   : > { %v653_v45 = vpop.f32.mrf.mxu1 }
 0x1a9   : > { %v654_v46 = vadd.f32 %v1041_v40, %v653_v45  ;;  %v716_v47 = vmax.f32 %v662_v43, 0.0 }
 0x1aa   : > { %v1144_v48 = vpop.f32.mrf.mxu1 }
 0x1ab   : > { %v714_v50 = vmax.f32 %v654_v46, 0.0  ;;  %v730_v54 = vpack.c.bf16 %v716_v47, %v715_v51  ;;  %v675_v58 = vadd.f32 %v1144_v48, %v1041_v40 }
 0x1ac   : > { %v666_v52 = vpop.f32.mrf.mxu1 }
 0x1ad   : > { %v729_v53 = vpack.c.bf16 %v714_v50, %v713_v49  ;;  %v667_v56 = vadd.f32 %v1041_v40, %v666_v52  ;;  %v719_v1 = vmax.f32 %v675_v58, 0.0 }
 0x1ae   : > { %v1145_v55 = vpop.f32.mrf.mxu1 }
 0x1af   : > { %v678_v57 = vadd.f32 %v1145_v55, %v1041_v40  ;;  %1170 = vmatprep.mubr.bf16.mxu0 %v729_v53  ;;  %v717_v63 = vmax.f32 %v667_v56, 0.0 }
 0x1b0   : > { %v669_v59 = vpop.f32.mrf.mxu1  ;;  %1171 = vmatmul.mubr.bf16.vlgmr.msra.gmra.mxu0 %v730_v54 }
 0x1b1   : > { %v670_v60 = vadd.f32 %v1041_v40, %v669_v59  ;;  %v720_v61 = vmax.f32 %v678_v57, 0.0 }
 0x1b2   : > { %v1148_v62 = vpop.f32.mrf.mxu1 }
 0x1b3   : > { %v718_v0 = vmax.f32 %v670_v60, 0.0  ;;  %v732_v4 = vpack.c.bf16 %v720_v61, %v719_v1  ;;  %v691_v8 = vadd.f32 %v1148_v62, %v1041_v40 }
 0x1b4   : > { %v682_v2 = vpop.f32.mrf.mxu1 }
 0x1b5   : > { %v731_v3 = vpack.c.bf16 %v718_v0, %v717_v63  ;;  %v683_v6 = vadd.f32 %v1041_v40, %v682_v2  ;;  %v723_v15 = vmax.f32 %v691_v8, 0.0 }
 0x1b6   : > { %v1149_v5 = vpop.f32.mrf.mxu1 }
 0x1b7   : > { %v694_v7 = vadd.f32 %v1149_v5, %v1041_v40  ;;  %1174 = vmatprep.mubr.bf16.mxu0 %v731_v3  ;;  %v721_v13 = vmax.f32 %v683_v6, 0.0 }
 0x1b8   : > { %v685_v9 = vpop.f32.mrf.mxu1  ;;  %1175 = vmatmul.mubr.bf16.gmra.mxu0 %v732_v4 }
 0x1b9   : > { %v686_v10 = vadd.f32 %v1041_v40, %v685_v9  ;;  %v724_v11 = vmax.f32 %v694_v7, 0.0 }
 0x1ba   : > { %v1152_v12 = vpop.f32.mrf.mxu1 }
 0x1bb   : > { %v722_v14 = vmax.f32 %v686_v10, 0.0  ;;  %v734_v18 = vpack.c.bf16 %v724_v11, %v723_v15  ;;  %v707_v22 = vadd.f32 %v1152_v12, %v1041_v40 }
 0x1bc   : > { %v698_v16 = vpop.f32.mrf.mxu1 }
 0x1bd   : > { %v733_v17 = vpack.c.bf16 %v722_v14, %v721_v13  ;;  %v699_v20 = vadd.f32 %v1041_v40, %v698_v16  ;;  %v727_v28 = vmax.f32 %v707_v22, 0.0 }
 0x1be   : > { %v1153_v19 = vpop.f32.mrf.mxu1 }
 0x1bf   : > { %v710_v21 = vadd.f32 %v1153_v19, %v1041_v40  ;;  %1178 = vmatprep.mubr.bf16.mxu0 %v733_v17  ;;  %v725_v26 = vmax.f32 %v699_v20, 0.0 }
 0x1c0   : > { %v701_v23 = vpop.f32.mrf.mxu1  ;;  %1179 = vmatmul.mubr.bf16.gmra.mxu0 %v734_v18 }
 0x1c1   : > { %v702_v24 = vadd.f32 %v1041_v40, %v701_v23  ;;  %v728_v25 = vmax.f32 %v710_v21, 0.0 }
 0x1c3   : > { %v726_v27 = vmax.f32 %v702_v24, 0.0  ;;  %v736_v30 = vpack.c.bf16 %v728_v25, %v727_v28 }
 0x1c5   : > { %v735_v29 = vpack.c.bf16 %v726_v27, %v725_v26 }
 0x1c7   : > { %1182 = vmatprep.mubr.bf16.mxu0 %v735_v29 }
 0x1c8   : > { %1183 = vmatmul.mubr.bf16.gmra.mxu0 %v736_v30 }
 0x270   : > { %v1172_v32 = vpop.f32.mrf.mxu0 }
 0x271   : > { %v834_v34 = vadd.f32 %v1172_v32, %v1373_v31 }
 0x272   : > { %v825_v36 = vpop.f32.mrf.mxu0 }
 0x273   : > { %v897_v37 = vmul.f32 %v1378_v33, %v834_v34  ;;  %v826_v38 = vadd.f32 %v1373_v31, %v825_v36 }
 0x274   : > { %v1173_v39 = vpop.f32.mrf.mxu0 }
 0x275   : > { %v920_v40 = vadd.f32 %v1384_v35, %v897_v37  ;;  %v895_v41 = vmul.f32 %v1378_v33, %v826_v38  ;;  %v837_v42 = vadd.f32 %v1173_v39, %v1373_v31 }
 0x276   : > { %v828_v43 = vpop.f32.mrf.mxu0 }
 0x277   : > { %v936_v44 = vmax.f32 %v920_v40, 0.0  ;;  %v918_v45 = vadd.f32 %v1384_v35, %v895_v41  ;;  %v898_v46 = vmul.f32 %v1378_v33, %v837_v42  ;;  %v829_v47 = vadd.f32 %v1373_v31, %v828_v43 }
 0x278   : > { %v1176_v48 = vpop.f32.mrf.mxu0 }
 0x279   : > { %952 = vst [vmem:[%s1396_s26 + $0x10] sm:$0xff] %v936_v44  ;;  %v934_v49 = vmax.f32 %v918_v45, 0.0  ;;  %v921_v50 = vadd.f32 %v1384_v35, %v898_v46  ;;  %v896_v51 = vmul.f32 %v1378_v33, %v829_v47  ;;  %v850_v52 = vadd.f32 %v1176_v48, %v1373_v31 }
 0x27a   : > { %v841_v53 = vpop.f32.mrf.mxu0 }
 0x27b   : > { %950 = vst [vmem:[%s1396_s26] sm:$0xff] %v934_v49  ;;  %v937_v54 = vmax.f32 %v921_v50, 0.0  ;;  %v919_v55 = vadd.f32 %v1384_v35, %v896_v51  ;;  %v901_v56 = vmul.f32 %v1378_v33, %v850_v52  ;;  %v842_v57 = vadd.f32 %v1373_v31, %v841_v53 }
 0x27c   : > { %v1177_v58 = vpop.f32.mrf.mxu0 }
 0x27d   : > { %953 = vst [vmem:[%s1396_s26 + $0x18] sm:$0xff] %v937_v54  ;;  %v935_v59 = vmax.f32 %v919_v55, 0.0  ;;  %v924_v60 = vadd.f32 %v1384_v35, %v901_v56  ;;  %v899_v61 = vmul.f32 %v1378_v33, %v842_v57  ;;  %v853_v62 = vadd.f32 %v1177_v58, %v1373_v31 }
 0x27e   : > { %v844_v63 = vpop.f32.mrf.mxu0 }
 0x27f   : > { %951 = vst [vmem:[%s1396_s26 + $0x8] sm:$0xff] %v935_v59  ;;  %v940_v0 = vmax.f32 %v924_v60, 0.0  ;;  %v922_v1 = vadd.f32 %v1384_v35, %v899_v61  ;;  %v902_v2 = vmul.f32 %v1378_v33, %v853_v62  ;;  %v845_v3 = vadd.f32 %v1373_v31, %v844_v63 }
 0x280   : > { %v1180_v4 = vpop.f32.mrf.mxu0 }
 0x281   : > { %956 = vst [vmem:[%s1396_s26 + $0x30] sm:$0xff] %v940_v0  ;;  %v938_v5 = vmax.f32 %v922_v1, 0.0  ;;  %v925_v6 = vadd.f32 %v1384_v35, %v902_v2  ;;  %v900_v7 = vmul.f32 %v1378_v33, %v845_v3  ;;  %v866_v8 = vadd.f32 %v1180_v4, %v1373_v31 }
 0x282   : > { %v857_v9 = vpop.f32.mrf.mxu0 }
 0x283   : > { %954 = vst [vmem:[%s1396_s26 + $0x20] sm:$0xff] %v938_v5  ;;  %v941_v10 = vmax.f32 %v925_v6, 0.0  ;;  %v923_v11 = vadd.f32 %v1384_v35, %v900_v7  ;;  %v905_v12 = vmul.f32 %v1378_v33, %v866_v8  ;;  %v858_v13 = vadd.f32 %v1373_v31, %v857_v9 }
 0x284   : > { %v1181_v14 = vpop.f32.mrf.mxu0 }
 0x285   : > { %957 = vst [vmem:[%s1396_s26 + $0x38] sm:$0xff] %v941_v10  ;;  %v939_v15 = vmax.f32 %v923_v11, 0.0  ;;  %v928_v16 = vadd.f32 %v1384_v35, %v905_v12  ;;  %v903_v17 = vmul.f32 %v1378_v33, %v858_v13  ;;  %v869_v18 = vadd.f32 %v1181_v14, %v1373_v31 }
 0x286   : > { %v860_v19 = vpop.f32.mrf.mxu0 }
 0x287   : > { %955 = vst [vmem:[%s1396_s26 + $0x28] sm:$0xff] %v939_v15  ;;  %v944_v20 = vmax.f32 %v928_v16, 0.0  ;;  %v926_v21 = vadd.f32 %v1384_v35, %v903_v17  ;;  %v906_v22 = vmul.f32 %v1378_v33, %v869_v18  ;;  %v861_v23 = vadd.f32 %v1373_v31, %v860_v19 }
 0x288   : > { %v1184_v24 = vpop.f32.mrf.mxu0 }
 0x289   : > { %960 = vst [vmem:[%s1396_s26 + $0x50] sm:$0xff] %v944_v20  ;;  %v942_v25 = vmax.f32 %v926_v21, 0.0  ;;  %v929_v26 = vadd.f32 %v1384_v35, %v906_v22  ;;  %v904_v27 = vmul.f32 %v1378_v33, %v861_v23  ;;  %v882_v28 = vadd.f32 %v1184_v24, %v1373_v31 }
 0x28a   : > { %v873_v29 = vpop.f32.mrf.mxu0 }
 0x28b   : > { %958 = vst [vmem:[%s1396_s26 + $0x40] sm:$0xff] %v942_v25  ;;  %v945_v30 = vmax.f32 %v929_v26, 0.0  ;;  %v927_v32 = vadd.f32 %v1384_v35, %v904_v27  ;;  %v909_v34 = vmul.f32 %v1378_v33, %v882_v28  ;;  %v874_v36 = vadd.f32 %v1373_v31, %v873_v29 }
 0x28c   : > { %v1185_v37 = vpop.f32.mrf.mxu0 }
 0x28d   : > { %961 = vst [vmem:[%s1396_s26 + $0x58] sm:$0xff] %v945_v30  ;;  %v943_v38 = vmax.f32 %v927_v32, 0.0  ;;  %v932_v39 = vadd.f32 %v1384_v35, %v909_v34  ;;  %v907_v40 = vmul.f32 %v1378_v33, %v874_v36  ;;  %v885_v41 = vadd.f32 %v1185_v37, %v1373_v31 }
 0x28e   : > { %v876_v42 = vpop.f32.mrf.mxu0 }
 0x28f   : > { %959 = vst [vmem:[%s1396_s26 + $0x48] sm:$0xff] %v943_v38  ;;  %v948_v43 = vmax.f32 %v932_v39, 0.0  ;;  %v930_v44 = vadd.f32 %v1384_v35, %v907_v40  ;;  %v910_v45 = vmul.f32 %v1378_v33, %v885_v41  ;;  %v877_v46 = vadd.f32 %v1373_v31, %v876_v42 }
 0x291   : > { %964 = vst [vmem:[%s1396_s26 + $0x70] sm:$0xff] %v948_v43  ;;  %v946_v47 = vmax.f32 %v930_v44, 0.0  ;;  %v933_v48 = vadd.f32 %v1384_v35, %v910_v45  ;;  %v908_v49 = vmul.f32 %v1378_v33, %v877_v46 }
 0x293   : > { %962 = vst [vmem:[%s1396_s26 + $0x60] sm:$0xff] %v946_v47  ;;  %v949_v50 = vmax.f32 %v933_v48, 0.0  ;;  %v931_v51 = vadd.f32 %v1384_v35, %v908_v49 }
 0x295   : > { %965 = vst [vmem:[%s1396_s26 + $0x78] sm:$0xff] %v949_v50  ;;  %v947_v52 = vmax.f32 %v931_v51, 0.0 }
 0x297   : > { %963 = vst [vmem:[%s1396_s26 + $0x68] sm:$0xff] %v947_v52 }
 0x298 PF: > { %s19_s30 = sadd.s32 1, %s1218_s30  }
 0x299   : > { %p16_p4 = scmp.ge.s32.totalorder %s19_s30, 4  }
 0x29b   :  { %18 = sbr.rel (!%p16_p4) target bundleno = 1 (0x1), region = 86 }

// kernel: protonet_forward.8
= control target key start
LH: loop header
LB: loop body
LE: loop exit
PB: predicated region body
PF: predicated region fallthrough
CT: control target
= control target key end

     0   :  { %s1735_s27 = smov 0   ;;  %s2053_s0 = inlined_call_operand.vmem [shape: f32[256,9], index: 0, kind: input, shape index: {}]   ;;  %s2054_s1 = inlined_call_operand.vmem [shape: bf16[9,128], index: 1, kind: input, shape index: {}]   ;;  %s2055_s2 = inlined_call_operand.vmem [shape: f32[1,128], index: 2, kind: input, shape index: {}]   ;;  %s2056_s3 = inlined_call_operand.vmem [shape: bf16[128,128], index: 3, kind: input, shape index: {}]   ;;  %s2057_s4 = inlined_call_operand.vmem [shape: f32[1,128], index: 4, kind: input, shape index: {}]   ;;  %s2058_s5 = inlined_call_operand.vmem [shape: bf16[128,128], index: 5, kind: input, shape index: {}]   ;;  %s2059_s6 = inlined_call_operand.vmem [shape: f32[1,128], index: 6, kind: input, shape index: {}]   ;;  %s2060_s7 = inlined_call_operand.vmem [shape: f32[2,1,128], index: 7, kind: output, shape index: {0}]   ;;  %s2061_s8 = inlined_call_operand.vmem [shape: f32[2,1,128], index: 8, kind: output, shape index: {1}]  }
   0x1 LB: > { %s1741_s28 = sadd.s32 4294967295, %s1681_s27   ;;  %p1273_p0 = scmp.ge.s32.totalorder %s1681_s27, 1  ;;  %s1681_s27 = sphi %s1735_s27, %s19_s27  }
   0x2   : > { %p266_p1 = scmp.lt.s32.totalorder %s1681_s27, 3 }
   0x4   : > { %p267_p2 = pnand %p1273_p0, %p266_p1 }
   0x5   : > { %p307_p3 = scmp.lt.s32.totalorder (!%p267_p2), %s1741_s28, 1  ;;  %s1274_s9 = sshll.u32 (!%p267_p2), %s1741_s28, 4 }
   0x6   : > { %270 = sbr.rel (%p267_p2) target bundleno = 1121 (0x461), region = 48  ;;  %p302_p4 = scmp.lt.s32.totalorder (!%p267_p2), %s1274_s9, 31 }
   0x7   : > { %p1304_p5 = scmp.ge.s32.totalorder (!%p267_p2), %s1741_s28, 1 }
   0xb   : > { %vm411_vm0 = vcmask 1043456   ;;  %v1658_v0 = vld [vmem:[%s2054_s1] sm:$0x1f]   ;;  %vm412_vm1 = vcmask 1044480   ;;  %s308_s10 = scalar_select %p307_p3, %s1741_s28, 1  ;;  %v1683_v1 = vmov 65535  }
   0xc   : > { %v413_v2 = vsel %vm411_vm0, 4294967295, %v1683_v1  ;;  %v1659_v4 = vld [vmem:[%s2056_s3 + $0x38] sm:$0xff]   ;;  %v1660_v5 = vld [vmem:[%s2056_s3 + $0x30] sm:$0xff]   ;;  %s2063_s9 = smov (!%p302_p4, %s1274_s9), 31  ;;  %v1661_v7 = vld [vmem:[%s2056_s3 + $0x28] sm:$0xff]   ;;  %vm386_vm2 = vcmask 72704  }
   0xd   : > { %v414_v3 = vsel %vm412_vm1, %v413_v2, 0  ;;  %s1760_s17 = scalar_lea.vmem %s2060_s7, %s308_s10  ;;  %s1765_s20 = scalar_lea.vmem %s2061_s8, %s308_s10  ;;  %1439 = vmatprep.subr.bf16.mxu1 %v1659_v4  ;;  %v1662_v17 = vld [vmem:[%s2056_s3 + $0x20] sm:$0xff]   ;;  %v1663_v21 = vld [vmem:[%s2056_s3 + $0x18] sm:$0xff]   ;;  %v1664_v34 = vld [vmem:[%s2056_s3 + $0x10] sm:$0xff]  }
   0xe   : > { %v416_v6 = vand.u32 %v1658_v0, %v414_v3  ;;  %1440 = vmatpush3.bf16.msra.mxu1 %v1659_v4  ;;  %s1275_s21 = sshll.u32 %s2063_s9, 3  ;;  %v1665_v35 = vld [vmem:[%s2056_s3 + $0x8] sm:$0xff]   ;;  %v1666_v36 = vld [vmem:[%s2056_s3] sm:$0xff]   ;;  %v1667_v37 = vld [vmem:[%s2058_s5 + $0x38] sm:$0xff]  }
   0xf   : > { %1441 = vmatprep.subr.bf16.mxu1 %v1660_v5  ;;  %s1773_s26 = scalar_lea.vmem %s2053_s0, %s1275_s21  ;;  %v1668_v38 = vld [vmem:[%s2058_s5 + $0x30] sm:$0xff]   ;;  %v1669_v39 = vld [vmem:[%s2058_s5 + $0x28] sm:$0xff]   ;;  %v1670_v40 = vld [vmem:[%s2058_s5 + $0x20] sm:$0xff]  }
  0x10   : > { %1421 = vmatprep.subr.bf16.mxu0 %v416_v6  ;;  %v314_v8 = vld [vmem:[%s1773_s26] sm:$0xff]  ;;  %v315_v9 = vld [vmem:[%s1773_s26 + $0x8] sm:$0xff]  ;;  %v316_v10 = vld [vmem:[%s1773_s26 + $0x10] sm:$0xff] }
  0x11   : > { %1422 = vmatpush3.bf16.msra.mxu0 %v416_v6  ;;  %v367_v11 = vpack.c.bf16 %v315_v9, %v314_v8  ;;  %v317_v12 = vld [vmem:[%s1773_s26 + $0x18] sm:$0xff]  ;;  %v318_v13 = vld [vmem:[%s1773_s26 + $0x20] sm:$0xff]  ;;  %v319_v14 = vld [vmem:[%s1773_s26 + $0x28] sm:$0xff] }
  0x12   : > { %1442 = vmatpush3.bf16.msra.mxu1 %v1660_v5  ;;  %v368_v15 = vpack.c.bf16 %v317_v12, %v316_v10  ;;  %v369_v16 = vpack.c.bf16 %v319_v14, %v318_v13  ;;  %v320_v18 = vld [vmem:[%s1773_s26 + $0x30] sm:$0xff]  ;;  %v321_v19 = vld [vmem:[%s1773_s26 + $0x38] sm:$0xff]  ;;  %v322_v20 = vld [vmem:[%s1773_s26 + $0x40] sm:$0xff]  ;;  %1471 = vmatprep.subr.bf16.mxu0 %v1667_v37 }
  0x13   : > { %1443 = vmatprep.subr.bf16.mxu1 %v1661_v7  ;;  %1423 = vmatprep.mubr.msk.bf16.mxu0 %vm386_vm2, %v367_v11  ;;  %v323_v22 = vld [vmem:[%s1773_s26 + $0x48] sm:$0xff]  ;;  %v370_v23 = vpack.c.bf16 %v321_v19, %v320_v18  ;;  %v324_v25 = vld [vmem:[%s1773_s26 + $0x50] sm:$0xff]  ;;  %v325_v26 = vld [vmem:[%s1773_s26 + $0x58] sm:$0xff] }
  0x14   : > { %1424 = vmatmul.mubr.msk.bf16.vlgmr.msra.gmra.mxu0 %vm386_vm2, %v368_v15  ;;  %v371_v24 = vpack.c.bf16 %v323_v22, %v322_v20  ;;  %v326_v27 = vld [vmem:[%s1773_s26 + $0x60] sm:$0xff]  ;;  %v327_v28 = vld [vmem:[%s1773_s26 + $0x68] sm:$0xff]  ;;  %v372_v29 = vpack.c.bf16 %v325_v26, %v324_v25  ;;  %v328_v31 = vld [vmem:[%s1773_s26 + $0x70] sm:$0xff] }
  0x15   : > { %1427 = vmatprep.mubr.msk.bf16.mxu0 %vm386_vm2, %v369_v16  ;;  %v373_v30 = vpack.c.bf16 %v327_v28, %v326_v27  ;;  %v329_v32 = vld [vmem:[%s1773_s26 + $0x78] sm:$0xff]  ;;  %1472 = vmatpush3.bf16.msra.mxu0 %v1667_v37  ;;  %v1276_v44 = vld [vmem:[%s2055_s2] ss:$0 sm:$0xff] }
  0x16   : > { %1444 = vmatpush3.bf16.msra.mxu1 %v1661_v7  ;;  %v374_v33 = vpack.c.bf16 %v329_v32, %v328_v31  ;;  %1473 = vmatprep.subr.bf16.mxu0 %v1668_v38  ;;  %v1671_v41 = vld [vmem:[%s2058_s5 + $0x18] sm:$0xff]   ;;  %v1674_v37 = vld [vmem:[%s2058_s5] sm:$0xff]  }
  0x17   : > { %1445 = vmatprep.subr.bf16.mxu1 %v1662_v17 }
  0x19   : > { %1474 = vmatpush3.bf16.msra.mxu0 %v1668_v38 }
  0x1a   : > { %1446 = vmatpush3.bf16.msra.mxu1 %v1662_v17  ;;  %1475 = vmatprep.subr.bf16.mxu0 %v1669_v39 }
  0x1b   : > { %1447 = vmatprep.subr.bf16.mxu1 %v1663_v21 }
  0x1c   : > { %1428 = vmatmul.mubr.msk.bf16.gmra.mxu0 %vm386_vm2, %v370_v23 }
  0x1d   : > { %1431 = vmatprep.mubr.msk.bf16.mxu0 %vm386_vm2, %v371_v24  ;;  %1476 = vmatpush3.bf16.msra.mxu0 %v1669_v39 }
  0x1e   : > { %1448 = vmatpush3.bf16.msra.mxu1 %v1663_v21  ;;  %1477 = vmatprep.subr.bf16.mxu0 %v1670_v40 }
  0x1f   : > { %1449 = vmatprep.subr.bf16.mxu1 %v1664_v34 }
  0x21   : > { %1478 = vmatpush3.bf16.msra.mxu0 %v1670_v40  ;;  %v1286_v40 = vld [vmem:[%s2057_s4] ss:$0 sm:$0xff] }
  0x22   : > { %1450 = vmatpush3.bf16.msra.mxu1 %v1664_v34  ;;  %1479 = vmatprep.subr.bf16.mxu0 %v1671_v41 }
  0x23   : > { %1451 = vmatprep.subr.bf16.mxu1 %v1665_v35 }
  0x24   : > { %1432 = vmatmul.mubr.msk.bf16.gmra.mxu0 %vm386_vm2, %v372_v29 }
  0x25   : > { %1435 = vmatprep.mubr.msk.bf16.mxu0 %vm386_vm2, %v373_v30  ;;  %1480 = vmatpush3.bf16.msra.mxu0 %v1671_v41 }
  0x26   : > { %1452 = vmatpush3.bf16.msra.mxu1 %v1665_v35  ;;  %v1672_v35 = vld [vmem:[%s2058_s5 + $0x10] sm:$0xff]  }
  0x27   : > { %1453 = vmatprep.subr.bf16.mxu1 %v1666_v36  ;;  %1481 = vmatprep.subr.bf16.mxu0 %v1672_v35 }
  0x29   : > { %1482 = vmatpush3.bf16.msra.mxu0 %v1672_v35 }
  0x2a   : > { %1454 = vmatpush3.bf16.msra.mxu1 %v1666_v36  ;;  %v1673_v36 = vld [vmem:[%s2058_s5 + $0x8] sm:$0xff]  }
  0x2b   : > { %1483 = vmatprep.subr.bf16.mxu0 %v1673_v36 }
  0x2c   : > { %1436 = vmatmul.mubr.msk.bf16.gmra.mxu0 %vm386_vm2, %v374_v33 }
  0x2d   : > { %1484 = vmatpush3.bf16.msra.mxu0 %v1673_v36 }
  0x2e   : > { %1485 = vmatprep.subr.bf16.mxu0 %v1674_v37 }
  0x31   : > { %1486 = vmatpush3.bf16.msra.mxu0 %v1674_v37 }
  0xd4   : > { %v1425_v42 = vpop.f32.mrf.mxu0 }
  0xd5   : > { %v461_v48 = vadd.f32 %v1425_v42, %v1276_v44 }
  0xd6   : > { %v452_v43 = vpop.f32.mrf.mxu0 }
  0xd7   : > { %v453_v46 = vadd.f32 %v1276_v44, %v452_v43  ;;  %v517_v55 = vmax.f32 %v461_v48, 0.0 }
  0xd8   : > { %v1426_v45 = vpop.f32.mrf.mxu0 }
  0xd9   : > { %v464_v47 = vadd.f32 %v1426_v45, %v1276_v44  ;;  %v515_v53 = vmax.f32 %v453_v46, 0.0 }
  0xda   : > { %v455_v49 = vpop.f32.mrf.mxu0 }
  0xdb   : > { %v456_v50 = vadd.f32 %v1276_v44, %v455_v49  ;;  %v518_v51 = vmax.f32 %v464_v47, 0.0 }
  0xdc   : > { %v1429_v52 = vpop.f32.mrf.mxu0 }
  0xdd   : > { %v516_v54 = vmax.f32 %v456_v50, 0.0  ;;  %v532_v58 = vpack.c.bf16 %v518_v51, %v517_v55  ;;  %v477_v62 = vadd.f32 %v1429_v52, %v1276_v44 }
  0xde   : > { %v468_v56 = vpop.f32.mrf.mxu0 }
  0xdf   : > { %v531_v57 = vpack.c.bf16 %v516_v54, %v515_v53  ;;  %v469_v60 = vadd.f32 %v1276_v44, %v468_v56  ;;  %v521_v5 = vmax.f32 %v477_v62, 0.0 }
  0xe0   : > { %v1430_v59 = vpop.f32.mrf.mxu0 }
  0xe1   : > { %v480_v61 = vadd.f32 %v1430_v59, %v1276_v44  ;;  %1455 = vmatprep.mubr.bf16.mxu1 %v531_v57  ;;  %v519_v3 = vmax.f32 %v469_v60, 0.0 }
  0xe2   : > { %v471_v63 = vpop.f32.mrf.mxu0  ;;  %1456 = vmatmul.mubr.bf16.vlgmr.msra.gmra.mxu1 %v532_v58 }
  0xe3   : > { %v472_v0 = vadd.f32 %v1276_v44, %v471_v63  ;;  %v522_v1 = vmax.f32 %v480_v61, 0.0 }
  0xe4   : > { %v1433_v2 = vpop.f32.mrf.mxu0 }
  0xe5   : > { %v520_v4 = vmax.f32 %v472_v0, 0.0  ;;  %v534_v8 = vpack.c.bf16 %v522_v1, %v521_v5  ;;  %v493_v12 = vadd.f32 %v1433_v2, %v1276_v44 }
  0xe6   : > { %v484_v6 = vpop.f32.mrf.mxu0 }
  0xe7   : > { %v533_v7 = vpack.c.bf16 %v520_v4, %v519_v3  ;;  %v485_v10 = vadd.f32 %v1276_v44, %v484_v6  ;;  %v525_v19 = vmax.f32 %v493_v12, 0.0 }
  0xe8   : > { %v1434_v9 = vpop.f32.mrf.mxu0 }
  0xe9   : > { %v496_v11 = vadd.f32 %v1434_v9, %v1276_v44  ;;  %1459 = vmatprep.mubr.bf16.mxu1 %v533_v7  ;;  %v523_v17 = vmax.f32 %v485_v10, 0.0 }
  0xea   : > { %v487_v13 = vpop.f32.mrf.mxu0  ;;  %1460 = vmatmul.mubr.bf16.gmra.mxu1 %v534_v8 }
  0xeb   : > { %v488_v14 = vadd.f32 %v1276_v44, %v487_v13  ;;  %v526_v15 = vmax.f32 %v496_v11, 0.0 }
  0xec   : > { %v1437_v16 = vpop.f32.mrf.mxu0 }
  0xed   : > { %v524_v18 = vmax.f32 %v488_v14, 0.0  ;;  %v536_v22 = vpack.c.bf16 %v526_v15, %v525_v19  ;;  %v509_v26 = vadd.f32 %v1437_v16, %v1276_v44 }
  0xee   : > { %v500_v20 = vpop.f32.mrf.mxu0 }
  0xef   : > { %v535_v21 = vpack.c.bf16 %v524_v18, %v523_v17  ;;  %v501_v24 = vadd.f32 %v1276_v44, %v500_v20  ;;  %v529_v32 = vmax.f32 %v509_v26, 0.0 }
  0xf0   : > { %v1438_v23 = vpop.f32.mrf.mxu0 }
  0xf1   : > { %v512_v25 = vadd.f32 %v1438_v23, %v1276_v44  ;;  %1463 = vmatprep.mubr.bf16.mxu1 %v535_v21  ;;  %v527_v30 = vmax.f32 %v501_v24, 0.0 }
  0xf2   : > { %v503_v27 = vpop.f32.mrf.mxu0  ;;  %1464 = vmatmul.mubr.bf16.gmra.mxu1 %v536_v22 }
  0xf3   : > { %v504_v28 = vadd.f32 %v1276_v44, %v503_v27  ;;  %v530_v29 = vmax.f32 %v512_v25, 0.0 }
  0xf5   : > { %v528_v31 = vmax.f32 %v504_v28, 0.0  ;;  %v538_v34 = vpack.c.bf16 %v530_v29, %v529_v32 }
  0xf7   : > { %v537_v33 = vpack.c.bf16 %v528_v31, %v527_v30  ;;  %v1295_v31 = vld [vmem:[%s2059_s6] ss:$0 sm:$0xff] }
  0xf9   : > { %1467 = vmatprep.mubr.bf16.mxu1 %v537_v33 }
  0xfa   : > { %1468 = vmatmul.mubr.bf16.gmra.mxu1 %v538_v34 }
 0x1a2   : > { %v1457_v38 = vpop.f32.mrf.mxu1 }
 0x1a3   : > { %v636_v44 = vadd.f32 %v1457_v38, %v1286_v40 }
 0x1a4   : > { %v627_v39 = vpop.f32.mrf.mxu1 }
 0x1a5   : > { %v628_v42 = vadd.f32 %v1286_v40, %v627_v39  ;;  %v692_v51 = vmax.f32 %v636_v44, 0.0 }
 0x1a6   : > { %v1458_v41 = vpop.f32.mrf.mxu1 }
 0x1a7   : > { %v639_v43 = vadd.f32 %v1458_v41, %v1286_v40  ;;  %v690_v49 = vmax.f32 %v628_v42, 0.0 }
 0x1a8   : > { %v630_v45 = vpop.f32.mrf.mxu1 }
 0x1a9   : > { %v631_v46 = vadd.f32 %v1286_v40, %v630_v45  ;;  %v693_v47 = vmax.f32 %v639_v43, 0.0 }
 0x1aa   : > { %v1461_v48 = vpop.f32.mrf.mxu1 }
 0x1ab   : > { %v691_v50 = vmax.f32 %v631_v46, 0.0  ;;  %v707_v54 = vpack.c.bf16 %v693_v47, %v692_v51  ;;  %v652_v58 = vadd.f32 %v1461_v48, %v1286_v40 }
 0x1ac   : > { %v643_v52 = vpop.f32.mrf.mxu1 }
 0x1ad   : > { %v706_v53 = vpack.c.bf16 %v691_v50, %v690_v49  ;;  %v644_v56 = vadd.f32 %v1286_v40, %v643_v52  ;;  %v696_v1 = vmax.f32 %v652_v58, 0.0 }
 0x1ae   : > { %v1462_v55 = vpop.f32.mrf.mxu1 }
 0x1af   : > { %v655_v57 = vadd.f32 %v1462_v55, %v1286_v40  ;;  %1487 = vmatprep.mubr.bf16.mxu0 %v706_v53  ;;  %v694_v63 = vmax.f32 %v644_v56, 0.0 }
 0x1b0   : > { %v646_v59 = vpop.f32.mrf.mxu1  ;;  %1488 = vmatmul.mubr.bf16.vlgmr.msra.gmra.mxu0 %v707_v54 }
 0x1b1   : > { %v647_v60 = vadd.f32 %v1286_v40, %v646_v59  ;;  %v697_v61 = vmax.f32 %v655_v57, 0.0 }
 0x1b2   : > { %v1465_v62 = vpop.f32.mrf.mxu1 }
 0x1b3   : > { %v695_v0 = vmax.f32 %v647_v60, 0.0  ;;  %v709_v4 = vpack.c.bf16 %v697_v61, %v696_v1  ;;  %v668_v8 = vadd.f32 %v1465_v62, %v1286_v40 }
 0x1b4   : > { %v659_v2 = vpop.f32.mrf.mxu1 }
 0x1b5   : > { %v708_v3 = vpack.c.bf16 %v695_v0, %v694_v63  ;;  %v660_v6 = vadd.f32 %v1286_v40, %v659_v2  ;;  %v700_v15 = vmax.f32 %v668_v8, 0.0 }
 0x1b6   : > { %v1466_v5 = vpop.f32.mrf.mxu1 }
 0x1b7   : > { %v671_v7 = vadd.f32 %v1466_v5, %v1286_v40  ;;  %1491 = vmatprep.mubr.bf16.mxu0 %v708_v3  ;;  %v698_v13 = vmax.f32 %v660_v6, 0.0 }
 0x1b8   : > { %v662_v9 = vpop.f32.mrf.mxu1  ;;  %1492 = vmatmul.mubr.bf16.gmra.mxu0 %v709_v4 }
 0x1b9   : > { %v663_v10 = vadd.f32 %v1286_v40, %v662_v9  ;;  %v701_v11 = vmax.f32 %v671_v7, 0.0 }
 0x1ba   : > { %v1469_v12 = vpop.f32.mrf.mxu1 }
 0x1bb   : > { %v699_v14 = vmax.f32 %v663_v10, 0.0  ;;  %v711_v18 = vpack.c.bf16 %v701_v11, %v700_v15  ;;  %v684_v22 = vadd.f32 %v1469_v12, %v1286_v40 }
 0x1bc   : > { %v675_v16 = vpop.f32.mrf.mxu1 }
 0x1bd   : > { %v710_v17 = vpack.c.bf16 %v699_v14, %v698_v13  ;;  %v676_v20 = vadd.f32 %v1286_v40, %v675_v16  ;;  %v704_v28 = vmax.f32 %v684_v22, 0.0 }
 0x1be   : > { %v1470_v19 = vpop.f32.mrf.mxu1 }
 0x1bf   : > { %v687_v21 = vadd.f32 %v1470_v19, %v1286_v40  ;;  %1495 = vmatprep.mubr.bf16.mxu0 %v710_v17  ;;  %v702_v26 = vmax.f32 %v676_v20, 0.0 }
 0x1c0   : > { %v678_v23 = vpop.f32.mrf.mxu1  ;;  %1496 = vmatmul.mubr.bf16.gmra.mxu0 %v711_v18 }
 0x1c1   : > { %v679_v24 = vadd.f32 %v1286_v40, %v678_v23  ;;  %v705_v25 = vmax.f32 %v687_v21, 0.0 }
 0x1c3   : > { %v703_v27 = vmax.f32 %v679_v24, 0.0  ;;  %v713_v30 = vpack.c.bf16 %v705_v25, %v704_v28 }
 0x1c5   : > { %v712_v29 = vpack.c.bf16 %v703_v27, %v702_v26 }
 0x1c7   : > { %1499 = vmatprep.mubr.bf16.mxu0 %v712_v29 }
 0x1c8   : > { %1500 = vmatmul.mubr.bf16.gmra.mxu0 %v713_v30 }
 0x270   : > { %v1489_v32 = vpop.f32.mrf.mxu0 }
 0x271   : > { %v1847_v33 = vadd.f32 %v1489_v32, %v1295_v31 }
 0x272   : > { %v802_v34 = vpop.f32.mrf.mxu0 }
 0x273   : > { %v1849_v35 = vadd.f32 %v1295_v31, %v802_v34 }
 0x274   : > { %v1490_v36 = vpop.f32.mrf.mxu0 }
 0x275   : > { %v1851_v37 = vadd.f32 %v1490_v36, %v1295_v31 }
 0x276   : > { %v805_v38 = vpop.f32.mrf.mxu0 }
 0x277   : > { %v1853_v39 = vadd.f32 %v1295_v31, %v805_v38 }
 0x278   : > { %v1493_v40 = vpop.f32.mrf.mxu0 }
 0x279   : > { %v1855_v41 = vadd.f32 %v1493_v40, %v1295_v31 }
 0x27a   : > { %v818_v42 = vpop.f32.mrf.mxu0 }
 0x27b   : > { %v1857_v43 = vadd.f32 %v1295_v31, %v818_v42 }
 0x27c   : > { %v1494_v44 = vpop.f32.mrf.mxu0 }
 0x27d   : > { %v1859_v45 = vadd.f32 %v1494_v44, %v1295_v31 }
 0x27e   : > { %v821_v46 = vpop.f32.mrf.mxu0 }
 0x27f   : > { %v1861_v47 = vadd.f32 %v1295_v31, %v821_v46 }
 0x280   : > { %v1497_v48 = vpop.f32.mrf.mxu0 }
 0x281   : > { %v1863_v49 = vadd.f32 %v1497_v48, %v1295_v31 }
 0x282   : > { %v834_v50 = vpop.f32.mrf.mxu0 }
 0x283   : > { %v1865_v51 = vadd.f32 %v1295_v31, %v834_v50 }
 0x284   : > { %v1498_v52 = vpop.f32.mrf.mxu0 }
 0x285   : > { %v1867_v53 = vadd.f32 %v1498_v52, %v1295_v31 }
 0x286   : > { %v837_v54 = vpop.f32.mrf.mxu0 }
 0x287   : > { %v1869_v55 = vadd.f32 %v1295_v31, %v837_v54 }
 0x288   : > { %v1501_v56 = vpop.f32.mrf.mxu0 }
 0x289   : > { %v1871_v57 = vadd.f32 %v1501_v56, %v1295_v31 }
 0x28a   : > { %v850_v58 = vpop.f32.mrf.mxu0 }
 0x28b   : > { %v1873_v59 = vadd.f32 %v1295_v31, %v850_v58  ;;  %868 = sbr.rel (%p1304_p5) target bundleno = 885 (0x375), region = 52 }
 0x28c   : > { %v1502_v60 = vpop.f32.mrf.mxu0 }
 0x28d   : > { %v1875_v61 = vadd.f32 %v1502_v60, %v1295_v31 }
 0x28e   : > { %v853_v62 = vpop.f32.mrf.mxu0 }
 0x28f   : > { %v1877_v63 = vadd.f32 %v1295_v31, %v853_v62 }
 0x290   : > { %v955_v0 = vmul.f32 %v1875_v61, %v1875_v61  ;;  %v954_v1 = vmul.f32 %v1871_v57, %v1871_v57  ;;  %v1684_v2 = vmov 0.0   ;;  %v952_v4 = vmul.f32 %v1873_v59, %v1873_v59 }
 0x291   : > { %1503 = vmatprep.subr.mxu0 %v1684_v2  ;;  %1538 = vmatprep.subr.mxu1 %v1684_v2  ;;  %v953_v3 = vmul.f32 %v1877_v63, %v1877_v63  ;;  %v951_v5 = vmul.f32 %v1867_v53, %v1867_v53  ;;  %v950_v6 = vmul.f32 %v1863_v49, %v1863_v49  ;;  %vm1685_vm3 = vmmov 0  }
 0x292   : > { %1504 = vmatpush3.msra.mxu0 %v1875_v61  ;;  %1539 = vmatpush3.msra.mxu1 %v955_v0  ;;  %v949_v7 = vmul.f32 %v1869_v55, %v1869_v55  ;;  %v948_v8 = vmul.f32 %v1865_v51, %v1865_v51  ;;  %v947_v9 = vmul.f32 %v1859_v45, %v1859_v45  ;;  %v1686_v17 = vmov 1.0  }
 0x293   : > { %1505 = vmatprep.subr.mxu0 %v1684_v2  ;;  %1540 = vmatprep.subr.mxu1 %v1684_v2  ;;  %v946_v10 = vmul.f32 %v1855_v41, %v1855_v41  ;;  %v945_v11 = vmul.f32 %v1861_v47, %v1861_v47  ;;  %v944_v12 = vmul.f32 %v1857_v43, %v1857_v43 }
 0x294   : > { %1506 = vmatpush3.msra.mxu0 %v1871_v57  ;;  %1541 = vmatpush3.msra.mxu1 %v954_v1  ;;  %v943_v13 = vmul.f32 %v1851_v37, %v1851_v37  ;;  %v942_v14 = vmul.f32 %v1847_v33, %v1847_v33  ;;  %v941_v15 = vmul.f32 %v1853_v39, %v1853_v39 }
 0x295   : > { %1507 = vmatprep.subr.mxu0 %v1684_v2  ;;  %1542 = vmatprep.subr.mxu1 %v1684_v2  ;;  %v940_v16 = vmul.f32 %v1849_v35, %v1849_v35 }
 0x296   : > { %1508 = vmatpush3.msra.mxu0 %v1877_v63  ;;  %1543 = vmatpush3.msra.mxu1 %v953_v3 }
 0x297   : > { %1509 = vmatprep.subr.mxu0 %v1684_v2  ;;  %1544 = vmatprep.subr.mxu1 %v1684_v2 }
 0x298   : > { %1510 = vmatpush3.msra.mxu0 %v1873_v59  ;;  %1545 = vmatpush3.msra.mxu1 %v952_v4 }
 0x299   : > { %1511 = vmatprep.subr.mxu0 %v1684_v2  ;;  %1546 = vmatprep.subr.mxu1 %v1684_v2 }
 0x29a   : > { %1512 = vmatpush3.msra.mxu0 %v1867_v53  ;;  %1547 = vmatpush3.msra.mxu1 %v951_v5 }
 0x29b   : > { %1513 = vmatprep.subr.mxu0 %v1684_v2  ;;  %1548 = vmatprep.subr.mxu1 %v1684_v2 }
 0x29c   : > { %1514 = vmatpush3.msra.mxu0 %v1863_v49  ;;  %1549 = vmatpush3.msra.mxu1 %v950_v6 }
 0x29d   : > { %1515 = vmatprep.subr.mxu0 %v1684_v2  ;;  %1550 = vmatprep.subr.mxu1 %v1684_v2 }
 0x29e   : > { %1516 = vmatpush3.msra.mxu0 %v1869_v55  ;;  %1551 = vmatpush3.msra.mxu1 %v949_v7 }
 0x29f   : > { %1517 = vmatprep.subr.mxu0 %v1684_v2  ;;  %1552 = vmatprep.subr.mxu1 %v1684_v2 }
 0x2a0   : > { %1518 = vmatpush3.msra.mxu0 %v1865_v51  ;;  %1553 = vmatpush3.msra.mxu1 %v948_v8 }
 0x2a1   : > { %1519 = vmatprep.subr.mxu0 %v1684_v2  ;;  %1554 = vmatprep.subr.mxu1 %v1684_v2 }
 0x2a2   : > { %1520 = vmatpush3.msra.mxu0 %v1859_v45  ;;  %1555 = vmatpush3.msra.mxu1 %v947_v9 }
 0x2a3   : > { %1521 = vmatprep.subr.mxu0 %v1684_v2  ;;  %1556 = vmatprep.subr.mxu1 %v1684_v2 }
 0x2a4   : > { %1522 = vmatpush3.msra.mxu0 %v1855_v41  ;;  %1557 = vmatpush3.msra.mxu1 %v946_v10 }
 0x2a5   : > { %1523 = vmatprep.subr.mxu0 %v1684_v2  ;;  %1558 = vmatprep.subr.mxu1 %v1684_v2 }
 0x2a6   : > { %1524 = vmatpush3.msra.mxu0 %v1861_v47  ;;  %1559 = vmatpush3.msra.mxu1 %v945_v11 }
 0x2a7   : > { %1525 = vmatprep.subr.mxu0 %v1684_v2  ;;  %1560 = vmatprep.subr.mxu1 %v1684_v2 }
 0x2a8   : > { %1526 = vmatpush3.msra.mxu0 %v1857_v43  ;;  %1561 = vmatpush3.msra.mxu1 %v944_v12 }
 0x2a9   : > { %1527 = vmatprep.subr.mxu0 %v1684_v2  ;;  %1562 = vmatprep.subr.mxu1 %v1684_v2 }
 0x2aa   : > { %1528 = vmatpush3.msra.mxu0 %v1851_v37  ;;  %1563 = vmatpush3.msra.mxu1 %v943_v13 }
 0x2ab   : > { %1529 = vmatprep.subr.mxu0 %v1684_v2  ;;  %1564 = vmatprep.subr.mxu1 %v1684_v2 }
 0x2ac   : > { %1530 = vmatpush3.msra.mxu0 %v1847_v33  ;;  %1565 = vmatpush3.msra.mxu1 %v942_v14 }
 0x2ad   : > { %1531 = vmatprep.subr.mxu0 %v1684_v2  ;;  %1566 = vmatprep.subr.mxu1 %v1684_v2 }
 0x2ae   : > { %1532 = vmatpush3.msra.mxu0 %v1853_v39  ;;  %1567 = vmatpush3.msra.mxu1 %v941_v15 }
 0x2af   : > { %1533 = vmatprep.subr.mxu0 %v1684_v2  ;;  %1568 = vmatprep.subr.mxu1 %v1684_v2 }
 0x2b0   : > { %1534 = vmatpush3.msra.mxu0 %v1849_v35  ;;  %1535 = vmatprep.mubr.msk.f32.mxu0 %vm1685_vm3, %v1684_v2 }
 0x2b1   : > { %1569 = vmatpush3.msra.mxu1 %v940_v16  ;;  %1570 = vmatprep.mubr.msk.f32.mxu1 %vm1685_vm3, %v1684_v2 }
 0x2b2   : > { %1536 = vmatmul.mubr.f32.vlgmr.msra.gmra.mxu0 %v1686_v17  ;;  %1571 = vmatmul.mubr.f32.vlgmr.msra.gmra.mxu1 %v1686_v17 }
 0x372   : > { %v935_v18 = vpop.f32.mrf.mxu0  ;;  %v1022_v19 = vpop.f32.mrf.mxu1 }
 0x373   : > { %939 = vst [vmem:[%s1760_s17] sm:$0x1] %v935_v18  ;;  %1026 = vst [vmem:[%s1765_s20] sm:$0x1] %v1022_v19 }
 0x374   : > { %v1537_v20 = vpop.f32.mrf.mxu0  ;;  %v1572_v21 = vpop.f32.mrf.mxu1 }
 0x375 PF: > { %p1305_p6 = scmp.ne.s32.totalorder %s1741_s28, 1 }
 0x376   : > { %s1306_s23 = sshll.u32 (!%p1305_p6), %s1741_s28, 7 }
 0x377   : > { %1030 = sbr.rel (%p1305_p6) target bundleno = 1121 (0x461), region = 56 }
 0x37c   : > { %v1125_v22 = vmul.f32 %v1875_v61, %v1875_v61  ;;  %v1124_v23 = vmul.f32 %v1871_v57, %v1871_v57  ;;  %v1687_v24 = vmov 0.0   ;;  %v1123_v25 = vmul.f32 %v1877_v63, %v1877_v63 }
 0x37d   : > { %1573 = vmatprep.subr.mxu0 %v1687_v24  ;;  %1608 = vmatprep.subr.mxu1 %v1687_v24  ;;  %v1122_v26 = vmul.f32 %v1873_v59, %v1873_v59  ;;  %v1121_v27 = vmul.f32 %v1867_v53, %v1867_v53  ;;  %v1120_v28 = vmul.f32 %v1863_v49, %v1863_v49  ;;  %v1031_v36 = vlaneseq }
 0x37e   : > { %1574 = vmatpush3.msra.mxu0 %v1875_v61  ;;  %1609 = vmatpush3.msra.mxu1 %v1125_v22  ;;  %v1119_v29 = vmul.f32 %v1869_v55, %v1869_v55  ;;  %v1118_v30 = vmul.f32 %v1865_v51, %v1865_v51  ;;  %v1117_v31 = vmul.f32 %v1859_v45, %v1859_v45  ;;  %v1034_v44 = vstv %s1306_s23 }
 0x37f   : > { %1575 = vmatprep.subr.mxu0 %v1687_v24  ;;  %1610 = vmatprep.subr.mxu1 %v1687_v24  ;;  %v1116_v32 = vmul.f32 %v1855_v41, %v1855_v41  ;;  %v1115_v34 = vmul.f32 %v1861_v47, %v1861_v47  ;;  %v1114_v38 = vmul.f32 %v1857_v43, %v1857_v43  ;;  %vm1688_vm5 = vmmov 0  }
 0x380   : > { %1576 = vmatpush3.msra.mxu0 %v1871_v57  ;;  %1611 = vmatpush3.msra.mxu1 %v1124_v23  ;;  %v1113_v40 = vmul.f32 %v1851_v37, %v1851_v37  ;;  %v1112_v42 = vmul.f32 %v1847_v33, %v1847_v33  ;;  %v1110_v46 = vmul.f32 %v1849_v35, %v1849_v35 }
 0x381   : > { %1577 = vmatprep.subr.mxu0 %v1687_v24  ;;  %1612 = vmatprep.subr.mxu1 %v1687_v24 }
 0x382   : > { %1578 = vmatpush3.msra.mxu0 %v1877_v63  ;;  %1613 = vmatpush3.msra.mxu1 %v1123_v25 }
 0x383   : > { %1579 = vmatprep.subr.mxu0 %v1687_v24  ;;  %1614 = vmatprep.subr.mxu1 %v1687_v24 }
 0x384   : > { %1580 = vmatpush3.msra.mxu0 %v1873_v59  ;;  %1615 = vmatpush3.msra.mxu1 %v1122_v26 }
 0x385   : > { %1581 = vmatprep.subr.mxu0 %v1687_v24  ;;  %1616 = vmatprep.subr.mxu1 %v1687_v24 }
 0x386   : > { %1582 = vmatpush3.msra.mxu0 %v1867_v53  ;;  %1617 = vmatpush3.msra.mxu1 %v1121_v27 }
 0x387   : > { %1583 = vmatprep.subr.mxu0 %v1687_v24  ;;  %1618 = vmatprep.subr.mxu1 %v1687_v24 }
 0x388   : > { %1584 = vmatpush3.msra.mxu0 %v1863_v49  ;;  %1619 = vmatpush3.msra.mxu1 %v1120_v28 }
 0x389   : > { %1585 = vmatprep.subr.mxu0 %v1687_v24  ;;  %1620 = vmatprep.subr.mxu1 %v1687_v24 }
 0x38a   : > { %1586 = vmatpush3.msra.mxu0 %v1869_v55  ;;  %1621 = vmatpush3.msra.mxu1 %v1119_v29 }
 0x38b   : > { %1587 = vmatprep.subr.mxu0 %v1687_v24  ;;  %1622 = vmatprep.subr.mxu1 %v1687_v24 }
 0x38c   : > { %1588 = vmatpush3.msra.mxu0 %v1865_v51  ;;  %1623 = vmatpush3.msra.mxu1 %v1118_v30 }
 0x38d   : > { %1589 = vmatprep.subr.mxu0 %v1687_v24  ;;  %1624 = vmatprep.subr.mxu1 %v1687_v24 }
 0x38e   : > { %1590 = vmatpush3.msra.mxu0 %v1859_v45  ;;  %1625 = vmatpush3.msra.mxu1 %v1117_v31  ;;  %v1111_v45 = vmul.f32 %v1853_v39, %v1853_v39 }
 0x38f   : > { %1591 = vmatprep.subr.mxu0 %v1687_v24  ;;  %1626 = vmatprep.subr.mxu1 %v1687_v24 }
 0x390   : > { %1592 = vmatpush3.msra.mxu0 %v1855_v41  ;;  %1627 = vmatpush3.msra.mxu1 %v1116_v32  ;;  %v1032_v41 = vand.u32 127, %v1031_v36 }
 0x391   : > { %1593 = vmatprep.subr.mxu0 %v1687_v24  ;;  %1628 = vmatprep.subr.mxu1 %v1687_v24 }
 0x392   : > { %1594 = vmatpush3.msra.mxu0 %v1861_v47  ;;  %1629 = vmatpush3.msra.mxu1 %v1115_v34 }
 0x393   : > { %1595 = vmatprep.subr.mxu0 %v1687_v24  ;;  %1630 = vmatprep.subr.mxu1 %v1687_v24 }
 0x394   : > { %1596 = vmatpush3.msra.mxu0 %v1857_v43  ;;  %1631 = vmatpush3.msra.mxu1 %v1114_v38  ;;  %v1035_v43 = vadd.s32 %v1034_v44, %v1032_v41 }
 0x395   : > { %1597 = vmatprep.subr.mxu0 %v1687_v24  ;;  %1632 = vmatprep.subr.mxu1 %v1687_v24 }
 0x396   : > { %1598 = vmatpush3.msra.mxu0 %v1851_v37  ;;  %1633 = vmatpush3.msra.mxu1 %v1113_v40  ;;  %vm1036_vm4 = vcmp.lt.s32.totalorder %v1035_v43, 256 }
 0x397   : > { %1599 = vmatprep.subr.mxu0 %v1687_v24  ;;  %1634 = vmatprep.subr.mxu1 %v1687_v24 }
 0x398   : > { %1600 = vmatpush3.msra.mxu0 %v1847_v33  ;;  %1635 = vmatpush3.msra.mxu1 %v1112_v42  ;;  %v1689_v33 = vmov 1.0  }
 0x399   : > { %1601 = vmatprep.subr.mxu0 %v1687_v24  ;;  %1636 = vmatprep.subr.mxu1 %v1687_v24 }
 0x39a   : > { %1602 = vmatpush3.msra.mxu0 %v1853_v39  ;;  %1637 = vmatpush3.msra.mxu1 %v1111_v45 }
 0x39b   : > { %1603 = vmatprep.subr.mxu0 %v1687_v24  ;;  %1638 = vmatprep.subr.mxu1 %v1687_v24 }
 0x39c   : > { %1604 = vmatpush3.msra.mxu0 %v1849_v35  ;;  %1605 = vmatprep.mubr.msk.f32.mxu0 %vm1688_vm5, %v1687_v24 }
 0x39d   : > { %1639 = vmatpush3.msra.mxu1 %v1110_v46  ;;  %1640 = vmatprep.mubr.msk.f32.mxu1 %vm1688_vm5, %v1687_v24 }
 0x39e   : > { %1606 = vmatmul.mubr.msk.f32.vlgmr.msra.gmra.mxu0 %vm1036_vm4, %v1689_v33  ;;  %1641 = vmatmul.mubr.msk.f32.vlgmr.msra.gmra.mxu1 %vm1036_vm4, %v1689_v33 }
 0x45e   : > { %v1105_v37 = vpop.f32.mrf.mxu0  ;;  %v1192_v39 = vpop.f32.mrf.mxu1 }
 0x45f   : > { %1109 = vst [vmem:[%s1760_s17] sm:$0x1] %v1105_v37  ;;  %1196 = vst [vmem:[%s1765_s20] sm:$0x1] %v1192_v39 }
 0x460   : > { %v1607_v47 = vpop.f32.mrf.mxu0  ;;  %v1642_v48 = vpop.f32.mrf.mxu1 }
 0x461 PF: > { %s19_s27 = sadd.s32 1, %s1681_s27  }
 0x462   : > { %p16_p7 = scmp.ge.s32.totalorder %s19_s27, 4  }
 0x464   :  { %18 = sbr.rel (!%p16_p7) target bundleno = 1 (0x1), region = 98 }

// kernel: protonet_forward.11
= control target key start
LH: loop header
LB: loop body
LE: loop exit
PB: predicated region body
PF: predicated region fallthrough
CT: control target
= control target key end

     0   :  { %v749_v0 = vmov 0.0   ;;  %vm750_vm0 = vmmov 0   ;;  %vm387_vm1 = vcmask 130112   ;;  %vm394_vm2 = vcmask 195712   ;;  %s1097_s0 = inlined_call_operand.vmem [shape: f32[2,128,128], index: 0, kind: input, shape index: {}]   ;;  %s1098_s1 = inlined_call_operand.vmem [shape: f32[3,128], index: 1, kind: input, shape index: {}]   ;;  %s1099_s2 = inlined_call_operand.vmem [shape: f32[2,3,128], index: 2, kind: output, shape index: {}]  }
   0x1   :  { %613 = vmatprep.subr.mxu0 %v749_v0  ;;  %648 = vmatprep.subr.mxu1 %v749_v0  ;;  %v771_v1 = vld [vmem:[%s1097_s0 + $0x78] sm:$0xff]  ;;  %v781_v3 = vld [vmem:[%s1097_s0 + $0x80] sm:$0xff]  ;;  %v795_v6 = vld [vmem:[%s1097_s0 + $0x70] sm:$0xff]  ;;  %vm401_vm3 = vcmask 261312   ;;  %vm408_vm4 = vcmask 326912   ;;  %vm415_vm5 = vcmask 392512  }
   0x2   :  { %v776_v2 = vld [vmem:[%s1097_s0 + $0xf8] sm:$0xff]  ;;  %614 = vmatpush3.xpose.msra.mxu0 %v771_v1  ;;  %v59_v4 = vmul.f32 %v781_v3, %v781_v3  ;;  %v790_v5 = vld [vmem:[%s1097_s0] sm:$0xff]  ;;  %v804_v8 = vld [vmem:[%s1097_s0 + $0xf0] sm:$0xff]  ;;  %645 = vmatprep.mubr.msk.f32.mxu0 %vm750_vm0, %v749_v0  ;;  %v57_v62 = vmul.f32 %v795_v6, %v795_v6  ;;  %vm422_vm6 = vcmask 458112   ;;  %vm429_vm7 = vcmask 523712  }
   0x3   :  { %649 = vmatpush3.xpose.msra.mxu1 %v776_v2  ;;  %v43_v7 = vmul.f32 %v790_v5, %v790_v5  ;;  %615 = vmatprep.subr.mxu0 %v749_v0  ;;  %v809_v9 = vld [vmem:[%s1097_s0 + $0x88] sm:$0xff]  ;;  %v824_v13 = vld [vmem:[%s1097_s0 + $0x90] sm:$0xff]  ;;  %v853_v19 = vld [vmem:[%s1097_s0 + $0x98] sm:$0xff]  ;;  %v73_v61 = vmul.f32 %v804_v8, %v804_v8  ;;  %v74_v63 = vmul.f32 %v776_v2, %v776_v2  ;;  %vm436_vm8 = vcmask 589312  }
   0x4   :  { %650 = vmatprep.subr.mxu1 %v749_v0  ;;  %v814_v10 = vld [vmem:[%s1097_s0 + $0x8] sm:$0xff]  ;;  %107 = vadd.xlane.f32.xlu1 %v59_v4  ;;  %v60_v11 = vmul.f32 %v809_v9, %v809_v9  ;;  %v832_v14 = vld [vmem:[%s1097_s0 + $0x10] sm:$0xff]  ;;  %v61_v17 = vmul.f32 %v824_v13, %v824_v13  ;;  %v860_v20 = vld [vmem:[%s1097_s0 + $0x18] sm:$0xff]  ;;  %v62_v23 = vmul.f32 %v853_v19, %v853_v19  ;;  %vm443_vm9 = vcmask 654912  }
   0x5   :  { %75 = vadd.xlane.f32.xlu0 %v43_v7  ;;  %v44_v12 = vmul.f32 %v814_v10, %v814_v10  ;;  %680 = vmatprep.mubr.msk.f32.mxu1 %vm750_vm0, %v749_v0  ;;  %v839_v15 = vld [vmem:[%s1097_s0 + $0x68] sm:$0xff]  ;;  %v45_v18 = vmul.f32 %v832_v14, %v832_v14  ;;  %v867_v21 = vld [vmem:[%s1097_s0 + $0x60] sm:$0xff]  ;;  %v46_v24 = vmul.f32 %v860_v20, %v860_v20  ;;  %v895_v27 = vld [vmem:[%s1097_s0 + $0x58] sm:$0xff]  ;;  %vm450_vm10 = vcmask 720512  }
   0x6   :  { %616 = vmatpush3.xpose.msra.mxu0 %v795_v6  ;;  %v844_v16 = vld [vmem:[%s1097_s0 + $0xe8] sm:$0xff]  ;;  %v872_v22 = vld [vmem:[%s1097_s0 + $0xe0] sm:$0xff]  ;;  %v900_v28 = vld [vmem:[%s1097_s0 + $0xd8] sm:$0xff]  ;;  %v54_v56 = vmul.f32 %v895_v27, %v895_v27  ;;  %v55_v58 = vmul.f32 %v867_v21, %v867_v21  ;;  %v56_v60 = vmul.f32 %v839_v15, %v839_v15  ;;  %v58_v4 = vmul.f32 %v771_v1, %v771_v1 }
   0x7   :  { %651 = vmatpush3.xpose.msra.mxu1 %v804_v8  ;;  %617 = vmatprep.subr.mxu0 %v749_v0  ;;  %v881_v25 = vld [vmem:[%s1097_s0 + $0xa0] sm:$0xff]  ;;  %v32_v31 = vld [vmem:[%s1097_s0 + $0xa8] sm:$0xff]  ;;  %v21_v33 = vld [vmem:[%s1097_s0 + $0x50] sm:$0xff]  ;;  %v70_v55 = vmul.f32 %v900_v28, %v900_v28  ;;  %v71_v57 = vmul.f32 %v872_v22, %v872_v22  ;;  %v72_v59 = vmul.f32 %v844_v16, %v844_v16  ;;  %vm457_vm11 = vcmask 786112  }
   0x8   :  { %652 = vmatprep.subr.mxu1 %v749_v0  ;;  %109 = vadd.xlane.f32.xlu1 %v60_v11  ;;  %v888_v26 = vld [vmem:[%s1097_s0 + $0x20] sm:$0xff]  ;;  %v63_v29 = vmul.f32 %v881_v25, %v881_v25  ;;  %v16_v32 = vld [vmem:[%s1097_s0 + $0x28] sm:$0xff]  ;;  %v37_v34 = vld [vmem:[%s1097_s0 + $0xd0] sm:$0xff]  ;;  %v64_v35 = vmul.f32 %v32_v31, %v32_v31  ;;  %v53_v54 = vmul.f32 %v21_v33, %v21_v33  ;;  %vm464_vm12 = vcmask 851712  }
   0x9   :  { %77 = vadd.xlane.f32.xlu0 %v44_v12  ;;  %v47_v30 = vmul.f32 %v888_v26, %v888_v26  ;;  %v48_v36 = vmul.f32 %v16_v32, %v16_v32  ;;  %v33_v37 = vld [vmem:[%s1097_s0 + $0xb0] sm:$0xff]  ;;  %v20_v39 = vld [vmem:[%s1097_s0 + $0x48] sm:$0xff]  ;;  %v34_v43 = vld [vmem:[%s1097_s0 + $0xb8] sm:$0xff]  ;;  %v69_v53 = vmul.f32 %v37_v34, %v37_v34  ;;  %vm471_vm13 = vcmask 917312  }
   0xa   :  { %618 = vmatpush3.xpose.msra.mxu0 %v839_v15  ;;  %v17_v38 = vld [vmem:[%s1097_s0 + $0x30] sm:$0xff]  ;;  %v36_v40 = vld [vmem:[%s1097_s0 + $0xc8] sm:$0xff]  ;;  %v65_v41 = vmul.f32 %v33_v37, %v33_v37  ;;  %v18_v44 = vld [vmem:[%s1097_s0 + $0x38] sm:$0xff]  ;;  %v66_v47 = vmul.f32 %v34_v43, %v34_v43  ;;  %v52_v52 = vmul.f32 %v20_v39, %v20_v39  ;;  %vm478_vm14 = vcmask 982912  }
   0xb   :  { %653 = vmatpush3.xpose.msra.mxu1 %v844_v16  ;;  %619 = vmatprep.subr.mxu0 %v749_v0  ;;  %v49_v42 = vmul.f32 %v17_v38, %v17_v38  ;;  %v19_v45 = vld [vmem:[%s1097_s0 + $0x40] sm:$0xff]  ;;  %v50_v48 = vmul.f32 %v18_v44, %v18_v44  ;;  %v68_v51 = vmul.f32 %v36_v40, %v36_v40  ;;  %vm485_vm15 = vcmask 1048512  }
   0xc   :  { %654 = vmatprep.subr.mxu1 %v749_v0  ;;  %111 = vadd.xlane.f32.xlu1 %v61_v17  ;;  %v35_v46 = vld [vmem:[%s1097_s0 + $0xc0] sm:$0xff]  ;;  %v51_v50 = vmul.f32 %v19_v45, %v19_v45 }
   0xd   :  { %79 = vadd.xlane.f32.xlu0 %v45_v18  ;;  %v67_v49 = vmul.f32 %v35_v46, %v35_v46  ;;  %v203_v6 = vld [vmem:[%s1098_s1] sm:$0x7] }
   0xe   :  { %620 = vmatpush3.xpose.msra.mxu0 %v867_v21 }
   0xf   :  { %655 = vmatpush3.xpose.msra.mxu1 %v872_v22  ;;  %621 = vmatprep.subr.mxu0 %v749_v0 }
  0x10   :  { %656 = vmatprep.subr.mxu1 %v749_v0  ;;  %113 = vadd.xlane.f32.xlu1 %v62_v23 }
  0x11   :  { %81 = vadd.xlane.f32.xlu0 %v46_v24 }
  0x12   :  { %622 = vmatpush3.xpose.msra.mxu0 %v895_v27 }
  0x13   :  { %657 = vmatpush3.xpose.msra.mxu1 %v900_v28  ;;  %623 = vmatprep.subr.mxu0 %v749_v0  ;;  %v376_v28 = vlaneseq }
  0x14   :  { %658 = vmatprep.subr.mxu1 %v749_v0  ;;  %115 = vadd.xlane.f32.xlu1 %v63_v29 }
  0x15   :  { %83 = vadd.xlane.f32.xlu0 %v47_v30 }
  0x16   :  { %624 = vmatpush3.xpose.msra.mxu0 %v21_v33  ;;  %v1015_v33 = vand.u32 127, %v376_v28 }
  0x17   :  { %659 = vmatpush3.xpose.msra.mxu1 %v37_v34  ;;  %625 = vmatprep.subr.mxu0 %v749_v0 }
  0x18   :  { %660 = vmatprep.subr.mxu1 %v749_v0  ;;  %117 = vadd.xlane.f32.xlu1 %v64_v35 }
  0x19   :  { %85 = vadd.xlane.f32.xlu0 %v48_v36 }
  0x1a   :  { %626 = vmatpush3.xpose.msra.mxu0 %v20_v39  ;;  %v382_v39 = vadd.s32 4294967288, %v1015_v33 }
  0x1b   :  { %661 = vmatpush3.xpose.msra.mxu1 %v36_v40  ;;  %627 = vmatprep.subr.mxu0 %v749_v0 }
  0x1c   :  { %662 = vmatprep.subr.mxu1 %v749_v0  ;;  %119 = vadd.xlane.f32.xlu1 %v65_v41 }
  0x1d   :  { %87 = vadd.xlane.f32.xlu0 %v49_v42 }
  0x1e   :  { %628 = vmatpush3.xpose.msra.mxu0 %v19_v45 }
  0x1f   :  { %663 = vmatpush3.xpose.msra.mxu1 %v35_v46  ;;  %629 = vmatprep.subr.mxu0 %v749_v0 }
  0x20   :  { %664 = vmatprep.subr.mxu1 %v749_v0  ;;  %121 = vadd.xlane.f32.xlu1 %v66_v47 }
  0x21   :  { %89 = vadd.xlane.f32.xlu0 %v50_v48 }
  0x22   :  { %630 = vmatpush3.xpose.msra.mxu0 %v18_v44 }
  0x23   :  { %665 = vmatpush3.xpose.msra.mxu1 %v34_v43  ;;  %631 = vmatprep.subr.mxu0 %v749_v0  ;;  %v389_v43 = vadd.s32 4294967280, %v1015_v33 }
  0x24   :  { %666 = vmatprep.subr.mxu1 %v749_v0  ;;  %123 = vadd.xlane.f32.xlu1 %v67_v49 }
  0x25   :  { %91 = vadd.xlane.f32.xlu0 %v51_v50 }
  0x26   :  { %632 = vmatpush3.xpose.msra.mxu0 %v17_v38  ;;  %v1021_v38 = vshrl.u32 %v376_v28, 7 }
  0x27   :  { %667 = vmatpush3.xpose.msra.mxu1 %v33_v37  ;;  %633 = vmatprep.subr.mxu0 %v749_v0 }
  0x28   :  { %668 = vmatprep.subr.mxu1 %v749_v0  ;;  %125 = vadd.xlane.f32.xlu1 %v68_v51  ;;  %v380_v47 = vsub.s32 %v1015_v33, %v1021_v38  ;;  %v385_v48 = vsub.s32 %v382_v39, %v1021_v38 }
  0x29   :  { %93 = vadd.xlane.f32.xlu0 %v52_v52 }
  0x2a   :  { %634 = vmatpush3.xpose.msra.mxu0 %v16_v32 }
  0x2b   :  { %669 = vmatpush3.xpose.msra.mxu1 %v32_v31  ;;  %635 = vmatprep.subr.mxu0 %v749_v0 }
  0x2c   :  { %670 = vmatprep.subr.mxu1 %v749_v0  ;;  %127 = vadd.xlane.f32.xlu1 %v69_v53  ;;  %v396_v53 = vadd.s32 4294967272, %v1015_v33 }
  0x2d   :  { %95 = vadd.xlane.f32.xlu0 %v53_v54 }
  0x2e   :  { %636 = vmatpush3.xpose.msra.mxu0 %v888_v26 }
  0x2f   :  { %671 = vmatpush3.xpose.msra.mxu1 %v881_v25  ;;  %637 = vmatprep.subr.mxu0 %v749_v0 }
  0x30   :  { %672 = vmatprep.subr.mxu1 %v749_v0  ;;  %129 = vadd.xlane.f32.xlu1 %v70_v55  ;;  %v392_v55 = vsub.s32 %v389_v43, %v1021_v38 }
  0x31   :  { %97 = vadd.xlane.f32.xlu0 %v54_v56 }
  0x32   :  { %638 = vmatpush3.xpose.msra.mxu0 %v860_v20 }
  0x33   :  { %673 = vmatpush3.xpose.msra.mxu1 %v853_v19  ;;  %639 = vmatprep.subr.mxu0 %v749_v0 }
  0x34   :  { %674 = vmatprep.subr.mxu1 %v749_v0  ;;  %131 = vadd.xlane.f32.xlu1 %v71_v57 }
  0x35   :  { %99 = vadd.xlane.f32.xlu0 %v55_v58 }
  0x36   :  { %640 = vmatpush3.xpose.msra.mxu0 %v832_v14 }
  0x37   :  { %675 = vmatpush3.xpose.msra.mxu1 %v824_v13  ;;  %641 = vmatprep.subr.mxu0 %v749_v0 }
  0x38   :  { %676 = vmatprep.subr.mxu1 %v749_v0  ;;  %133 = vadd.xlane.f32.xlu1 %v72_v59 }
  0x39   :  { %101 = vadd.xlane.f32.xlu0 %v56_v60  ;;  %v403_v60 = vadd.s32 4294967264, %v1015_v33 }
  0x3a   :  { %642 = vmatpush3.xpose.msra.mxu0 %v814_v10 }
  0x3b   :  { %677 = vmatpush3.xpose.msra.mxu1 %v809_v9  ;;  %643 = vmatprep.subr.mxu0 %v749_v0 }
  0x3c   :  { %678 = vmatprep.subr.mxu1 %v749_v0  ;;  %135 = vadd.xlane.f32.xlu1 %v73_v61 }
  0x3d   :  { %103 = vadd.xlane.f32.xlu0 %v57_v62 }
  0x3e   :  { %644 = vmatpush3.xpose.msra.mxu0 %v790_v5 }
  0x3f   :  { %679 = vmatpush3.xpose.msra.mxu1 %v781_v3 }
  0x40   :  { %137 = vadd.xlane.f32.xlu1 %v74_v63 }
  0x41   :  { %105 = vadd.xlane.f32.xlu0 %v58_v4  ;;  %646 = vmatmul.mubr.f32.vlgmr.msra.gmra.mxu0 %v203_v6 }
  0x42   :  { %681 = vmatmul.mubr.f32.vlgmr.msra.gmra.mxu1 %v203_v6 }
  0x8d   :  { %v108_v0 = vpop.xlane.xlu1 %107 }
  0x8e   :  { %v76_v7 = vpop.xlane.xlu0 %75  ;;  %v155_v21 = vmax.f32 %v108_v0, 1e-16  ;;  %v399_v0 = vsub.s32 %v396_v53, %v1021_v38 }
  0x8f   :  { %v139_v23 = vmax.f32 %v76_v7, 1e-16  ;;  %v410_v7 = vadd.s32 4294967256, %v1015_v33 }
  0x90   :  { %685 = vrsqrt.f32 %v155_v21 }
  0x91   :  { %v110_v2 = vpop.xlane.xlu1 %109  ;;  %687 = vrsqrt.f32 %v139_v23 }
  0x92   :  { %v78_v8 = vpop.xlane.xlu0 %77  ;;  %v156_v25 = vmax.f32 %v110_v2, 1e-16 }
  0x93   :  { %v140_v24 = vmax.f32 %v78_v8, 1e-16 }
  0x95   :  { %v112_v10 = vpop.xlane.xlu1 %111  ;;  %689 = vrsqrt.f32 %v140_v24  ;;  %v417_v24 = vadd.s32 4294967248, %v1015_v33 }
  0x96   :  { %v80_v9 = vpop.xlane.xlu0 %79  ;;  %v157_v29 = vmax.f32 %v112_v10, 1e-16  ;;  %691 = vrsqrt.f32 %v156_v25 }
  0x97   :  { %v141_v26 = vmax.f32 %v80_v9, 1e-16 }
  0x99   :  { %v114_v1 = vpop.xlane.xlu1 %113  ;;  %693 = vrsqrt.f32 %v141_v26 }
  0x9a   :  { %v82_v11 = vpop.xlane.xlu0 %81  ;;  %v158_v32 = vmax.f32 %v114_v1, 1e-16  ;;  %695 = vrsqrt.f32 %v157_v29 }
  0x9b   :  { %v142_v31 = vmax.f32 %v82_v11, 1e-16 }
  0x9d   :  { %v116_v5 = vpop.xlane.xlu1 %115  ;;  %697 = vrsqrt.f32 %v142_v31  ;;  %v686_v42 = vpop.eup %685 }
  0x9e   :  { %v84_v12 = vpop.xlane.xlu0 %83  ;;  %v159_v36 = vmax.f32 %v116_v5, 1e-16  ;;  %699 = vrsqrt.f32 %v158_v32  ;;  %v688_v46 = vpop.eup %687  ;;  %v490_v62 = vrot.slane %v686_v42, %v380_v47  ;;  %v406_v5 = vsub.s32 %v403_v60, %v1021_v38 }
  0x9f   :  { %v143_v34 = vmax.f32 %v84_v12, 1e-16  ;;  %v381_v58 = vrot.slane %v688_v46, %v380_v47 }
  0xa1   :  { %v118_v3 = vpop.xlane.xlu1 %117  ;;  %701 = vrsqrt.f32 %v143_v34 }
  0xa2   :  { %v86_v13 = vpop.xlane.xlu0 %85  ;;  %v160_v41 = vmax.f32 %v118_v3, 1e-16  ;;  %703 = vrsqrt.f32 %v159_v36  ;;  %v690_v51 = vpop.eup %689 }
  0xa3   :  { %v144_v40 = vmax.f32 %v86_v13, 1e-16  ;;  %v692_v52 = vpop.eup %691  ;;  %v386_v59 = vrot.slane %v690_v51, %v385_v48 }
  0xa4   :  { %v494_v63 = vrot.slane %v692_v52, %v385_v48 }
  0xa5   :  { %v120_v15 = vpop.xlane.xlu1 %119  ;;  %705 = vrsqrt.f32 %v144_v40  ;;  %v388_v1 = vsel %vm387_vm1, %v386_v59, %v381_v58 }
  0xa6   :  { %v88_v14 = vpop.xlane.xlu0 %87  ;;  %v161_v49 = vmax.f32 %v120_v15, 1e-16  ;;  %707 = vrsqrt.f32 %v160_v41  ;;  %v694_v57 = vpop.eup %693  ;;  %v495_v3 = vsel %vm387_vm1, %v494_v63, %v490_v62  ;;  %v420_v41 = vsub.s32 %v417_v24, %v1021_v38 }
  0xa7   :  { %v145_v44 = vmax.f32 %v88_v14, 1e-16  ;;  %v696_v61 = vpop.eup %695  ;;  %v393_v10 = vrot.slane %v694_v57, %v392_v55 }
  0xa8   :  { %v499_v12 = vrot.slane %v696_v61, %v392_v55 }
  0xa9   :  { %v1001_v17 = vpop.xlane.xlu1 %121  ;;  %709 = vrsqrt.f32 %v145_v44  ;;  %v395_v21 = vsel %vm394_vm2, %v393_v10, %v388_v1  ;;  %v431_v44 = vadd.s32 4294967232, %v1015_v33 }
  0xaa   :  { %v999_v16 = vpop.xlane.xlu0 %89  ;;  %v162_v56 = vmax.f32 %v1001_v17, 1e-16  ;;  %711 = vrsqrt.f32 %v161_v49  ;;  %v698_v9 = vpop.eup %697  ;;  %v413_v17 = vsub.s32 %v410_v7, %v1021_v38  ;;  %v500_v26 = vsel %vm394_vm2, %v499_v12, %v495_v3 }
  0xab   :  { %v146_v54 = vmax.f32 %v999_v16, 1e-16  ;;  %v700_v11 = vpop.eup %699  ;;  %v400_v16 = vrot.slane %v698_v9, %v399_v0  ;;  %v434_v63 = vsub.s32 %v431_v44, %v1021_v38  ;;  %v445_v7 = vadd.s32 4294967216, %v1015_v33 }
  0xac   :  { %v504_v23 = vrot.slane %v700_v11, %v399_v0 }
  0xad   :  { %v1005_v19 = vpop.xlane.xlu1 %123  ;;  %713 = vrsqrt.f32 %v146_v54  ;;  %v402_v36 = vsel %vm401_vm3, %v400_v16, %v395_v21  ;;  %v448_v16 = vsub.s32 %v445_v7, %v1021_v38 }
  0xae   :  { %v1003_v18 = vpop.xlane.xlu0 %91  ;;  %v163_v8 = vmax.f32 %v1005_v19, 1e-16  ;;  %715 = vrsqrt.f32 %v162_v56  ;;  %v702_v15 = vpop.eup %701  ;;  %v505_v40 = vsel %vm401_vm3, %v504_v23, %v500_v26  ;;  %v438_v56 = vadd.s32 4294967224, %v1015_v33 }
  0xaf   :  { %v147_v4 = vmax.f32 %v1003_v18, 1e-16  ;;  %v704_v19 = vpop.eup %703  ;;  %v407_v31 = vrot.slane %v702_v15, %v406_v5 }
  0xb0   :  { %v509_v39 = vrot.slane %v704_v19, %v406_v5  ;;  %v441_v11 = vsub.s32 %v438_v56, %v1021_v38 }
  0xb1   :  { %v1009_v22 = vpop.xlane.xlu1 %125  ;;  %717 = vrsqrt.f32 %v147_v4  ;;  %v409_v47 = vsel %vm408_vm4, %v407_v31, %v402_v36 }
  0xb2   :  { %v1007_v20 = vpop.xlane.xlu0 %93  ;;  %v164_v14 = vmax.f32 %v1009_v22, 1e-16  ;;  %719 = vrsqrt.f32 %v163_v8  ;;  %v706_v29 = vpop.eup %705  ;;  %v510_v51 = vsel %vm408_vm4, %v509_v39, %v505_v40  ;;  %v480_v39 = vadd.s32 4294967176, %v1015_v33 }
  0xb3   :  { %v148_v13 = vmax.f32 %v1007_v20, 1e-16  ;;  %v708_v34 = vpop.eup %707  ;;  %v414_v43 = vrot.slane %v706_v29, %v413_v17 }
  0xb4   :  { %v514_v48 = vrot.slane %v708_v34, %v413_v17 }
  0xb5   :  { %v1013_v30 = vpop.xlane.xlu1 %127  ;;  %721 = vrsqrt.f32 %v148_v13  ;;  %v416_v59 = vsel %vm415_vm5, %v414_v43, %v409_v47 }
  0xb6   :  { %v1011_v27 = vpop.xlane.xlu0 %95  ;;  %v165_v18 = vmax.f32 %v1013_v30, 1e-16  ;;  %v424_v30 = vadd.s32 4294967240, %v1015_v33  ;;  %723 = vrsqrt.f32 %v164_v14  ;;  %v710_v42 = vpop.eup %709  ;;  %v515_v62 = vsel %vm415_vm5, %v514_v48, %v510_v51 }
  0xb7   :  { %v149_v20 = vmax.f32 %v1011_v27, 1e-16  ;;  %v712_v46 = vpop.eup %711  ;;  %v421_v55 = vrot.slane %v710_v42, %v420_v41  ;;  %v452_v14 = vadd.s32 4294967208, %v1015_v33 }
  0xb8   :  { %725 = vrsqrt.f32 %v165_v18  ;;  %v427_v52 = vsub.s32 %v424_v30, %v1021_v38  ;;  %v519_v60 = vrot.slane %v712_v46, %v420_v41  ;;  %v473_v30 = vadd.s32 4294967184, %v1015_v33 }
  0xb9   :  { %v1019_v37 = vpop.xlane.xlu1 %129  ;;  %727 = vrsqrt.f32 %v149_v20  ;;  %v459_v20 = vadd.s32 4294967200, %v1015_v33  ;;  %v455_v26 = vsub.s32 %v452_v14, %v1021_v38 }
  0xba   :  { %v1017_v35 = vpop.xlane.xlu0 %97  ;;  %v166_v22 = vmax.f32 %v1019_v37, 1e-16  ;;  %v714_v54 = vpop.eup %713  ;;  %v520_v10 = vsel %vm422_vm6, %v519_v60, %v515_v62  ;;  %v476_v46 = vsub.s32 %v473_v30, %v1021_v38 }
  0xbb   :  { %v150_v32 = vmax.f32 %v1017_v35, 1e-16  ;;  %v716_v58 = vpop.eup %715  ;;  %v428_v0 = vrot.slane %v714_v54, %v427_v52  ;;  %v462_v40 = vsub.s32 %v459_v20, %v1021_v38 }
  0xbc   :  { %729 = vrsqrt.f32 %v166_v22  ;;  %v524_v9 = vrot.slane %v716_v58, %v427_v52  ;;  %v466_v22 = vadd.s32 4294967192, %v1015_v33 }
  0xbd   :  { %v1030_v50 = vpop.xlane.xlu1 %131  ;;  %731 = vrsqrt.f32 %v150_v32 }
  0xbe   :  { %v1025_v45 = vpop.xlane.xlu0 %99  ;;  %v167_v27 = vmax.f32 %v1030_v50, 1e-16  ;;  %v525_v17 = vsel %vm429_vm7, %v524_v9, %v520_v10  ;;  %v469_v43 = vsub.s32 %v466_v22, %v1021_v38 }
  0xbf   :  { %v151_v37 = vmax.f32 %v1025_v45, 1e-16 }
  0xc0   :  { %733 = vrsqrt.f32 %v167_v27 }
  0xc1   :  { %v1043_v2 = vpop.xlane.xlu1 %133  ;;  %735 = vrsqrt.f32 %v151_v37 }
  0xc2   :  { %v1038_v6 = vpop.xlane.xlu0 %101  ;;  %v168_v35 = vmax.f32 %v1043_v2, 1e-16  ;;  %v423_v2 = vsel %vm422_vm6, %v421_v55, %v416_v59 }
  0xc3   :  { %v152_v49 = vmax.f32 %v1038_v6, 1e-16  ;;  %v718_v6 = vpop.eup %717  ;;  %v430_v3 = vsel %vm429_vm7, %v428_v0, %v423_v2 }
  0xc4   :  { %737 = vrsqrt.f32 %v168_v35  ;;  %v720_v8 = vpop.eup %719  ;;  %v435_v12 = vrot.slane %v718_v6, %v434_v63 }
  0xc5   :  { %v136_v28 = vpop.xlane.xlu1 %135  ;;  %739 = vrsqrt.f32 %v152_v49  ;;  %v722_v1 = vpop.eup %721  ;;  %v529_v13 = vrot.slane %v720_v8, %v434_v63  ;;  %v483_v49 = vsub.s32 %v480_v39, %v1021_v38 }
  0xc6   :  { %v104_v25 = vpop.xlane.xlu0 %103  ;;  %v169_v45 = vmax.f32 %v136_v28, 1e-16  ;;  %v724_v5 = vpop.eup %723  ;;  %v442_v19 = vrot.slane %v722_v1, %v441_v11  ;;  %v437_v24 = vsel %vm436_vm8, %v435_v12, %v430_v3 }
  0xc7   :  { %v153_v57 = vmax.f32 %v104_v25, 1e-16  ;;  %v726_v15 = vpop.eup %725  ;;  %v534_v23 = vrot.slane %v724_v5, %v441_v11  ;;  %v530_v28 = vsel %vm436_vm8, %v529_v13, %v525_v17 }
  0xc8   :  { %741 = vrsqrt.f32 %v169_v45  ;;  %v728_v18 = vpop.eup %727  ;;  %v539_v34 = vrot.slane %v726_v15, %v448_v16  ;;  %v444_v36 = vsel %vm443_vm9, %v442_v19, %v437_v24 }
  0xc9   :  { %v138_v53 = vpop.xlane.xlu1 %137  ;;  %743 = vrsqrt.f32 %v153_v57  ;;  %v730_v21 = vpop.eup %729  ;;  %v449_v31 = vrot.slane %v728_v18, %v448_v16  ;;  %v535_v41 = vsel %vm443_vm9, %v534_v23, %v530_v28 }
  0xca   :  { %v106_v50 = vpop.xlane.xlu0 %105  ;;  %v170_v4 = vmax.f32 %v138_v53, 1e-16  ;;  %v732_v25 = vpop.eup %731  ;;  %v544_v47 = vrot.slane %v730_v21, %v455_v26 }
  0xcb   :  { %v154_v61 = vmax.f32 %v106_v50, 1e-16  ;;  %v456_v42 = vrot.slane %v732_v25, %v455_v26  ;;  %v451_v35 = vsel %vm450_vm10, %v449_v31, %v444_v36  ;;  %v540_v50 = vsel %vm450_vm10, %v539_v34, %v535_v41 }
  0xcc   :  { %v545_v56 = vsel %vm457_vm11, %v544_v47, %v540_v50 }
  0xcd   :  { %745 = vrsqrt.f32 %v154_v61  ;;  %v734_v29 = vpop.eup %733  ;;  %v458_v45 = vsel %vm457_vm11, %v456_v42, %v451_v35 }
  0xce   :  { %747 = vrsqrt.f32 %v170_v4  ;;  %v736_v32 = vpop.eup %735  ;;  %v549_v54 = vrot.slane %v734_v29, %v462_v40 }
  0xcf   :  { %v463_v51 = vrot.slane %v736_v32, %v462_v40 }
  0xd0   :  { %v550_v38 = vsel %vm464_vm12, %v549_v54, %v545_v56 }
  0xd1   :  { %v738_v27 = vpop.eup %737  ;;  %v465_v60 = vsel %vm464_vm12, %v463_v51, %v458_v45 }
  0xd2   :  { %v740_v37 = vpop.eup %739  ;;  %v554_v57 = vrot.slane %v738_v27, %v469_v43 }
  0xd3   :  { %v470_v53 = vrot.slane %v740_v37, %v469_v43 }
  0xd4   :  { %v555_v4 = vsel %vm471_vm13, %v554_v57, %v550_v38 }
  0xd5   :  { %v742_v44 = vpop.eup %741  ;;  %v472_v62 = vsel %vm471_vm13, %v470_v53, %v465_v60 }
  0xd6   :  { %v744_v48 = vpop.eup %743  ;;  %v559_v59 = vrot.slane %v742_v44, %v476_v46 }
  0xd7   :  { %v477_v55 = vrot.slane %v744_v48, %v476_v46 }
  0xd8   :  { %v560_v7 = vsel %vm478_vm14, %v559_v59, %v555_v4 }
  0xd9   :  { %v479_v63 = vsel %vm478_vm14, %v477_v55, %v472_v62 }
  0xda   :  { %v746_v33 = vpop.eup %745 }
  0xdb   :  { %v748_v52 = vpop.eup %747  ;;  %v484_v58 = vrot.slane %v746_v33, %v483_v49 }
  0xdc   :  { %v564_v61 = vrot.slane %v748_v52, %v483_v49 }
  0xdd   :  { %v486_v0 = vsel %vm485_vm15, %v484_v58, %v479_v63 }
  0xde   :  { %v565_v9 = vsel %vm485_vm15, %v564_v61, %v560_v7 }
 0x101   :  { %v270_v6 = vpop.f32.mrf.mxu0 }
 0x102   :  { %v571_v8 = vmul.f32 %v486_v0, %v270_v6  ;;  %v340_v2 = vpop.f32.mrf.mxu1 }
 0x103   :  { %v572_v10 = vmul.f32 %v565_v9, %v340_v2  ;;  %v647_v11 = vpop.f32.mrf.mxu0 }
 0x104   :  { %573 = vst [vmem:[%s1099_s2] sm:$0x7] %v571_v8  ;;  %v682_v1 = vpop.f32.mrf.mxu1 }
 0x105   :  { %574 = vst [vmem:[%s1099_s2 + $0x4] sm:$0x7] %v572_v10 }

// kernel: protonet_forward.10
= control target key start
LH: loop header
LB: loop body
LE: loop exit
PB: predicated region body
PF: predicated region fallthrough
CT: control target
= control target key end

     0   :  { %v610_v0 = vmov 0.0   ;;  %vm611_vm0 = vmmov 0   ;;  %vm359_vm1 = vcmask 1041408   ;;  %s927_s0 = inlined_call_operand.vmem [shape: f32[4,128,128], index: 0, kind: input, shape index: {}]   ;;  %s928_s1 = inlined_call_operand.vmem [shape: f32[4,2,128], index: 1, kind: input, shape index: {}]   ;;  %s929_s2 = inlined_call_operand.vmem [shape: f32[4,2,128], index: 2, kind: output, shape index: {}]  }
   0x1   :  { %460 = vmatprep.subr.mxu0 %v610_v0  ;;  %495 = vmatprep.subr.mxu1 %v610_v0  ;;  %v26_v1 = vld [vmem:[%s927_s0 + $0x78] sm:$0xff]  ;;  %v25_v3 = vld [vmem:[%s927_s0 + $0x70] sm:$0xff]  ;;  %v24_v5 = vld [vmem:[%s927_s0 + $0x68] sm:$0xff] }
   0x2   :  { %v42_v2 = vld [vmem:[%s927_s0 + $0xf8] sm:$0xff]  ;;  %461 = vmatpush3.msra.mxu0 %v26_v1  ;;  %v41_v4 = vld [vmem:[%s927_s0 + $0xf0] sm:$0xff]  ;;  %v40_v6 = vld [vmem:[%s927_s0 + $0xe8] sm:$0xff]  ;;  %492 = vmatprep.mubr.msk.f32.mxu0 %vm611_vm0, %v610_v0 }
   0x3   :  { %496 = vmatpush3.msra.mxu1 %v42_v2  ;;  %462 = vmatprep.subr.mxu0 %v610_v0  ;;  %v23_v7 = vld [vmem:[%s927_s0 + $0x60] sm:$0xff]  ;;  %v22_v9 = vld [vmem:[%s927_s0 + $0x58] sm:$0xff]  ;;  %v21_v11 = vld [vmem:[%s927_s0 + $0x50] sm:$0xff] }
   0x4   :  { %497 = vmatprep.subr.mxu1 %v610_v0  ;;  %463 = vmatpush3.msra.mxu0 %v25_v3  ;;  %v39_v8 = vld [vmem:[%s927_s0 + $0xe0] sm:$0xff]  ;;  %v38_v10 = vld [vmem:[%s927_s0 + $0xd8] sm:$0xff]  ;;  %v37_v12 = vld [vmem:[%s927_s0 + $0xd0] sm:$0xff] }
   0x5   :  { %498 = vmatpush3.msra.mxu1 %v41_v4  ;;  %464 = vmatprep.subr.mxu0 %v610_v0  ;;  %v20_v13 = vld [vmem:[%s927_s0 + $0x48] sm:$0xff]  ;;  %v19_v15 = vld [vmem:[%s927_s0 + $0x40] sm:$0xff]  ;;  %v18_v17 = vld [vmem:[%s927_s0 + $0x38] sm:$0xff] }
   0x6   :  { %499 = vmatprep.subr.mxu1 %v610_v0  ;;  %465 = vmatpush3.msra.mxu0 %v24_v5  ;;  %v36_v14 = vld [vmem:[%s927_s0 + $0xc8] sm:$0xff]  ;;  %v35_v16 = vld [vmem:[%s927_s0 + $0xc0] sm:$0xff]  ;;  %v34_v18 = vld [vmem:[%s927_s0 + $0xb8] sm:$0xff] }
   0x7   :  { %500 = vmatpush3.msra.mxu1 %v40_v6  ;;  %466 = vmatprep.subr.mxu0 %v610_v0  ;;  %v17_v19 = vld [vmem:[%s927_s0 + $0x30] sm:$0xff]  ;;  %v16_v21 = vld [vmem:[%s927_s0 + $0x28] sm:$0xff]  ;;  %v15_v23 = vld [vmem:[%s927_s0 + $0x20] sm:$0xff] }
   0x8   :  { %501 = vmatprep.subr.mxu1 %v610_v0  ;;  %467 = vmatpush3.msra.mxu0 %v23_v7  ;;  %v33_v20 = vld [vmem:[%s927_s0 + $0xb0] sm:$0xff]  ;;  %v32_v22 = vld [vmem:[%s927_s0 + $0xa8] sm:$0xff]  ;;  %v31_v24 = vld [vmem:[%s927_s0 + $0xa0] sm:$0xff] }
   0x9   :  { %502 = vmatpush3.msra.mxu1 %v39_v8  ;;  %468 = vmatprep.subr.mxu0 %v610_v0  ;;  %v14_v25 = vld [vmem:[%s927_s0 + $0x18] sm:$0xff]  ;;  %v13_v27 = vld [vmem:[%s927_s0 + $0x10] sm:$0xff]  ;;  %v12_v29 = vld [vmem:[%s927_s0 + $0x8] sm:$0xff] }
   0xa   :  { %503 = vmatprep.subr.mxu1 %v610_v0  ;;  %469 = vmatpush3.msra.mxu0 %v22_v9  ;;  %v30_v26 = vld [vmem:[%s927_s0 + $0x98] sm:$0xff]  ;;  %v29_v28 = vld [vmem:[%s927_s0 + $0x90] sm:$0xff]  ;;  %v28_v30 = vld [vmem:[%s927_s0 + $0x88] sm:$0xff] }
   0xb   :  { %504 = vmatpush3.msra.mxu1 %v38_v10  ;;  %470 = vmatprep.subr.mxu0 %v610_v0  ;;  %v11_v31 = vld [vmem:[%s927_s0] sm:$0xff]  ;;  %v58_v35 = vld [vmem:[%s927_s0 + $0x178] sm:$0xff]  ;;  %v57_v37 = vld [vmem:[%s927_s0 + $0x170] sm:$0xff] }
   0xc   :  { %505 = vmatprep.subr.mxu1 %v610_v0  ;;  %471 = vmatpush3.msra.mxu0 %v21_v11  ;;  %v27_v32 = vld [vmem:[%s927_s0 + $0x80] sm:$0xff]  ;;  %v74_v36 = vld [vmem:[%s927_s0 + $0x1f8] sm:$0xff]  ;;  %v73_v38 = vld [vmem:[%s927_s0 + $0x1f0] sm:$0xff] }
   0xd   :  { %506 = vmatpush3.msra.mxu1 %v37_v12  ;;  %472 = vmatprep.subr.mxu0 %v610_v0  ;;  %v758_v33 = vld [vmem:[%s928_s1] sm:$0x3]  ;;  %v763_v34 = vld [vmem:[%s928_s1 + $0x2] sm:$0x3]  ;;  %v56_v39 = vld [vmem:[%s927_s0 + $0x168] sm:$0xff] }
   0xe   :  { %507 = vmatprep.subr.mxu1 %v610_v0  ;;  %473 = vmatpush3.msra.mxu0 %v20_v13  ;;  %v72_v40 = vld [vmem:[%s927_s0 + $0x1e8] sm:$0xff]  ;;  %v55_v41 = vld [vmem:[%s927_s0 + $0x160] sm:$0xff]  ;;  %v54_v43 = vld [vmem:[%s927_s0 + $0x158] sm:$0xff]  ;;  %v360_v6 = vsel %vm359_vm1, %v758_v33, 0.0  ;;  %v363_v8 = vsel %vm359_vm1, %v763_v34, 0.0 }
   0xf   :  { %508 = vmatpush3.msra.mxu1 %v36_v14  ;;  %474 = vmatprep.subr.mxu0 %v610_v0  ;;  %v71_v42 = vld [vmem:[%s927_s0 + $0x1e0] sm:$0xff]  ;;  %v70_v44 = vld [vmem:[%s927_s0 + $0x1d8] sm:$0xff]  ;;  %v53_v45 = vld [vmem:[%s927_s0 + $0x150] sm:$0xff] }
  0x10   :  { %509 = vmatprep.subr.mxu1 %v610_v0  ;;  %475 = vmatpush3.msra.mxu0 %v19_v15  ;;  %v69_v46 = vld [vmem:[%s927_s0 + $0x1d0] sm:$0xff]  ;;  %v52_v47 = vld [vmem:[%s927_s0 + $0x148] sm:$0xff]  ;;  %v51_v49 = vld [vmem:[%s927_s0 + $0x140] sm:$0xff] }
  0x11   :  { %510 = vmatpush3.msra.mxu1 %v35_v16  ;;  %476 = vmatprep.subr.mxu0 %v610_v0  ;;  %v68_v48 = vld [vmem:[%s927_s0 + $0x1c8] sm:$0xff]  ;;  %v67_v50 = vld [vmem:[%s927_s0 + $0x1c0] sm:$0xff]  ;;  %v50_v51 = vld [vmem:[%s927_s0 + $0x138] sm:$0xff] }
  0x12   :  { %511 = vmatprep.subr.mxu1 %v610_v0  ;;  %477 = vmatpush3.msra.mxu0 %v18_v17  ;;  %v66_v52 = vld [vmem:[%s927_s0 + $0x1b8] sm:$0xff]  ;;  %v49_v53 = vld [vmem:[%s927_s0 + $0x130] sm:$0xff]  ;;  %v48_v55 = vld [vmem:[%s927_s0 + $0x128] sm:$0xff] }
  0x13   :  { %512 = vmatpush3.msra.mxu1 %v34_v18  ;;  %478 = vmatprep.subr.mxu0 %v610_v0  ;;  %v65_v54 = vld [vmem:[%s927_s0 + $0x1b0] sm:$0xff]  ;;  %v64_v56 = vld [vmem:[%s927_s0 + $0x1a8] sm:$0xff]  ;;  %v47_v57 = vld [vmem:[%s927_s0 + $0x120] sm:$0xff] }
  0x14   :  { %513 = vmatprep.subr.mxu1 %v610_v0  ;;  %479 = vmatpush3.msra.mxu0 %v17_v19  ;;  %v63_v58 = vld [vmem:[%s927_s0 + $0x1a0] sm:$0xff]  ;;  %v46_v59 = vld [vmem:[%s927_s0 + $0x118] sm:$0xff]  ;;  %v45_v61 = vld [vmem:[%s927_s0 + $0x110] sm:$0xff] }
  0x15   :  { %514 = vmatpush3.msra.mxu1 %v33_v20  ;;  %480 = vmatprep.subr.mxu0 %v610_v0  ;;  %v62_v60 = vld [vmem:[%s927_s0 + $0x198] sm:$0xff]  ;;  %v61_v62 = vld [vmem:[%s927_s0 + $0x190] sm:$0xff]  ;;  %v44_v63 = vld [vmem:[%s927_s0 + $0x108] sm:$0xff] }
  0x16   :  { %515 = vmatprep.subr.mxu1 %v610_v0  ;;  %481 = vmatpush3.msra.mxu0 %v16_v21  ;;  %v60_v1 = vld [vmem:[%s927_s0 + $0x188] sm:$0xff]  ;;  %v43_v2 = vld [vmem:[%s927_s0 + $0x100] sm:$0xff] }
  0x17   :  { %516 = vmatpush3.msra.mxu1 %v32_v22  ;;  %482 = vmatprep.subr.mxu0 %v610_v0  ;;  %v59_v3 = vld [vmem:[%s927_s0 + $0x180] sm:$0xff] }
  0x18   :  { %517 = vmatprep.subr.mxu1 %v610_v0  ;;  %483 = vmatpush3.msra.mxu0 %v15_v23  ;;  %v77_v4 = vld [vmem:[%s928_s1 + $0x4] sm:$0x3]  ;;  %v78_v5 = vld [vmem:[%s928_s1 + $0x6] sm:$0x3] }
  0x19   :  { %518 = vmatpush3.msra.mxu1 %v31_v24  ;;  %484 = vmatprep.subr.mxu0 %v610_v0  ;;  %v366_v7 = vsel %vm359_vm1, %v77_v4, 0.0  ;;  %v369_v9 = vsel %vm359_vm1, %v78_v5, 0.0 }
  0x1a   :  { %519 = vmatprep.subr.mxu1 %v610_v0  ;;  %485 = vmatpush3.msra.mxu0 %v14_v25 }
  0x1b   :  { %520 = vmatpush3.msra.mxu1 %v30_v26  ;;  %486 = vmatprep.subr.mxu0 %v610_v0 }
  0x1c   :  { %521 = vmatprep.subr.mxu1 %v610_v0  ;;  %487 = vmatpush3.msra.mxu0 %v13_v27 }
  0x1d   :  { %522 = vmatpush3.msra.mxu1 %v29_v28  ;;  %488 = vmatprep.subr.mxu0 %v610_v0 }
  0x1e   :  { %523 = vmatprep.subr.mxu1 %v610_v0  ;;  %489 = vmatpush3.msra.mxu0 %v12_v29 }
  0x1f   :  { %524 = vmatpush3.msra.mxu1 %v28_v30  ;;  %490 = vmatprep.subr.mxu0 %v610_v0 }
  0x20   :  { %525 = vmatprep.subr.mxu1 %v610_v0  ;;  %491 = vmatpush3.msra.mxu0 %v11_v31 }
  0x21   :  { %526 = vmatpush3.msra.mxu1 %v27_v32  ;;  %527 = vmatprep.mubr.msk.f32.mxu1 %vm611_vm0, %v610_v0 }
  0x22   :  { %493 = vmatmul.mubr.f32.vlgmr.msra.gmra.mxu0 %v758_v33  ;;  %528 = vmatmul.mubr.f32.vlgmr.msra.gmra.mxu1 %v763_v34 }
  0x23   :  { %530 = vmatprep.subr.mxu0 %v610_v0  ;;  %565 = vmatprep.subr.mxu1 %v610_v0 }
  0x24   :  { %531 = vmatpush3.msra.mxu0 %v58_v35  ;;  %566 = vmatpush3.msra.mxu1 %v74_v36 }
  0x25   :  { %532 = vmatprep.subr.mxu0 %v610_v0  ;;  %567 = vmatprep.subr.mxu1 %v610_v0 }
  0x26   :  { %533 = vmatpush3.msra.mxu0 %v57_v37  ;;  %568 = vmatpush3.msra.mxu1 %v73_v38 }
  0x27   :  { %534 = vmatprep.subr.mxu0 %v610_v0  ;;  %569 = vmatprep.subr.mxu1 %v610_v0 }
  0x28   :  { %535 = vmatpush3.msra.mxu0 %v56_v39  ;;  %570 = vmatpush3.msra.mxu1 %v72_v40 }
  0x29   :  { %536 = vmatprep.subr.mxu0 %v610_v0  ;;  %571 = vmatprep.subr.mxu1 %v610_v0 }
  0x2a   :  { %537 = vmatpush3.msra.mxu0 %v55_v41  ;;  %572 = vmatpush3.msra.mxu1 %v71_v42 }
  0x2b   :  { %538 = vmatprep.subr.mxu0 %v610_v0  ;;  %573 = vmatprep.subr.mxu1 %v610_v0 }
  0x2c   :  { %539 = vmatpush3.msra.mxu0 %v54_v43  ;;  %574 = vmatpush3.msra.mxu1 %v70_v44 }
  0x2d   :  { %540 = vmatprep.subr.mxu0 %v610_v0  ;;  %575 = vmatprep.subr.mxu1 %v610_v0 }
  0x2e   :  { %541 = vmatpush3.msra.mxu0 %v53_v45  ;;  %576 = vmatpush3.msra.mxu1 %v69_v46 }
  0x2f   :  { %542 = vmatprep.subr.mxu0 %v610_v0  ;;  %577 = vmatprep.subr.mxu1 %v610_v0 }
  0x30   :  { %543 = vmatpush3.msra.mxu0 %v52_v47  ;;  %578 = vmatpush3.msra.mxu1 %v68_v48 }
  0x31   :  { %544 = vmatprep.subr.mxu0 %v610_v0  ;;  %579 = vmatprep.subr.mxu1 %v610_v0 }
  0x32   :  { %545 = vmatpush3.msra.mxu0 %v51_v49  ;;  %580 = vmatpush3.msra.mxu1 %v67_v50 }
  0x33   :  { %546 = vmatprep.subr.mxu0 %v610_v0  ;;  %581 = vmatprep.subr.mxu1 %v610_v0 }
  0x34   :  { %547 = vmatpush3.msra.mxu0 %v50_v51  ;;  %582 = vmatpush3.msra.mxu1 %v66_v52 }
  0x35   :  { %548 = vmatprep.subr.mxu0 %v610_v0  ;;  %583 = vmatprep.subr.mxu1 %v610_v0 }
  0x36   :  { %549 = vmatpush3.msra.mxu0 %v49_v53  ;;  %584 = vmatpush3.msra.mxu1 %v65_v54 }
  0x37   :  { %550 = vmatprep.subr.mxu0 %v610_v0  ;;  %585 = vmatprep.subr.mxu1 %v610_v0 }
  0x38   :  { %551 = vmatpush3.msra.mxu0 %v48_v55  ;;  %586 = vmatpush3.msra.mxu1 %v64_v56 }
  0x39   :  { %552 = vmatprep.subr.mxu0 %v610_v0  ;;  %587 = vmatprep.subr.mxu1 %v610_v0 }
  0x3a   :  { %553 = vmatpush3.msra.mxu0 %v47_v57  ;;  %588 = vmatpush3.msra.mxu1 %v63_v58 }
  0x3b   :  { %554 = vmatprep.subr.mxu0 %v610_v0  ;;  %589 = vmatprep.subr.mxu1 %v610_v0 }
  0x3c   :  { %555 = vmatpush3.msra.mxu0 %v46_v59  ;;  %590 = vmatpush3.msra.mxu1 %v62_v60 }
  0x3d   :  { %556 = vmatprep.subr.mxu0 %v610_v0  ;;  %591 = vmatprep.subr.mxu1 %v610_v0 }
  0x3e   :  { %557 = vmatpush3.msra.mxu0 %v45_v61  ;;  %592 = vmatpush3.msra.mxu1 %v61_v62 }
  0x3f   :  { %558 = vmatprep.subr.mxu0 %v610_v0  ;;  %593 = vmatprep.subr.mxu1 %v610_v0 }
  0x40   :  { %559 = vmatpush3.msra.mxu0 %v44_v63  ;;  %594 = vmatpush3.msra.mxu1 %v60_v1 }
  0x41   :  { %560 = vmatprep.subr.mxu0 %v610_v0  ;;  %595 = vmatprep.subr.mxu1 %v610_v0 }
  0x42   :  { %561 = vmatpush3.msra.mxu0 %v43_v2  ;;  %562 = vmatprep.mubr.msk.f32.mxu0 %vm611_vm0, %v610_v0 }
  0x43   :  { %596 = vmatpush3.msra.mxu1 %v59_v3  ;;  %597 = vmatprep.mubr.msk.f32.mxu1 %vm611_vm0, %v610_v0 }
  0x44   :  { %563 = vmatmul.mubr.f32.vlgmr.msra.gmra.mxu0 %v77_v4  ;;  %598 = vmatmul.mubr.f32.vlgmr.msra.gmra.mxu1 %v78_v5 }
  0x45   :  { %361 = vadd.xlane.f32.xlu0 %v360_v6  ;;  %367 = vadd.xlane.f32.xlu1 %v366_v7 }
  0x49   :  { %364 = vadd.xlane.f32.xlu0 %v363_v8  ;;  %370 = vadd.xlane.f32.xlu1 %v369_v9 }
  0xce   :  { %v362_v10 = vpop.xlane.xlu0 %361  ;;  %v368_v21 = vpop.xlane.xlu1 %367 }
  0xcf   :  { %v372_v11 = vadd.f32 1e-05, %v362_v10  ;;  %v374_v24 = vadd.f32 1e-05, %v368_v21 }
  0xd1   :  { %602 = vrcp.f32 %v372_v11 }
  0xd2   :  { %v365_v12 = vpop.xlane.xlu0 %364  ;;  %v371_v22 = vpop.xlane.xlu1 %370 }
  0xd3   :  { %v373_v13 = vadd.f32 1e-05, %v365_v12  ;;  %v375_v23 = vadd.f32 1e-05, %v371_v22 }
  0xd5   :  { %604 = vrcp.f32 %v373_v13 }
  0xd6   :  { %606 = vrcp.f32 %v375_v23 }
  0xd7   :  { %608 = vrcp.f32 %v374_v24 }
  0xde   :  { %v603_v14 = vpop.eup %602 }
  0xe2   :  { %v605_v15 = vpop.eup %604  ;;  %v145_v0 = vpop.f32.mrf.mxu0 }
  0xe3   :  { %v215_v16 = vpop.f32.mrf.mxu1  ;;  %v377_v17 = vmul.f32 %v603_v14, %v145_v0  ;;  %v607_v25 = vpop.eup %606 }
  0xe4   :  { %v379_v18 = vmul.f32 %v605_v15, %v215_v16  ;;  %v494_v19 = vpop.f32.mrf.mxu0  ;;  %v609_v26 = vpop.eup %608 }
  0xe5   :  { %v529_v20 = vpop.f32.mrf.mxu1  ;;  %384 = vst [vmem:[%s929_s2] sm:$0x3] %v377_v17 }
  0xe6   :  { %385 = vst [vmem:[%s929_s2 + $0x2] sm:$0x3] %v379_v18 }
 0x104   :  { %v285_v27 = vpop.f32.mrf.mxu0  ;;  %v355_v28 = vpop.f32.mrf.mxu1 }
 0x105   :  { %v381_v29 = vmul.f32 %v609_v26, %v285_v27  ;;  %v383_v30 = vmul.f32 %v607_v25, %v355_v28 }
 0x106   :  { %v564_v31 = vpop.f32.mrf.mxu0  ;;  %v599_v32 = vpop.f32.mrf.mxu1 }
 0x107   :  { %386 = vst [vmem:[%s929_s2 + $0x4] sm:$0x3] %v381_v29  ;;  %387 = vst [vmem:[%s929_s2 + $0x6] sm:$0x3] %v383_v30 }

</bundles_post_ra>
